<compile_context>
chip_gen: v7x
topology: tpu7x:2x2x1
jax: 0.10.0
libtpu: 0.0.40
codegen_flags: <defaults>
</compile_context>

<pallas_src>
import jax
import jax.numpy as jnp
from jax.experimental import pallas as pl
from jax.experimental.pallas import tpu as pltpu


# Layer geometry fixed by the architecture (fc1 expects 128 => 3x32x32 input):
#   conv1: 32x32x3  -> 30x30x16 -> pool -> 15x15x16
#   conv2: 15x15x16 -> 13x13x32 -> pool ->  6x 6x32
#   conv3:  6x 6x32 ->  4x 4x32 -> pool ->  2x 2x32
_GEOM = (
    # (Hin, Win, Cin, Cout)
    (32, 32, 3, 16),
    (15, 15, 16, 32),
    (6, 6, 32, 32),
)


# ----------------------------------------------------------------------------
# Pallas kernel
# ----------------------------------------------------------------------------
def _conv_relu_pool_stage(act, m_ref, r_ref):
    """One fused conv3x3 (no bias) + ReLU + 2x2 max-pool stage.

    act:   (Hin, Win*Cin) f32 value; row h is the (w, ci) flattened input row.
    m_ref: (6, Win*Cin, Wp*Cout) ref; m_ref[2*kh+dw] maps a flattened input row
           to the conv contribution of kernel-row kh at every pooled column j,
           for horizontal pool offset dw.
    r_ref: (4, Hp, Hin) ref of 0/1 row-selection matrices; r_ref[u][i, h] = 1
           iff h == 2*i + u (u = dh + kh).
    Returns the pooled activation (Hp, Wp*Cout) = next stage's `act`.
    """
    q = [[None, None], [None, None]]  # q[dh][dw] accumulators, (Hp, Wp*Cout)
    for kh in range(3):
        for dw in range(2):
            n = jnp.dot(act, m_ref[2 * kh + dw],
                        preferred_element_type=jnp.float32)       # (Hin, Wp*Cout)
            for dh in range(2):
                t = jnp.dot(r_ref[dh + kh], n,
                            preferred_element_type=jnp.float32)   # (Hp, Wp*Cout)
                q[dh][dw] = t if q[dh][dw] is None else q[dh][dw] + t
    pooled = jnp.maximum(jnp.maximum(q[0][0], q[0][1]),
                         jnp.maximum(q[1][0], q[1][1]))            # 2x2 max-pool
    return jnp.maximum(pooled, 0.0)                                # ReLU


def mednet_kernel(x_ref, m1_ref, r1_ref, m2_ref, r2_ref, m3_ref, r3_ref,
                  w1_ref, w2_ref, out_ref):
    act = x_ref[0]                                       # (32, 96)
    act = _conv_relu_pool_stage(act, m1_ref, r1_ref)     # (15, 240)
    act = _conv_relu_pool_stage(act, m2_ref, r2_ref)     # (6, 192)
    act = _conv_relu_pool_stage(act, m3_ref, r3_ref)     # (2, 64)
    # fc1: flatten order of `act` is (h, w, c); w1_ref[h] is the matching
    # (64, 64) row-block of the (reordered) fc1 weight.
    h = (jnp.dot(act[0:1, :], w1_ref[0], preferred_element_type=jnp.float32)
         + jnp.dot(act[1:2, :], w1_ref[1], preferred_element_type=jnp.float32))
    h = jnp.maximum(h, 0.0)
    # fc2, zero-padded to 128 output lanes -> single lane-dense store.
    out_ref[0] = jnp.dot(h, w2_ref[...], preferred_element_type=jnp.float32)


# ----------------------------------------------------------------------------
# Weight preprocessing (pure XLA, done once per parameter set)
# ----------------------------------------------------------------------------
def _conv_stage_operands(w, hin, win):
    """Build the matmul operands encoding one conv3x3 + 2x2-pool stage."""
    cout, cin, _, _ = w.shape
    hp, wp = (hin - 2) // 2, (win - 2) // 2
    w_t = jnp.transpose(w.astype(jnp.float32), (2, 3, 1, 0))      # (kh, kw, ci, co)
    per_dw = []
    for dw in range(2):
        # onehot[kw, w, j] = 1  iff  w == 2*j + dw + kw
        wi = jnp.arange(win)[None, :, None]
        jj = jnp.arange(wp)[None, None, :]
        kk = jnp.arange(3)[:, None, None]
        onehot = (wi == 2 * jj + dw + kk).astype(jnp.float32)      # (3, Win, Wp)
        m = jnp.einsum("xwj,kxcd->kwcjd", onehot, w_t)             # (kh, w, ci, j, co)
        per_dw.append(m.reshape(3, win * cin, wp * cout))
    m_full = jnp.stack(per_dw, axis=1).reshape(6, win * cin, wp * cout)  # [2*kh+dw]
    # r[u, i, h] = 1 iff h == 2*i + u,  u = dh + kh in [0, 4)
    uu = jnp.arange(4)[:, None, None]
    ii = jnp.arange(hp)[None, :, None]
    hh = jnp.arange(hin)[None, None, :]
    r = (hh == 2 * ii + uu).astype(jnp.float32)                    # (4, Hp, Hin)
    return m_full, r


def prepare_mednet_params(params):
    """PyTorch-shaped params -> kernel operands (can be cached by the caller)."""
    w1, w2, w3, fc1_w, fc2_w = params
    m1, r1 = _conv_stage_operands(w1, *_GEOM[0][:2])
    m2, r2 = _conv_stage_operands(w2, *_GEOM[1][:2])
    m3, r3 = _conv_stage_operands(w3, *_GEOM[2][:2])
    # fc1: kernel flatten order is (h, w, c); PyTorch .view order is (c, h, w).
    w1s = (fc1_w.astype(jnp.float32)
           .reshape(64, 32, 2, 2)        # (o, c, h, w)
           .transpose(2, 3, 1, 0)        # (h, w, c, o)
           .reshape(2, 64, 64))          # (h, w*32 + c, o)
    w2p = jnp.zeros((64, 128), jnp.float32).at[:, :10].set(
        fc2_w.astype(jnp.float32).T)
    return (m1, r1, m2, r2, m3, r3, w1s, w2p)


# ----------------------------------------------------------------------------
# Forward pass (single pallas_call)
# ----------------------------------------------------------------------------
def mednet_forward(x_nchw, prepared):
    m1, r1, m2, r2, m3, r3, w1s, w2p = prepared
    b = x_nchw.shape[0]
    # NCHW -> (B, H, W*C) row-flattened NHWC: the only activation-side XLA glue.
    x2 = x_nchw.astype(jnp.float32).transpose(0, 2, 3, 1).reshape(b, 32, 32 * 3)

    out = pl.pallas_call(
        mednet_kernel,
        out_shape=jax.ShapeDtypeStruct((b, 1, 128), jnp.float32),
        grid=(b,),
        in_specs=[
            pl.BlockSpec((1, 32, 96), lambda i: (i, 0, 0)),     # per-image input
            pl.BlockSpec((6, 96, 240), lambda i: (0, 0, 0)),    # conv1 taps
            pl.BlockSpec((4, 15, 32), lambda i: (0, 0, 0)),     # conv1 row-select
            pl.BlockSpec((6, 240, 192), lambda i: (0, 0, 0)),   # conv2 taps
            pl.BlockSpec((4, 6, 15), lambda i: (0, 0, 0)),      # conv2 row-select
            pl.BlockSpec((6, 192, 64), lambda i: (0, 0, 0)),    # conv3 taps
            pl.BlockSpec((4, 2, 6), lambda i: (0, 0, 0)),       # conv3 row-select
            pl.BlockSpec((2, 64, 64), lambda i: (0, 0, 0)),     # fc1 (split by h)
            pl.BlockSpec((64, 128), lambda i: (0, 0)),          # fc2 (lane-padded)
        ],
        out_specs=pl.BlockSpec((1, 1, 128), lambda i: (i, 0, 0)),
        compiler_params=pltpu.CompilerParams(
            dimension_semantics=("parallel",)),
    )(x2, m1, r1, m2, r2, m3, r3, w1s, w2p)

    return out[:, 0, :10]


@jax.jit
def mednet_apply(x_nchw, params):
    return mednet_forward(x_nchw, prepare_mednet_params(params))


# ----------------------------------------------------------------------------
# Pure-JAX reference (correctness check)
# ----------------------------------------------------------------------------
def mednet_reference(x, params):
    w1, w2, w3, fc1_w, fc2_w = params

    def conv(x, w):
        return jax.lax.conv_general_dilated(
            x, w, window_strides=(1, 1), padding="VALID",
            dimension_numbers=("NCHW", "OIHW", "NCHW"))

    def maxpool2(x):
        b, c, h, w = x.shape
        hp, wp = h // 2, w // 2
        x = x[:, :, :2 * hp, :2 * wp].reshape(b, c, hp, 2, wp, 2)
        return x.max(axis=(3, 5))

    out = maxpool2(jax.nn.relu(conv(x, w1)))
    out = maxpool2(jax.nn.relu(conv(out, w2)))
    out = maxpool2(jax.nn.relu(conv(out, w3)))
    out = out.reshape(out.shape[0], -1)
    out = jax.nn.relu(out @ fc1_w.T)
    return out @ fc2_w.T


# ----------------------------------------------------------------------------
if __name__ == "__main__":
    key = jax.random.PRNGKey(0)
    kx, k1, k2, k3, k4, k5 = jax.random.split(key, 6)

    # CIFAR-shaped input: fc1(128) requires a 3x32x32 spatial input. batch = 2.
    x = jax.random.normal(kx, (2, 3, 32, 32), dtype=jnp.float32)

    # Deterministic synthetic parameters (PyTorch weight shapes, no bias).
    params = (
        jax.random.normal(k1, (16, 3, 3, 3), dtype=jnp.float32) * 0.2,   # conv1
        jax.random.normal(k2, (32, 16, 3, 3), dtype=jnp.float32) * 0.1,  # conv2
        jax.random.normal(k3, (32, 32, 3, 3), dtype=jnp.float32) * 0.1,  # conv3
        jax.random.normal(k4, (64, 128), dtype=jnp.float32) * 0.1,       # fc1
        jax.random.normal(k5, (10, 64), dtype=jnp.float32) * 0.1,        # fc2
    )

    out = jax.block_until_ready(mednet_apply(x, params))
    ref = jax.block_until_ready(mednet_reference(x, params))

    assert out.shape == (2, 10), out.shape
    assert jnp.allclose(out, ref, atol=1e-2, rtol=1e-2), (
        float(jnp.max(jnp.abs(out - ref))))

    print("KERNEL_OK")
</pallas_src>

<mosaic_0001>
module attributes {stable_mosaic.version = 11 : i64} {
  func.func @mednet_kernel(%arg0: i32, %arg1: memref<1x32x96xf32, #tpu.memory_space<vmem>>, %arg2: memref<6x96x240xf32, #tpu.memory_space<vmem>>, %arg3: memref<4x15x32xf32, #tpu.memory_space<vmem>>, %arg4: memref<6x240x192xf32, #tpu.memory_space<vmem>>, %arg5: memref<4x6x15xf32, #tpu.memory_space<vmem>>, %arg6: memref<6x192x64xf32, #tpu.memory_space<vmem>>, %arg7: memref<4x2x6xf32, #tpu.memory_space<vmem>>, %arg8: memref<2x64x64xf32, #tpu.memory_space<vmem>>, %arg9: memref<64x128xf32, #tpu.memory_space<vmem>>, %arg10: memref<1x1x128xf32, #tpu.memory_space<vmem>>) attributes {dimension_semantics = [#tpu.dimension_semantics<parallel>], iteration_bounds = array<i64: 2>, scalar_prefetch = 0 : i64, scratch_operands = 0 : i64, tpu.core_type = #tpu.core_type<tc>, window_params = [{transform_indices = @transform_0, window_bounds = array<i64: 1, 32, 96>}, {pipeline_mode = #tpu.pipeline_mode<synchronous>, transform_indices = @transform_1, window_bounds = array<i64: 6, 96, 240>}, {pipeline_mode = #tpu.pipeline_mode<synchronous>, transform_indices = @transform_2, window_bounds = array<i64: 4, 15, 32>}, {pipeline_mode = #tpu.pipeline_mode<synchronous>, transform_indices = @transform_3, window_bounds = array<i64: 6, 240, 192>}, {pipeline_mode = #tpu.pipeline_mode<synchronous>, transform_indices = @transform_4, window_bounds = array<i64: 4, 6, 15>}, {pipeline_mode = #tpu.pipeline_mode<synchronous>, transform_indices = @transform_5, window_bounds = array<i64: 6, 192, 64>}, {pipeline_mode = #tpu.pipeline_mode<synchronous>, transform_indices = @transform_6, window_bounds = array<i64: 4, 2, 6>}, {pipeline_mode = #tpu.pipeline_mode<synchronous>, transform_indices = @transform_7, window_bounds = array<i64: 2, 64, 64>}, {pipeline_mode = #tpu.pipeline_mode<synchronous>, transform_indices = @transform_8, window_bounds = array<i64: 64, 128>}, {transform_indices = @transform_9, window_bounds = array<i64: 1, 1, 128>}]} {
    %c0 = arith.constant 0 : index
    %c0_0 = arith.constant 0 : index
    %c0_1 = arith.constant 0 : index
    %0 = vector.load %arg1[%c0, %c0_0, %c0_1] : memref<1x32x96xf32, #tpu.memory_space<vmem>>, vector<1x32x96xf32>
    %1 = vector.shape_cast %0 : vector<1x32x96xf32> to vector<32x96xf32>
    %c0_2 = arith.constant 0 : index
    %c0_3 = arith.constant 0 : index
    %c0_4 = arith.constant 0 : index
    %2 = vector.load %arg2[%c0_2, %c0_3, %c0_4] : memref<6x96x240xf32, #tpu.memory_space<vmem>>, vector<1x96x240xf32>
    %3 = vector.shape_cast %2 : vector<1x96x240xf32> to vector<96x240xf32>
    %cst = arith.constant dense<0.000000e+00> : vector<32x240xf32>
    %4 = tpu.matmul %1, %3, %cst {dimension_numbers = #tpu.dot_dimension_numbers<[1], [0], [0], [1], [0, 0, 1, 1], [], []>} : vector<32x96xf32>, vector<96x240xf32>, vector<32x240xf32> -> vector<32x240xf32>
    %c0_5 = arith.constant 0 : index
    %c0_6 = arith.constant 0 : index
    %c0_7 = arith.constant 0 : index
    %5 = vector.load %arg3[%c0_5, %c0_6, %c0_7] : memref<4x15x32xf32, #tpu.memory_space<vmem>>, vector<1x15x32xf32>
    %6 = vector.shape_cast %5 : vector<1x15x32xf32> to vector<15x32xf32>
    %cst_8 = arith.constant dense<0.000000e+00> : vector<15x240xf32>
    %7 = tpu.matmul %6, %4, %cst_8 {dimension_numbers = #tpu.dot_dimension_numbers<[1], [0], [0], [1], [0, 0, 1, 1], [], []>} : vector<15x32xf32>, vector<32x240xf32>, vector<15x240xf32> -> vector<15x240xf32>
    %c1 = arith.constant 1 : index
    %c0_9 = arith.constant 0 : index
    %c0_10 = arith.constant 0 : index
    %8 = vector.load %arg3[%c1, %c0_9, %c0_10] : memref<4x15x32xf32, #tpu.memory_space<vmem>>, vector<1x15x32xf32>
    %9 = vector.shape_cast %8 : vector<1x15x32xf32> to vector<15x32xf32>
    %cst_11 = arith.constant dense<0.000000e+00> : vector<15x240xf32>
    %10 = tpu.matmul %9, %4, %cst_11 {dimension_numbers = #tpu.dot_dimension_numbers<[1], [0], [0], [1], [0, 0, 1, 1], [], []>} : vector<15x32xf32>, vector<32x240xf32>, vector<15x240xf32> -> vector<15x240xf32>
    %c1_12 = arith.constant 1 : index
    %c0_13 = arith.constant 0 : index
    %c0_14 = arith.constant 0 : index
    %11 = vector.load %arg2[%c1_12, %c0_13, %c0_14] : memref<6x96x240xf32, #tpu.memory_space<vmem>>, vector<1x96x240xf32>
    %12 = vector.shape_cast %11 : vector<1x96x240xf32> to vector<96x240xf32>
    %cst_15 = arith.constant dense<0.000000e+00> : vector<32x240xf32>
    %13 = tpu.matmul %1, %12, %cst_15 {dimension_numbers = #tpu.dot_dimension_numbers<[1], [0], [0], [1], [0, 0, 1, 1], [], []>} : vector<32x96xf32>, vector<96x240xf32>, vector<32x240xf32> -> vector<32x240xf32>
    %c0_16 = arith.constant 0 : index
    %c0_17 = arith.constant 0 : index
    %c0_18 = arith.constant 0 : index
    %14 = vector.load %arg3[%c0_16, %c0_17, %c0_18] : memref<4x15x32xf32, #tpu.memory_space<vmem>>, vector<1x15x32xf32>
    %15 = vector.shape_cast %14 : vector<1x15x32xf32> to vector<15x32xf32>
    %cst_19 = arith.constant dense<0.000000e+00> : vector<15x240xf32>
    %16 = tpu.matmul %15, %13, %cst_19 {dimension_numbers = #tpu.dot_dimension_numbers<[1], [0], [0], [1], [0, 0, 1, 1], [], []>} : vector<15x32xf32>, vector<32x240xf32>, vector<15x240xf32> -> vector<15x240xf32>
    %c1_20 = arith.constant 1 : index
    %c0_21 = arith.constant 0 : index
    %c0_22 = arith.constant 0 : index
    %17 = vector.load %arg3[%c1_20, %c0_21, %c0_22] : memref<4x15x32xf32, #tpu.memory_space<vmem>>, vector<1x15x32xf32>
    %18 = vector.shape_cast %17 : vector<1x15x32xf32> to vector<15x32xf32>
    %cst_23 = arith.constant dense<0.000000e+00> : vector<15x240xf32>
    %19 = tpu.matmul %18, %13, %cst_23 {dimension_numbers = #tpu.dot_dimension_numbers<[1], [0], [0], [1], [0, 0, 1, 1], [], []>} : vector<15x32xf32>, vector<32x240xf32>, vector<15x240xf32> -> vector<15x240xf32>
    %c2 = arith.constant 2 : index
    %c0_24 = arith.constant 0 : index
    %c0_25 = arith.constant 0 : index
    %20 = vector.load %arg2[%c2, %c0_24, %c0_25] : memref<6x96x240xf32, #tpu.memory_space<vmem>>, vector<1x96x240xf32>
    %21 = vector.shape_cast %20 : vector<1x96x240xf32> to vector<96x240xf32>
    %cst_26 = arith.constant dense<0.000000e+00> : vector<32x240xf32>
    %22 = tpu.matmul %1, %21, %cst_26 {dimension_numbers = #tpu.dot_dimension_numbers<[1], [0], [0], [1], [0, 0, 1, 1], [], []>} : vector<32x96xf32>, vector<96x240xf32>, vector<32x240xf32> -> vector<32x240xf32>
    %c1_27 = arith.constant 1 : index
    %c0_28 = arith.constant 0 : index
    %c0_29 = arith.constant 0 : index
    %23 = vector.load %arg3[%c1_27, %c0_28, %c0_29] : memref<4x15x32xf32, #tpu.memory_space<vmem>>, vector<1x15x32xf32>
    %24 = vector.shape_cast %23 : vector<1x15x32xf32> to vector<15x32xf32>
    %cst_30 = arith.constant dense<0.000000e+00> : vector<15x240xf32>
    %25 = tpu.matmul %24, %22, %cst_30 {dimension_numbers = #tpu.dot_dimension_numbers<[1], [0], [0], [1], [0, 0, 1, 1], [], []>} : vector<15x32xf32>, vector<32x240xf32>, vector<15x240xf32> -> vector<15x240xf32>
    %26 = arith.addf %7, %25 : vector<15x240xf32>
    %c2_31 = arith.constant 2 : index
    %c0_32 = arith.constant 0 : index
    %c0_33 = arith.constant 0 : index
    %27 = vector.load %arg3[%c2_31, %c0_32, %c0_33] : memref<4x15x32xf32, #tpu.memory_space<vmem>>, vector<1x15x32xf32>
    %28 = vector.shape_cast %27 : vector<1x15x32xf32> to vector<15x32xf32>
    %cst_34 = arith.constant dense<0.000000e+00> : vector<15x240xf32>
    %29 = tpu.matmul %28, %22, %cst_34 {dimension_numbers = #tpu.dot_dimension_numbers<[1], [0], [0], [1], [0, 0, 1, 1], [], []>} : vector<15x32xf32>, vector<32x240xf32>, vector<15x240xf32> -> vector<15x240xf32>
    %30 = arith.addf %10, %29 : vector<15x240xf32>
    %c3 = arith.constant 3 : index
    %c0_35 = arith.constant 0 : index
    %c0_36 = arith.constant 0 : index
    %31 = vector.load %arg2[%c3, %c0_35, %c0_36] : memref<6x96x240xf32, #tpu.memory_space<vmem>>, vector<1x96x240xf32>
    %32 = vector.shape_cast %31 : vector<1x96x240xf32> to vector<96x240xf32>
    %cst_37 = arith.constant dense<0.000000e+00> : vector<32x240xf32>
    %33 = tpu.matmul %1, %32, %cst_37 {dimension_numbers = #tpu.dot_dimension_numbers<[1], [0], [0], [1], [0, 0, 1, 1], [], []>} : vector<32x96xf32>, vector<96x240xf32>, vector<32x240xf32> -> vector<32x240xf32>
    %c1_38 = arith.constant 1 : index
    %c0_39 = arith.constant 0 : index
    %c0_40 = arith.constant 0 : index
    %34 = vector.load %arg3[%c1_38, %c0_39, %c0_40] : memref<4x15x32xf32, #tpu.memory_space<vmem>>, vector<1x15x32xf32>
    %35 = vector.shape_cast %34 : vector<1x15x32xf32> to vector<15x32xf32>
    %cst_41 = arith.constant dense<0.000000e+00> : vector<15x240xf32>
    %36 = tpu.matmul %35, %33, %cst_41 {dimension_numbers = #tpu.dot_dimension_numbers<[1], [0], [0], [1], [0, 0, 1, 1], [], []>} : vector<15x32xf32>, vector<32x240xf32>, vector<15x240xf32> -> vector<15x240xf32>
    %37 = arith.addf %16, %36 : vector<15x240xf32>
    %c2_42 = arith.constant 2 : index
    %c0_43 = arith.constant 0 : index
    %c0_44 = arith.constant 0 : index
    %38 = vector.load %arg3[%c2_42, %c0_43, %c0_44] : memref<4x15x32xf32, #tpu.memory_space<vmem>>, vector<1x15x32xf32>
    %39 = vector.shape_cast %38 : vector<1x15x32xf32> to vector<15x32xf32>
    %cst_45 = arith.constant dense<0.000000e+00> : vector<15x240xf32>
    %40 = tpu.matmul %39, %33, %cst_45 {dimension_numbers = #tpu.dot_dimension_numbers<[1], [0], [0], [1], [0, 0, 1, 1], [], []>} : vector<15x32xf32>, vector<32x240xf32>, vector<15x240xf32> -> vector<15x240xf32>
    %41 = arith.addf %19, %40 : vector<15x240xf32>
    %c4 = arith.constant 4 : index
    %c0_46 = arith.constant 0 : index
    %c0_47 = arith.constant 0 : index
    %42 = vector.load %arg2[%c4, %c0_46, %c0_47] : memref<6x96x240xf32, #tpu.memory_space<vmem>>, vector<1x96x240xf32>
    %43 = vector.shape_cast %42 : vector<1x96x240xf32> to vector<96x240xf32>
    %cst_48 = arith.constant dense<0.000000e+00> : vector<32x240xf32>
    %44 = tpu.matmul %1, %43, %cst_48 {dimension_numbers = #tpu.dot_dimension_numbers<[1], [0], [0], [1], [0, 0, 1, 1], [], []>} : vector<32x96xf32>, vector<96x240xf32>, vector<32x240xf32> -> vector<32x240xf32>
    %c2_49 = arith.constant 2 : index
    %c0_50 = arith.constant 0 : index
    %c0_51 = arith.constant 0 : index
    %45 = vector.load %arg3[%c2_49, %c0_50, %c0_51] : memref<4x15x32xf32, #tpu.memory_space<vmem>>, vector<1x15x32xf32>
    %46 = vector.shape_cast %45 : vector<1x15x32xf32> to vector<15x32xf32>
    %cst_52 = arith.constant dense<0.000000e+00> : vector<15x240xf32>
    %47 = tpu.matmul %46, %44, %cst_52 {dimension_numbers = #tpu.dot_dimension_numbers<[1], [0], [0], [1], [0, 0, 1, 1], [], []>} : vector<15x32xf32>, vector<32x240xf32>, vector<15x240xf32> -> vector<15x240xf32>
    %48 = arith.addf %26, %47 : vector<15x240xf32>
    %c3_53 = arith.constant 3 : index
    %c0_54 = arith.constant 0 : index
    %c0_55 = arith.constant 0 : index
    %49 = vector.load %arg3[%c3_53, %c0_54, %c0_55] : memref<4x15x32xf32, #tpu.memory_space<vmem>>, vector<1x15x32xf32>
    %50 = vector.shape_cast %49 : vector<1x15x32xf32> to vector<15x32xf32>
    %cst_56 = arith.constant dense<0.000000e+00> : vector<15x240xf32>
    %51 = tpu.matmul %50, %44, %cst_56 {dimension_numbers = #tpu.dot_dimension_numbers<[1], [0], [0], [1], [0, 0, 1, 1], [], []>} : vector<15x32xf32>, vector<32x240xf32>, vector<15x240xf32> -> vector<15x240xf32>
    %52 = arith.addf %30, %51 : vector<15x240xf32>
    %c5 = arith.constant 5 : index
    %c0_57 = arith.constant 0 : index
    %c0_58 = arith.constant 0 : index
    %53 = vector.load %arg2[%c5, %c0_57, %c0_58] : memref<6x96x240xf32, #tpu.memory_space<vmem>>, vector<1x96x240xf32>
    %54 = vector.shape_cast %53 : vector<1x96x240xf32> to vector<96x240xf32>
    %cst_59 = arith.constant dense<0.000000e+00> : vector<32x240xf32>
    %55 = tpu.matmul %1, %54, %cst_59 {dimension_numbers = #tpu.dot_dimension_numbers<[1], [0], [0], [1], [0, 0, 1, 1], [], []>} : vector<32x96xf32>, vector<96x240xf32>, vector<32x240xf32> -> vector<32x240xf32>
    %c2_60 = arith.constant 2 : index
    %c0_61 = arith.constant 0 : index
    %c0_62 = arith.constant 0 : index
    %56 = vector.load %arg3[%c2_60, %c0_61, %c0_62] : memref<4x15x32xf32, #tpu.memory_space<vmem>>, vector<1x15x32xf32>
    %57 = vector.shape_cast %56 : vector<1x15x32xf32> to vector<15x32xf32>
    %cst_63 = arith.constant dense<0.000000e+00> : vector<15x240xf32>
    %58 = tpu.matmul %57, %55, %cst_63 {dimension_numbers = #tpu.dot_dimension_numbers<[1], [0], [0], [1], [0, 0, 1, 1], [], []>} : vector<15x32xf32>, vector<32x240xf32>, vector<15x240xf32> -> vector<15x240xf32>
    %59 = arith.addf %37, %58 : vector<15x240xf32>
    %c3_64 = arith.constant 3 : index
    %c0_65 = arith.constant 0 : index
    %c0_66 = arith.constant 0 : index
    %60 = vector.load %arg3[%c3_64, %c0_65, %c0_66] : memref<4x15x32xf32, #tpu.memory_space<vmem>>, vector<1x15x32xf32>
    %61 = vector.shape_cast %60 : vector<1x15x32xf32> to vector<15x32xf32>
    %cst_67 = arith.constant dense<0.000000e+00> : vector<15x240xf32>
    %62 = tpu.matmul %61, %55, %cst_67 {dimension_numbers = #tpu.dot_dimension_numbers<[1], [0], [0], [1], [0, 0, 1, 1], [], []>} : vector<15x32xf32>, vector<32x240xf32>, vector<15x240xf32> -> vector<15x240xf32>
    %63 = arith.addf %41, %62 : vector<15x240xf32>
    %64 = arith.maximumf %48, %59 : vector<15x240xf32>
    %65 = arith.maximumf %52, %63 : vector<15x240xf32>
    %66 = arith.maximumf %64, %65 : vector<15x240xf32>
    %cst_68 = arith.constant 0.000000e+00 : f32
    %67 = vector.broadcast %cst_68 : f32 to vector<15x240xf32>
    %68 = arith.maximumf %66, %67 : vector<15x240xf32>
    %c0_69 = arith.constant 0 : index
    %c0_70 = arith.constant 0 : index
    %c0_71 = arith.constant 0 : index
    %69 = vector.load %arg4[%c0_69, %c0_70, %c0_71] : memref<6x240x192xf32, #tpu.memory_space<vmem>>, vector<1x240x192xf32>
    %70 = vector.shape_cast %69 : vector<1x240x192xf32> to vector<240x192xf32>
    %cst_72 = arith.constant dense<0.000000e+00> : vector<15x192xf32>
    %71 = tpu.matmul %68, %70, %cst_72 {dimension_numbers = #tpu.dot_dimension_numbers<[1], [0], [0], [1], [0, 0, 1, 1], [], []>} : vector<15x240xf32>, vector<240x192xf32>, vector<15x192xf32> -> vector<15x192xf32>
    %c0_73 = arith.constant 0 : index
    %c0_74 = arith.constant 0 : index
    %c0_75 = arith.constant 0 : index
    %72 = vector.load %arg5[%c0_73, %c0_74, %c0_75] : memref<4x6x15xf32, #tpu.memory_space<vmem>>, vector<1x6x15xf32>
    %73 = vector.shape_cast %72 : vector<1x6x15xf32> to vector<6x15xf32>
    %cst_76 = arith.constant dense<0.000000e+00> : vector<6x192xf32>
    %74 = tpu.matmul %73, %71, %cst_76 {dimension_numbers = #tpu.dot_dimension_numbers<[1], [0], [0], [1], [0, 0, 1, 1], [], []>} : vector<6x15xf32>, vector<15x192xf32>, vector<6x192xf32> -> vector<6x192xf32>
    %c1_77 = arith.constant 1 : index
    %c0_78 = arith.constant 0 : index
    %c0_79 = arith.constant 0 : index
    %75 = vector.load %arg5[%c1_77, %c0_78, %c0_79] : memref<4x6x15xf32, #tpu.memory_space<vmem>>, vector<1x6x15xf32>
    %76 = vector.shape_cast %75 : vector<1x6x15xf32> to vector<6x15xf32>
    %cst_80 = arith.constant dense<0.000000e+00> : vector<6x192xf32>
    %77 = tpu.matmul %76, %71, %cst_80 {dimension_numbers = #tpu.dot_dimension_numbers<[1], [0], [0], [1], [0, 0, 1, 1], [], []>} : vector<6x15xf32>, vector<15x192xf32>, vector<6x192xf32> -> vector<6x192xf32>
    %c1_81 = arith.constant 1 : index
    %c0_82 = arith.constant 0 : index
    %c0_83 = arith.constant 0 : index
    %78 = vector.load %arg4[%c1_81, %c0_82, %c0_83] : memref<6x240x192xf32, #tpu.memory_space<vmem>>, vector<1x240x192xf32>
    %79 = vector.shape_cast %78 : vector<1x240x192xf32> to vector<240x192xf32>
    %cst_84 = arith.constant dense<0.000000e+00> : vector<15x192xf32>
    %80 = tpu.matmul %68, %79, %cst_84 {dimension_numbers = #tpu.dot_dimension_numbers<[1], [0], [0], [1], [0, 0, 1, 1], [], []>} : vector<15x240xf32>, vector<240x192xf32>, vector<15x192xf32> -> vector<15x192xf32>
    %c0_85 = arith.constant 0 : index
    %c0_86 = arith.constant 0 : index
    %c0_87 = arith.constant 0 : index
    %81 = vector.load %arg5[%c0_85, %c0_86, %c0_87] : memref<4x6x15xf32, #tpu.memory_space<vmem>>, vector<1x6x15xf32>
    %82 = vector.shape_cast %81 : vector<1x6x15xf32> to vector<6x15xf32>
    %cst_88 = arith.constant dense<0.000000e+00> : vector<6x192xf32>
    %83 = tpu.matmul %82, %80, %cst_88 {dimension_numbers = #tpu.dot_dimension_numbers<[1], [0], [0], [1], [0, 0, 1, 1], [], []>} : vector<6x15xf32>, vector<15x192xf32>, vector<6x192xf32> -> vector<6x192xf32>
    %c1_89 = arith.constant 1 : index
    %c0_90 = arith.constant 0 : index
    %c0_91 = arith.constant 0 : index
    %84 = vector.load %arg5[%c1_89, %c0_90, %c0_91] : memref<4x6x15xf32, #tpu.memory_space<vmem>>, vector<1x6x15xf32>
    %85 = vector.shape_cast %84 : vector<1x6x15xf32> to vector<6x15xf32>
    %cst_92 = arith.constant dense<0.000000e+00> : vector<6x192xf32>
    %86 = tpu.matmul %85, %80, %cst_92 {dimension_numbers = #tpu.dot_dimension_numbers<[1], [0], [0], [1], [0, 0, 1, 1], [], []>} : vector<6x15xf32>, vector<15x192xf32>, vector<6x192xf32> -> vector<6x192xf32>
    %c2_93 = arith.constant 2 : index
    %c0_94 = arith.constant 0 : index
    %c0_95 = arith.constant 0 : index
    %87 = vector.load %arg4[%c2_93, %c0_94, %c0_95] : memref<6x240x192xf32, #tpu.memory_space<vmem>>, vector<1x240x192xf32>
    %88 = vector.shape_cast %87 : vector<1x240x192xf32> to vector<240x192xf32>
    %cst_96 = arith.constant dense<0.000000e+00> : vector<15x192xf32>
    %89 = tpu.matmul %68, %88, %cst_96 {dimension_numbers = #tpu.dot_dimension_numbers<[1], [0], [0], [1], [0, 0, 1, 1], [], []>} : vector<15x240xf32>, vector<240x192xf32>, vector<15x192xf32> -> vector<15x192xf32>
    %c1_97 = arith.constant 1 : index
    %c0_98 = arith.constant 0 : index
    %c0_99 = arith.constant 0 : index
    %90 = vector.load %arg5[%c1_97, %c0_98, %c0_99] : memref<4x6x15xf32, #tpu.memory_space<vmem>>, vector<1x6x15xf32>
    %91 = vector.shape_cast %90 : vector<1x6x15xf32> to vector<6x15xf32>
    %cst_100 = arith.constant dense<0.000000e+00> : vector<6x192xf32>
    %92 = tpu.matmul %91, %89, %cst_100 {dimension_numbers = #tpu.dot_dimension_numbers<[1], [0], [0], [1], [0, 0, 1, 1], [], []>} : vector<6x15xf32>, vector<15x192xf32>, vector<6x192xf32> -> vector<6x192xf32>
    %93 = arith.addf %74, %92 : vector<6x192xf32>
    %c2_101 = arith.constant 2 : index
    %c0_102 = arith.constant 0 : index
    %c0_103 = arith.constant 0 : index
    %94 = vector.load %arg5[%c2_101, %c0_102, %c0_103] : memref<4x6x15xf32, #tpu.memory_space<vmem>>, vector<1x6x15xf32>
    %95 = vector.shape_cast %94 : vector<1x6x15xf32> to vector<6x15xf32>
    %cst_104 = arith.constant dense<0.000000e+00> : vector<6x192xf32>
    %96 = tpu.matmul %95, %89, %cst_104 {dimension_numbers = #tpu.dot_dimension_numbers<[1], [0], [0], [1], [0, 0, 1, 1], [], []>} : vector<6x15xf32>, vector<15x192xf32>, vector<6x192xf32> -> vector<6x192xf32>
    %97 = arith.addf %77, %96 : vector<6x192xf32>
    %c3_105 = arith.constant 3 : index
    %c0_106 = arith.constant 0 : index
    %c0_107 = arith.constant 0 : index
    %98 = vector.load %arg4[%c3_105, %c0_106, %c0_107] : memref<6x240x192xf32, #tpu.memory_space<vmem>>, vector<1x240x192xf32>
    %99 = vector.shape_cast %98 : vector<1x240x192xf32> to vector<240x192xf32>
    %cst_108 = arith.constant dense<0.000000e+00> : vector<15x192xf32>
    %100 = tpu.matmul %68, %99, %cst_108 {dimension_numbers = #tpu.dot_dimension_numbers<[1], [0], [0], [1], [0, 0, 1, 1], [], []>} : vector<15x240xf32>, vector<240x192xf32>, vector<15x192xf32> -> vector<15x192xf32>
    %c1_109 = arith.constant 1 : index
    %c0_110 = arith.constant 0 : index
    %c0_111 = arith.constant 0 : index
    %101 = vector.load %arg5[%c1_109, %c0_110, %c0_111] : memref<4x6x15xf32, #tpu.memory_space<vmem>>, vector<1x6x15xf32>
    %102 = vector.shape_cast %101 : vector<1x6x15xf32> to vector<6x15xf32>
    %cst_112 = arith.constant dense<0.000000e+00> : vector<6x192xf32>
    %103 = tpu.matmul %102, %100, %cst_112 {dimension_numbers = #tpu.dot_dimension_numbers<[1], [0], [0], [1], [0, 0, 1, 1], [], []>} : vector<6x15xf32>, vector<15x192xf32>, vector<6x192xf32> -> vector<6x192xf32>
    %104 = arith.addf %83, %103 : vector<6x192xf32>
    %c2_113 = arith.constant 2 : index
    %c0_114 = arith.constant 0 : index
    %c0_115 = arith.constant 0 : index
    %105 = vector.load %arg5[%c2_113, %c0_114, %c0_115] : memref<4x6x15xf32, #tpu.memory_space<vmem>>, vector<1x6x15xf32>
    %106 = vector.shape_cast %105 : vector<1x6x15xf32> to vector<6x15xf32>
    %cst_116 = arith.constant dense<0.000000e+00> : vector<6x192xf32>
    %107 = tpu.matmul %106, %100, %cst_116 {dimension_numbers = #tpu.dot_dimension_numbers<[1], [0], [0], [1], [0, 0, 1, 1], [], []>} : vector<6x15xf32>, vector<15x192xf32>, vector<6x192xf32> -> vector<6x192xf32>
    %108 = arith.addf %86, %107 : vector<6x192xf32>
    %c4_117 = arith.constant 4 : index
    %c0_118 = arith.constant 0 : index
    %c0_119 = arith.constant 0 : index
    %109 = vector.load %arg4[%c4_117, %c0_118, %c0_119] : memref<6x240x192xf32, #tpu.memory_space<vmem>>, vector<1x240x192xf32>
    %110 = vector.shape_cast %109 : vector<1x240x192xf32> to vector<240x192xf32>
    %cst_120 = arith.constant dense<0.000000e+00> : vector<15x192xf32>
    %111 = tpu.matmul %68, %110, %cst_120 {dimension_numbers = #tpu.dot_dimension_numbers<[1], [0], [0], [1], [0, 0, 1, 1], [], []>} : vector<15x240xf32>, vector<240x192xf32>, vector<15x192xf32> -> vector<15x192xf32>
    %c2_121 = arith.constant 2 : index
    %c0_122 = arith.constant 0 : index
    %c0_123 = arith.constant 0 : index
    %112 = vector.load %arg5[%c2_121, %c0_122, %c0_123] : memref<4x6x15xf32, #tpu.memory_space<vmem>>, vector<1x6x15xf32>
    %113 = vector.shape_cast %112 : vector<1x6x15xf32> to vector<6x15xf32>
    %cst_124 = arith.constant dense<0.000000e+00> : vector<6x192xf32>
    %114 = tpu.matmul %113, %111, %cst_124 {dimension_numbers = #tpu.dot_dimension_numbers<[1], [0], [0], [1], [0, 0, 1, 1], [], []>} : vector<6x15xf32>, vector<15x192xf32>, vector<6x192xf32> -> vector<6x192xf32>
    %115 = arith.addf %93, %114 : vector<6x192xf32>
    %c3_125 = arith.constant 3 : index
    %c0_126 = arith.constant 0 : index
    %c0_127 = arith.constant 0 : index
    %116 = vector.load %arg5[%c3_125, %c0_126, %c0_127] : memref<4x6x15xf32, #tpu.memory_space<vmem>>, vector<1x6x15xf32>
    %117 = vector.shape_cast %116 : vector<1x6x15xf32> to vector<6x15xf32>
    %cst_128 = arith.constant dense<0.000000e+00> : vector<6x192xf32>
    %118 = tpu.matmul %117, %111, %cst_128 {dimension_numbers = #tpu.dot_dimension_numbers<[1], [0], [0], [1], [0, 0, 1, 1], [], []>} : vector<6x15xf32>, vector<15x192xf32>, vector<6x192xf32> -> vector<6x192xf32>
    %119 = arith.addf %97, %118 : vector<6x192xf32>
    %c5_129 = arith.constant 5 : index
    %c0_130 = arith.constant 0 : index
    %c0_131 = arith.constant 0 : index
    %120 = vector.load %arg4[%c5_129, %c0_130, %c0_131] : memref<6x240x192xf32, #tpu.memory_space<vmem>>, vector<1x240x192xf32>
    %121 = vector.shape_cast %120 : vector<1x240x192xf32> to vector<240x192xf32>
    %cst_132 = arith.constant dense<0.000000e+00> : vector<15x192xf32>
    %122 = tpu.matmul %68, %121, %cst_132 {dimension_numbers = #tpu.dot_dimension_numbers<[1], [0], [0], [1], [0, 0, 1, 1], [], []>} : vector<15x240xf32>, vector<240x192xf32>, vector<15x192xf32> -> vector<15x192xf32>
    %c2_133 = arith.constant 2 : index
    %c0_134 = arith.constant 0 : index
    %c0_135 = arith.constant 0 : index
    %123 = vector.load %arg5[%c2_133, %c0_134, %c0_135] : memref<4x6x15xf32, #tpu.memory_space<vmem>>, vector<1x6x15xf32>
    %124 = vector.shape_cast %123 : vector<1x6x15xf32> to vector<6x15xf32>
    %cst_136 = arith.constant dense<0.000000e+00> : vector<6x192xf32>
    %125 = tpu.matmul %124, %122, %cst_136 {dimension_numbers = #tpu.dot_dimension_numbers<[1], [0], [0], [1], [0, 0, 1, 1], [], []>} : vector<6x15xf32>, vector<15x192xf32>, vector<6x192xf32> -> vector<6x192xf32>
    %126 = arith.addf %104, %125 : vector<6x192xf32>
    %c3_137 = arith.constant 3 : index
    %c0_138 = arith.constant 0 : index
    %c0_139 = arith.constant 0 : index
    %127 = vector.load %arg5[%c3_137, %c0_138, %c0_139] : memref<4x6x15xf32, #tpu.memory_space<vmem>>, vector<1x6x15xf32>
    %128 = vector.shape_cast %127 : vector<1x6x15xf32> to vector<6x15xf32>
    %cst_140 = arith.constant dense<0.000000e+00> : vector<6x192xf32>
    %129 = tpu.matmul %128, %122, %cst_140 {dimension_numbers = #tpu.dot_dimension_numbers<[1], [0], [0], [1], [0, 0, 1, 1], [], []>} : vector<6x15xf32>, vector<15x192xf32>, vector<6x192xf32> -> vector<6x192xf32>
    %130 = arith.addf %108, %129 : vector<6x192xf32>
    %131 = arith.maximumf %115, %126 : vector<6x192xf32>
    %132 = arith.maximumf %119, %130 : vector<6x192xf32>
    %133 = arith.maximumf %131, %132 : vector<6x192xf32>
    %cst_141 = arith.constant 0.000000e+00 : f32
    %134 = vector.broadcast %cst_141 : f32 to vector<6x192xf32>
    %135 = arith.maximumf %133, %134 : vector<6x192xf32>
    %c0_142 = arith.constant 0 : index
    %c0_143 = arith.constant 0 : index
    %c0_144 = arith.constant 0 : index
    %136 = vector.load %arg6[%c0_142, %c0_143, %c0_144] : memref<6x192x64xf32, #tpu.memory_space<vmem>>, vector<1x192x64xf32>
    %137 = vector.shape_cast %136 : vector<1x192x64xf32> to vector<192x64xf32>
    %cst_145 = arith.constant dense<0.000000e+00> : vector<6x64xf32>
    %138 = tpu.matmul %135, %137, %cst_145 {dimension_numbers = #tpu.dot_dimension_numbers<[1], [0], [0], [1], [0, 0, 1, 1], [], []>} : vector<6x192xf32>, vector<192x64xf32>, vector<6x64xf32> -> vector<6x64xf32>
    %c0_146 = arith.constant 0 : index
    %c0_147 = arith.constant 0 : index
    %c0_148 = arith.constant 0 : index
    %139 = vector.load %arg7[%c0_146, %c0_147, %c0_148] : memref<4x2x6xf32, #tpu.memory_space<vmem>>, vector<1x2x6xf32>
    %140 = vector.shape_cast %139 : vector<1x2x6xf32> to vector<2x6xf32>
    %cst_149 = arith.constant dense<0.000000e+00> : vector<2x64xf32>
    %141 = tpu.matmul %140, %138, %cst_149 {dimension_numbers = #tpu.dot_dimension_numbers<[1], [0], [0], [1], [0, 0, 1, 1], [], []>} : vector<2x6xf32>, vector<6x64xf32>, vector<2x64xf32> -> vector<2x64xf32>
    %c1_150 = arith.constant 1 : index
    %c0_151 = arith.constant 0 : index
    %c0_152 = arith.constant 0 : index
    %142 = vector.load %arg7[%c1_150, %c0_151, %c0_152] : memref<4x2x6xf32, #tpu.memory_space<vmem>>, vector<1x2x6xf32>
    %143 = vector.shape_cast %142 : vector<1x2x6xf32> to vector<2x6xf32>
    %cst_153 = arith.constant dense<0.000000e+00> : vector<2x64xf32>
    %144 = tpu.matmul %143, %138, %cst_153 {dimension_numbers = #tpu.dot_dimension_numbers<[1], [0], [0], [1], [0, 0, 1, 1], [], []>} : vector<2x6xf32>, vector<6x64xf32>, vector<2x64xf32> -> vector<2x64xf32>
    %c1_154 = arith.constant 1 : index
    %c0_155 = arith.constant 0 : index
    %c0_156 = arith.constant 0 : index
    %145 = vector.load %arg6[%c1_154, %c0_155, %c0_156] : memref<6x192x64xf32, #tpu.memory_space<vmem>>, vector<1x192x64xf32>
    %146 = vector.shape_cast %145 : vector<1x192x64xf32> to vector<192x64xf32>
    %cst_157 = arith.constant dense<0.000000e+00> : vector<6x64xf32>
    %147 = tpu.matmul %135, %146, %cst_157 {dimension_numbers = #tpu.dot_dimension_numbers<[1], [0], [0], [1], [0, 0, 1, 1], [], []>} : vector<6x192xf32>, vector<192x64xf32>, vector<6x64xf32> -> vector<6x64xf32>
    %c0_158 = arith.constant 0 : index
    %c0_159 = arith.constant 0 : index
    %c0_160 = arith.constant 0 : index
    %148 = vector.load %arg7[%c0_158, %c0_159, %c0_160] : memref<4x2x6xf32, #tpu.memory_space<vmem>>, vector<1x2x6xf32>
    %149 = vector.shape_cast %148 : vector<1x2x6xf32> to vector<2x6xf32>
    %cst_161 = arith.constant dense<0.000000e+00> : vector<2x64xf32>
    %150 = tpu.matmul %149, %147, %cst_161 {dimension_numbers = #tpu.dot_dimension_numbers<[1], [0], [0], [1], [0, 0, 1, 1], [], []>} : vector<2x6xf32>, vector<6x64xf32>, vector<2x64xf32> -> vector<2x64xf32>
    %c1_162 = arith.constant 1 : index
    %c0_163 = arith.constant 0 : index
    %c0_164 = arith.constant 0 : index
    %151 = vector.load %arg7[%c1_162, %c0_163, %c0_164] : memref<4x2x6xf32, #tpu.memory_space<vmem>>, vector<1x2x6xf32>
    %152 = vector.shape_cast %151 : vector<1x2x6xf32> to vector<2x6xf32>
    %cst_165 = arith.constant dense<0.000000e+00> : vector<2x64xf32>
    %153 = tpu.matmul %152, %147, %cst_165 {dimension_numbers = #tpu.dot_dimension_numbers<[1], [0], [0], [1], [0, 0, 1, 1], [], []>} : vector<2x6xf32>, vector<6x64xf32>, vector<2x64xf32> -> vector<2x64xf32>
    %c2_166 = arith.constant 2 : index
    %c0_167 = arith.constant 0 : index
    %c0_168 = arith.constant 0 : index
    %154 = vector.load %arg6[%c2_166, %c0_167, %c0_168] : memref<6x192x64xf32, #tpu.memory_space<vmem>>, vector<1x192x64xf32>
    %155 = vector.shape_cast %154 : vector<1x192x64xf32> to vector<192x64xf32>
    %cst_169 = arith.constant dense<0.000000e+00> : vector<6x64xf32>
    %156 = tpu.matmul %135, %155, %cst_169 {dimension_numbers = #tpu.dot_dimension_numbers<[1], [0], [0], [1], [0, 0, 1, 1], [], []>} : vector<6x192xf32>, vector<192x64xf32>, vector<6x64xf32> -> vector<6x64xf32>
    %c1_170 = arith.constant 1 : index
    %c0_171 = arith.constant 0 : index
    %c0_172 = arith.constant 0 : index
    %157 = vector.load %arg7[%c1_170, %c0_171, %c0_172] : memref<4x2x6xf32, #tpu.memory_space<vmem>>, vector<1x2x6xf32>
    %158 = vector.shape_cast %157 : vector<1x2x6xf32> to vector<2x6xf32>
    %cst_173 = arith.constant dense<0.000000e+00> : vector<2x64xf32>
    %159 = tpu.matmul %158, %156, %cst_173 {dimension_numbers = #tpu.dot_dimension_numbers<[1], [0], [0], [1], [0, 0, 1, 1], [], []>} : vector<2x6xf32>, vector<6x64xf32>, vector<2x64xf32> -> vector<2x64xf32>
    %160 = arith.addf %141, %159 : vector<2x64xf32>
    %c2_174 = arith.constant 2 : index
    %c0_175 = arith.constant 0 : index
    %c0_176 = arith.constant 0 : index
    %161 = vector.load %arg7[%c2_174, %c0_175, %c0_176] : memref<4x2x6xf32, #tpu.memory_space<vmem>>, vector<1x2x6xf32>
    %162 = vector.shape_cast %161 : vector<1x2x6xf32> to vector<2x6xf32>
    %cst_177 = arith.constant dense<0.000000e+00> : vector<2x64xf32>
    %163 = tpu.matmul %162, %156, %cst_177 {dimension_numbers = #tpu.dot_dimension_numbers<[1], [0], [0], [1], [0, 0, 1, 1], [], []>} : vector<2x6xf32>, vector<6x64xf32>, vector<2x64xf32> -> vector<2x64xf32>
    %164 = arith.addf %144, %163 : vector<2x64xf32>
    %c3_178 = arith.constant 3 : index
    %c0_179 = arith.constant 0 : index
    %c0_180 = arith.constant 0 : index
    %165 = vector.load %arg6[%c3_178, %c0_179, %c0_180] : memref<6x192x64xf32, #tpu.memory_space<vmem>>, vector<1x192x64xf32>
    %166 = vector.shape_cast %165 : vector<1x192x64xf32> to vector<192x64xf32>
    %cst_181 = arith.constant dense<0.000000e+00> : vector<6x64xf32>
    %167 = tpu.matmul %135, %166, %cst_181 {dimension_numbers = #tpu.dot_dimension_numbers<[1], [0], [0], [1], [0, 0, 1, 1], [], []>} : vector<6x192xf32>, vector<192x64xf32>, vector<6x64xf32> -> vector<6x64xf32>
    %c1_182 = arith.constant 1 : index
    %c0_183 = arith.constant 0 : index
    %c0_184 = arith.constant 0 : index
    %168 = vector.load %arg7[%c1_182, %c0_183, %c0_184] : memref<4x2x6xf32, #tpu.memory_space<vmem>>, vector<1x2x6xf32>
    %169 = vector.shape_cast %168 : vector<1x2x6xf32> to vector<2x6xf32>
    %cst_185 = arith.constant dense<0.000000e+00> : vector<2x64xf32>
    %170 = tpu.matmul %169, %167, %cst_185 {dimension_numbers = #tpu.dot_dimension_numbers<[1], [0], [0], [1], [0, 0, 1, 1], [], []>} : vector<2x6xf32>, vector<6x64xf32>, vector<2x64xf32> -> vector<2x64xf32>
    %171 = arith.addf %150, %170 : vector<2x64xf32>
    %c2_186 = arith.constant 2 : index
    %c0_187 = arith.constant 0 : index
    %c0_188 = arith.constant 0 : index
    %172 = vector.load %arg7[%c2_186, %c0_187, %c0_188] : memref<4x2x6xf32, #tpu.memory_space<vmem>>, vector<1x2x6xf32>
    %173 = vector.shape_cast %172 : vector<1x2x6xf32> to vector<2x6xf32>
    %cst_189 = arith.constant dense<0.000000e+00> : vector<2x64xf32>
    %174 = tpu.matmul %173, %167, %cst_189 {dimension_numbers = #tpu.dot_dimension_numbers<[1], [0], [0], [1], [0, 0, 1, 1], [], []>} : vector<2x6xf32>, vector<6x64xf32>, vector<2x64xf32> -> vector<2x64xf32>
    %175 = arith.addf %153, %174 : vector<2x64xf32>
    %c4_190 = arith.constant 4 : index
    %c0_191 = arith.constant 0 : index
    %c0_192 = arith.constant 0 : index
    %176 = vector.load %arg6[%c4_190, %c0_191, %c0_192] : memref<6x192x64xf32, #tpu.memory_space<vmem>>, vector<1x192x64xf32>
    %177 = vector.shape_cast %176 : vector<1x192x64xf32> to vector<192x64xf32>
    %cst_193 = arith.constant dense<0.000000e+00> : vector<6x64xf32>
    %178 = tpu.matmul %135, %177, %cst_193 {dimension_numbers = #tpu.dot_dimension_numbers<[1], [0], [0], [1], [0, 0, 1, 1], [], []>} : vector<6x192xf32>, vector<192x64xf32>, vector<6x64xf32> -> vector<6x64xf32>
    %c2_194 = arith.constant 2 : index
    %c0_195 = arith.constant 0 : index
    %c0_196 = arith.constant 0 : index
    %179 = vector.load %arg7[%c2_194, %c0_195, %c0_196] : memref<4x2x6xf32, #tpu.memory_space<vmem>>, vector<1x2x6xf32>
    %180 = vector.shape_cast %179 : vector<1x2x6xf32> to vector<2x6xf32>
    %cst_197 = arith.constant dense<0.000000e+00> : vector<2x64xf32>
    %181 = tpu.matmul %180, %178, %cst_197 {dimension_numbers = #tpu.dot_dimension_numbers<[1], [0], [0], [1], [0, 0, 1, 1], [], []>} : vector<2x6xf32>, vector<6x64xf32>, vector<2x64xf32> -> vector<2x64xf32>
    %182 = arith.addf %160, %181 : vector<2x64xf32>
    %c3_198 = arith.constant 3 : index
    %c0_199 = arith.constant 0 : index
    %c0_200 = arith.constant 0 : index
    %183 = vector.load %arg7[%c3_198, %c0_199, %c0_200] : memref<4x2x6xf32, #tpu.memory_space<vmem>>, vector<1x2x6xf32>
    %184 = vector.shape_cast %183 : vector<1x2x6xf32> to vector<2x6xf32>
    %cst_201 = arith.constant dense<0.000000e+00> : vector<2x64xf32>
    %185 = tpu.matmul %184, %178, %cst_201 {dimension_numbers = #tpu.dot_dimension_numbers<[1], [0], [0], [1], [0, 0, 1, 1], [], []>} : vector<2x6xf32>, vector<6x64xf32>, vector<2x64xf32> -> vector<2x64xf32>
    %186 = arith.addf %164, %185 : vector<2x64xf32>
    %c5_202 = arith.constant 5 : index
    %c0_203 = arith.constant 0 : index
    %c0_204 = arith.constant 0 : index
    %187 = vector.load %arg6[%c5_202, %c0_203, %c0_204] : memref<6x192x64xf32, #tpu.memory_space<vmem>>, vector<1x192x64xf32>
    %188 = vector.shape_cast %187 : vector<1x192x64xf32> to vector<192x64xf32>
    %cst_205 = arith.constant dense<0.000000e+00> : vector<6x64xf32>
    %189 = tpu.matmul %135, %188, %cst_205 {dimension_numbers = #tpu.dot_dimension_numbers<[1], [0], [0], [1], [0, 0, 1, 1], [], []>} : vector<6x192xf32>, vector<192x64xf32>, vector<6x64xf32> -> vector<6x64xf32>
    %c2_206 = arith.constant 2 : index
    %c0_207 = arith.constant 0 : index
    %c0_208 = arith.constant 0 : index
    %190 = vector.load %arg7[%c2_206, %c0_207, %c0_208] : memref<4x2x6xf32, #tpu.memory_space<vmem>>, vector<1x2x6xf32>
    %191 = vector.shape_cast %190 : vector<1x2x6xf32> to vector<2x6xf32>
    %cst_209 = arith.constant dense<0.000000e+00> : vector<2x64xf32>
    %192 = tpu.matmul %191, %189, %cst_209 {dimension_numbers = #tpu.dot_dimension_numbers<[1], [0], [0], [1], [0, 0, 1, 1], [], []>} : vector<2x6xf32>, vector<6x64xf32>, vector<2x64xf32> -> vector<2x64xf32>
    %193 = arith.addf %171, %192 : vector<2x64xf32>
    %c3_210 = arith.constant 3 : index
    %c0_211 = arith.constant 0 : index
    %c0_212 = arith.constant 0 : index
    %194 = vector.load %arg7[%c3_210, %c0_211, %c0_212] : memref<4x2x6xf32, #tpu.memory_space<vmem>>, vector<1x2x6xf32>
    %195 = vector.shape_cast %194 : vector<1x2x6xf32> to vector<2x6xf32>
    %cst_213 = arith.constant dense<0.000000e+00> : vector<2x64xf32>
    %196 = tpu.matmul %195, %189, %cst_213 {dimension_numbers = #tpu.dot_dimension_numbers<[1], [0], [0], [1], [0, 0, 1, 1], [], []>} : vector<2x6xf32>, vector<6x64xf32>, vector<2x64xf32> -> vector<2x64xf32>
    %197 = arith.addf %175, %196 : vector<2x64xf32>
    %198 = arith.maximumf %182, %193 : vector<2x64xf32>
    %199 = arith.maximumf %186, %197 : vector<2x64xf32>
    %200 = arith.maximumf %198, %199 : vector<2x64xf32>
    %cst_214 = arith.constant 0.000000e+00 : f32
    %201 = vector.broadcast %cst_214 : f32 to vector<2x64xf32>
    %202 = arith.maximumf %200, %201 : vector<2x64xf32>
    %203 = vector.extract_strided_slice %202 {offsets = [0, 0], sizes = [1, 64], strides = [1, 1]} : vector<2x64xf32> to vector<1x64xf32>
    %c0_215 = arith.constant 0 : index
    %c0_216 = arith.constant 0 : index
    %c0_217 = arith.constant 0 : index
    %204 = vector.load %arg8[%c0_215, %c0_216, %c0_217] : memref<2x64x64xf32, #tpu.memory_space<vmem>>, vector<1x64x64xf32>
    %205 = vector.shape_cast %204 : vector<1x64x64xf32> to vector<64x64xf32>
    %cst_218 = arith.constant dense<0.000000e+00> : vector<1x64xf32>
    %206 = tpu.matmul %203, %205, %cst_218 {dimension_numbers = #tpu.dot_dimension_numbers<[1], [0], [0], [1], [0, 0, 1, 1], [], []>} : vector<1x64xf32>, vector<64x64xf32>, vector<1x64xf32> -> vector<1x64xf32>
    %207 = vector.extract_strided_slice %202 {offsets = [1, 0], sizes = [1, 64], strides = [1, 1]} : vector<2x64xf32> to vector<1x64xf32>
    %c1_219 = arith.constant 1 : index
    %c0_220 = arith.constant 0 : index
    %c0_221 = arith.constant 0 : index
    %208 = vector.load %arg8[%c1_219, %c0_220, %c0_221] : memref<2x64x64xf32, #tpu.memory_space<vmem>>, vector<1x64x64xf32>
    %209 = vector.shape_cast %208 : vector<1x64x64xf32> to vector<64x64xf32>
    %cst_222 = arith.constant dense<0.000000e+00> : vector<1x64xf32>
    %210 = tpu.matmul %207, %209, %cst_222 {dimension_numbers = #tpu.dot_dimension_numbers<[1], [0], [0], [1], [0, 0, 1, 1], [], []>} : vector<1x64xf32>, vector<64x64xf32>, vector<1x64xf32> -> vector<1x64xf32>
    %211 = arith.addf %206, %210 : vector<1x64xf32>
    %cst_223 = arith.constant 0.000000e+00 : f32
    %212 = vector.broadcast %cst_223 : f32 to vector<1x64xf32>
    %213 = arith.maximumf %211, %212 : vector<1x64xf32>
    %c0_224 = arith.constant 0 : index
    %c0_225 = arith.constant 0 : index
    %214 = vector.load %arg9[%c0_224, %c0_225] : memref<64x128xf32, #tpu.memory_space<vmem>>, vector<64x128xf32>
    %cst_226 = arith.constant dense<0.000000e+00> : vector<1x128xf32>
    %215 = tpu.matmul %213, %214, %cst_226 {dimension_numbers = #tpu.dot_dimension_numbers<[1], [0], [0], [1], [0, 0, 1, 1], [], []>} : vector<1x64xf32>, vector<64x128xf32>, vector<1x128xf32> -> vector<1x128xf32>
    %c0_227 = arith.constant 0 : index
    %c0_228 = arith.constant 0 : index
    %c0_229 = arith.constant 0 : index
    %216 = vector.load %arg10[%c0_227, %c0_228, %c0_229] : memref<1x1x128xf32, #tpu.memory_space<vmem>>, vector<1x1x128xf32>
    %217 = vector.shape_cast %216 : vector<1x1x128xf32> to vector<1x128xf32>
    %218 = vector.shape_cast %215 : vector<1x128xf32> to vector<1x1x128xf32>
    tpu.vector_store %arg10[%c0_227, %c0_228, %c0_229], %218 {strides = array<i32>} : memref<1x1x128xf32, #tpu.memory_space<vmem>>, vector<1x1x128xf32>,
    return
  }
  func.func @transform_0(%arg0: i32) -> (i32, i32, i32) {
    %c0_i32 = arith.constant 0 : i32
    %c0_i32_0 = arith.constant 0 : i32
    %c0_i32_1 = arith.constant 0 : i32
    return %arg0, %c0_i32, %c0_i32_0 : i32, i32, i32
  }
  func.func @transform_1(%arg0: i32) -> (i32, i32, i32) {
    %c0_i32 = arith.constant 0 : i32
    %c0_i32_0 = arith.constant 0 : i32
    %c0_i32_1 = arith.constant 0 : i32
    %c0_i32_2 = arith.constant 0 : i32
    return %c0_i32, %c0_i32_0, %c0_i32_1 : i32, i32, i32
  }
  func.func @transform_2(%arg0: i32) -> (i32, i32, i32) {
    %c0_i32 = arith.constant 0 : i32
    %c0_i32_0 = arith.constant 0 : i32
    %c0_i32_1 = arith.constant 0 : i32
    %c0_i32_2 = arith.constant 0 : i32
    return %c0_i32, %c0_i32_0, %c0_i32_1 : i32, i32, i32
  }
  func.func @transform_3(%arg0: i32) -> (i32, i32, i32) {
    %c0_i32 = arith.constant 0 : i32
    %c0_i32_0 = arith.constant 0 : i32
    %c0_i32_1 = arith.constant 0 : i32
    %c0_i32_2 = arith.constant 0 : i32
    return %c0_i32, %c0_i32_0, %c0_i32_1 : i32, i32, i32
  }
  func.func @transform_4(%arg0: i32) -> (i32, i32, i32) {
    %c0_i32 = arith.constant 0 : i32
    %c0_i32_0 = arith.constant 0 : i32
    %c0_i32_1 = arith.constant 0 : i32
    %c0_i32_2 = arith.constant 0 : i32
    return %c0_i32, %c0_i32_0, %c0_i32_1 : i32, i32, i32
  }
  func.func @transform_5(%arg0: i32) -> (i32, i32, i32) {
    %c0_i32 = arith.constant 0 : i32
    %c0_i32_0 = arith.constant 0 : i32
    %c0_i32_1 = arith.constant 0 : i32
    %c0_i32_2 = arith.constant 0 : i32
    return %c0_i32, %c0_i32_0, %c0_i32_1 : i32, i32, i32
  }
  func.func @transform_6(%arg0: i32) -> (i32, i32, i32) {
    %c0_i32 = arith.constant 0 : i32
    %c0_i32_0 = arith.constant 0 : i32
    %c0_i32_1 = arith.constant 0 : i32
    %c0_i32_2 = arith.constant 0 : i32
    return %c0_i32, %c0_i32_0, %c0_i32_1 : i32, i32, i32
  }
  func.func @transform_7(%arg0: i32) -> (i32, i32, i32) {
    %c0_i32 = arith.constant 0 : i32
    %c0_i32_0 = arith.constant 0 : i32
    %c0_i32_1 = arith.constant 0 : i32
    %c0_i32_2 = arith.constant 0 : i32
    return %c0_i32, %c0_i32_0, %c0_i32_1 : i32, i32, i32
  }
  func.func @transform_8(%arg0: i32) -> (i32, i32) {
    %c0_i32 = arith.constant 0 : i32
    %c0_i32_0 = arith.constant 0 : i32
    %c0_i32_1 = arith.constant 0 : i32
    return %c0_i32, %c0_i32_0 : i32, i32
  }
  func.func @transform_9(%arg0: i32) -> (i32, i32, i32) {
    %c0_i32 = arith.constant 0 : i32
    %c0_i32_0 = arith.constant 0 : i32
    %c0_i32_1 = arith.constant 0 : i32
    return %arg0, %c0_i32, %c0_i32_0 : i32, i32, i32
  }
}

</mosaic_0001>

<bundles_post_ra>
// kernel: mednet_apply.1
= control target key start
LH: loop header
LB: loop body
LE: loop exit
PB: predicated region body
PF: predicated region fallthrough
CT: control target
= control target key end

     0   :  { %14 = vsyncpa [#allocation3], 0  ;;  %s10301_s0 = inlined_call_operand.vmem [shape: f32[2,32,96], index: 0, kind: input, shape index: {}]   ;;  %s10302_s1 = inlined_call_operand.vmem [shape: f32[6,96,240], index: 1, kind: input, shape index: {}]   ;;  %s10303_s2 = inlined_call_operand.vmem [shape: f32[4,15,32], index: 2, kind: input, shape index: {}]   ;;  %s10304_s3 = inlined_call_operand.vmem [shape: f32[6,240,192], index: 3, kind: input, shape index: {}]   ;;  %s10305_s4 = inlined_call_operand.vmem [shape: f32[4,6,15], index: 4, kind: input, shape index: {}]   ;;  %s10306_s5 = inlined_call_operand.vmem [shape: f32[6,192,64], index: 5, kind: input, shape index: {}]   ;;  %s10307_s6 = inlined_call_operand.vmem [shape: f32[4,2,6], index: 6, kind: input, shape index: {}]   ;;  %s10308_s7 = inlined_call_operand.vmem [shape: f32[2,64,64], index: 7, kind: input, shape index: {}]   ;;  %s10309_s8 = inlined_call_operand.vmem [shape: f32[64,128], index: 8, kind: input, shape index: {}]   ;;  %s10310_s9 = inlined_call_operand.hbm [shape: f32[2,1,128], index: 9, kind: output, shape index: {}]  }
   0x1   :  { %16 = vsyncpa [#allocation3 + $0x1], 0  ;;  %s7574_s30 = smov 0   ;;  %s7576_s10 = smov 0  }
   0x2   :  { %s7578_s11 = smov 0   ;;  %s7580_s12 = smov 0  }
   0x3 LB: > { %s7595_s13 = sadd.s32 4294967295, %s7517_s12   ;;  %s5555_s14 = sadd.s32 4294967294, %s7517_s12   ;;  %s7517_s12 = sphi %s7580_s12, %s10318_s12   ;;  %s7513_s11 = sphi %s7578_s11, %s10317_s11   ;;  %s7509_s10 = sphi %s7576_s10, %s10316_s10   ;;  %s7505_s30 = sphi %s7574_s30, %s10315_s30  }
   0x4   : > { %s7599_s15 = sadd.s32 1, %s7517_s12   ;;  %s223_s16 = sadd.s32 1, %s7513_s11 }
   0x5   : > { %s220_s17 = ssub.s32 %s7517_s12, %s7599_s15  ;;  %p233_p0 = scmp.ne.s32.totalorder %s7513_s11, %s7509_s10 }
   0x6   : > { %p221_p1 = scmp.eq.s32.totalorder %s220_s17, 0  ;;  %p234_p2 = scmp.eq.s32.totalorder %s7595_s13, 1 }
   0x7   : > { %p239_p3 = scmp.ne.s32.totalorder %s7509_s10, %s7505_s30  ;;  %p240_p4 = scmp.eq.s32.totalorder %s5555_s14, 1 }
   0x8   : > { %s7610_s18 = scalar_select %p221_p1, %s7513_s11, %s223_s16  }
   0x9   : > { %p7612_p5 = por %p234_p2, %p233_p0  ;;  %p7616_p6 = por %p240_p4, %p239_p3 }
   0xa   : > { %p5558_p7 = scmp.ge.s32.totalorder %s7517_s12, 1  ;;  %p290_p8 = scmp.lt.s32.totalorder %s7517_s12, 3 }
   0xc   : > { %p291_p9 = pnand %p5558_p7, %p290_p8 }
   0xd   : > { %v335_v0 = vld [vmem:[%s10302_s1 + $0x8] sm:$0xff] (!%p291_p9)  ;;  %v337_v1 = vld [vmem:[%s10302_s1 + $0x18] sm:$0xff] (!%p291_p9)  ;;  %v334_v5 = vld [vmem:[%s10302_s1] sm:$0xff] (!%p291_p9)  ;;  %v7519_v7 = vmov (!%p291_p9), 0.0   ;;  %p325_p10 = scmp.lt.s32.totalorder (!%p291_p9), %s7595_s13, 1  ;;  %vm358_vm0 = vcmask (!%p291_p9), 785408  }
   0xe   : > { %294 = sbr.rel (%p291_p9) target bundleno = 4002 (0xfa2), region = 56  ;;  %v5568_v2 = vld [vmem:[%s10302_s1 + $0xc8] sm:$0xff] (!%p291_p9)  ;;  %v6422_v3 = vpack.c.bf16 (!%p291_p9), %v337_v1, %v335_v0  ;;  %v5570_v4 = vld [vmem:[%s10302_s1 + $0xd8] sm:$0xff] (!%p291_p9)  ;;  %v336_v6 = vld [vmem:[%s10302_s1 + $0x10] sm:$0xff] (!%p291_p9)  ;;  %435 = vmatprep.mubr.f32.mxu0 (!%p291_p9), %v7519_v7  ;;  %554 = vmatprep.mubr.f32.mxu1 (!%p291_p9), %v7519_v7  ;;  %vm693_vm1 = vcmask (!%p291_p9), 261120   ;;  %vm2082_vm2 = vcmask (!%p291_p9), 916480  }
   0xf   : > { %v6446_v8 = vpack.c.bf16 (!%p291_p9), %v5570_v4, %v5568_v2  ;;  %v6424_v9 = vpack.c.bf16 (!%p291_p9), %v336_v6, %v334_v5  ;;  %v5567_v10 = vld [vmem:[%s10302_s1 + $0xc0] sm:$0xff] (!%p291_p9)  ;;  %v5569_v11 = vld [vmem:[%s10302_s1 + $0xd0] sm:$0xff] (!%p291_p9)  ;;  %v339_v12 = vld [vmem:[%s10302_s1 + $0x28] sm:$0xff] (!%p291_p9)  ;;  %vm2449_vm3 = vcmask (!%p291_p9), 1046528   ;;  %vm7520_vm4 = vmmov (!%p291_p9), 1   ;;  %s6250_s28 = sshll.u32 (!%p291_p9), %s7595_s13, 4 }
  0x10   : > { %6423 = vmatprep.subr.bf16.mxu0 (!%p291_p9), %v6422_v3  ;;  %v6448_v13 = vpack.c.bf16 (!%p291_p9), %v5569_v11, %v5567_v10  ;;  %v341_v14 = vld [vmem:[%s10302_s1 + $0x38] sm:$0xff] (!%p291_p9)  ;;  %v5572_v15 = vld [vmem:[%s10302_s1 + $0xe8] sm:$0xff] (!%p291_p9)  ;;  %v338_v19 = vld [vmem:[%s10302_s1 + $0x20] sm:$0xff] (!%p291_p9)  ;;  %vm2445_vm6 = vcmask (!%p291_p9), 121856   ;;  %vm3805_vm7 = vcmask (!%p291_p9), 523264   ;;  %vm7522_vm8 = vmmov (!%p291_p9), 0   ;;  %s10261_s16 = scalar_lea.hbm (!%p291_p9), %s10310_s9, %s6250_s28 }
  0x11   : > { %v5574_v16 = vld [vmem:[%s10302_s1 + $0xf8] sm:$0xff] (!%p291_p9)  ;;  %6447 = vmatprep.subr.bf16.mxu1 (!%p291_p9), %v6446_v8  ;;  %6425 = vmatpush1.bf16.msra.mxu0 (!%p291_p9), %v6424_v9  ;;  %v6426_v17 = vpack.c.bf16 (!%p291_p9), %v341_v14, %v339_v12  ;;  %v340_v20 = vld [vmem:[%s10302_s1 + $0x30] sm:$0xff] (!%p291_p9)  ;;  %v5571_v21 = vld [vmem:[%s10302_s1 + $0xe0] sm:$0xff] (!%p291_p9)  ;;  %vm4076_vm9 = vcmask (!%p291_p9), 1045504   ;;  %vm4072_vm10 = vcmask (!%p291_p9), 48128  }
  0x12   : > { %v6450_v18 = vpack.c.bf16 (!%p291_p9), %v5574_v16, %v5572_v15  ;;  %6449 = vmatpush1.bf16.msra.mxu1 (!%p291_p9), %v6448_v13  ;;  %v6428_v22 = vpack.c.bf16 (!%p291_p9), %v340_v20, %v338_v19  ;;  %v5573_v23 = vld [vmem:[%s10302_s1 + $0xf0] sm:$0xff] (!%p291_p9)  ;;  %v343_v24 = vld [vmem:[%s10302_s1 + $0x48] sm:$0xff] (!%p291_p9)  ;;  %v345_v25 = vld [vmem:[%s10302_s1 + $0x58] sm:$0xff] (!%p291_p9) }
  0x13   : > { %6427 = vmatprep.subr.bf16.mxu0 (!%p291_p9), %v6426_v17  ;;  %v6452_v26 = vpack.c.bf16 (!%p291_p9), %v5573_v23, %v5571_v21  ;;  %v6430_v27 = vpack.c.bf16 (!%p291_p9), %v345_v25, %v343_v24  ;;  %v5576_v28 = vld [vmem:[%s10302_s1 + $0x108] sm:$0xff] (!%p291_p9)  ;;  %v5578_v29 = vld [vmem:[%s10302_s1 + $0x118] sm:$0xff] (!%p291_p9)  ;;  %v342_v30 = vld [vmem:[%s10302_s1 + $0x40] sm:$0xff] (!%p291_p9) }
  0x14   : > { %6451 = vmatprep.subr.bf16.mxu1 (!%p291_p9), %v6450_v18  ;;  %v6454_v31 = vpack.c.bf16 (!%p291_p9), %v5578_v29, %v5576_v28  ;;  %v344_v32 = vld [vmem:[%s10302_s1 + $0x50] sm:$0xff] (!%p291_p9)  ;;  %v5575_v33 = vld [vmem:[%s10302_s1 + $0x100] sm:$0xff] (!%p291_p9)  ;;  %v347_v36 = vld [vmem:[%s10302_s1 + $0x68] sm:$0xff] (!%p291_p9) }
  0x15   : > { %v5577_v34 = vld [vmem:[%s10302_s1 + $0x110] sm:$0xff]  ;;  %6429 = vmatpush1.bf16.msra.mxu0 %v6428_v22  ;;  %v6432_v35 = vpack.c.bf16 %v344_v32, %v342_v30  ;;  %v349_v37 = vld [vmem:[%s10302_s1 + $0x78] sm:$0xff]  ;;  %v5580_v38 = vld [vmem:[%s10302_s1 + $0x128] sm:$0xff]  ;;  %s326_s21 = scalar_select %p325_p10, %s7595_s13, 1 }
  0x16   : > { %6453 = vmatpush1.bf16.msra.mxu1 %v6452_v26  ;;  %6431 = vmatprep.subr.bf16.mxu0 %v6430_v27  ;;  %v6456_v39 = vpack.c.bf16 %v5577_v34, %v5575_v33  ;;  %v6434_v40 = vpack.c.bf16 %v349_v37, %v347_v36  ;;  %v5582_v41 = vld [vmem:[%s10302_s1 + $0x138] sm:$0xff]  ;;  %v346_v42 = vld [vmem:[%s10302_s1 + $0x60] sm:$0xff]  ;;  %v348_v43 = vld [vmem:[%s10302_s1 + $0x70] sm:$0xff]  ;;  %s7523_s13 = smov [#allocation2]  }
  0x17   : > { %6455 = vmatprep.subr.bf16.mxu1 %v6454_v31  ;;  %v6458_v44 = vpack.c.bf16 %v5582_v41, %v5580_v38  ;;  %v5579_v45 = vld [vmem:[%s10302_s1 + $0x120] sm:$0xff]  ;;  %v5581_v46 = vld [vmem:[%s10302_s1 + $0x130] sm:$0xff]  ;;  %v351_v47 = vld [vmem:[%s10302_s1 + $0x88] sm:$0xff]  ;;  %v6436_v51 = vpack.c.bf16 %v348_v43, %v346_v42  ;;  %s6253_s23 = sshll.u32 %s326_s21, 5  ;;  %s7459_s24 = sshll.u32 %s7523_s13, 4  ;;  %s7460_s24 = int_to_ptr.vmem [resolvable:$false] %s7459_s24 }
  0x18   : > { %v353_v48 = vld [vmem:[%s10302_s1 + $0x98] sm:$0xff]  ;;  %v5584_v49 = vld [vmem:[%s10302_s1 + $0x148] sm:$0xff]  ;;  %v6460_v52 = vpack.c.bf16 %v5581_v46, %v5579_v45  ;;  %v350_v54 = vld [vmem:[%s10302_s1 + $0x80] sm:$0xff]  ;;  %s7781_s14 = scalar_lea.vmem %s10301_s0, %s6253_s23  ;;  %s7461_s25 = scalar_lea.vmem %s7460_s24, 32 }
  0x19   : > { %v5586_v50 = vld [vmem:[%s10302_s1 + $0x158] sm:$0xff]  ;;  %6433 = vmatpush1.bf16.msra.mxu0 %v6432_v35  ;;  %v6438_v53 = vpack.c.bf16 %v353_v48, %v351_v47  ;;  %v352_v55 = vld [vmem:[%s10302_s1 + $0x90] sm:$0xff]  ;;  %v5583_v56 = vld [vmem:[%s10302_s1 + $0x140] sm:$0xff] }
  0x1a   : > { %6457 = vmatpush1.bf16.msra.mxu1 %v6456_v39  ;;  %6435 = vmatprep.subr.bf16.mxu0 %v6434_v40  ;;  %v6462_v57 = vpack.c.bf16 %v5586_v50, %v5584_v49  ;;  %v5585_v58 = vld [vmem:[%s10302_s1 + $0x150] sm:$0xff]  ;;  %v355_v59 = vld [vmem:[%s10302_s1 + $0xa8] sm:$0xff]  ;;  %v357_v60 = vld [vmem:[%s10302_s1 + $0xb8] sm:$0xff]  ;;  %v6440_v63 = vpack.c.bf16 %v352_v55, %v350_v54 }
  0x1b   : > { %6459 = vmatprep.subr.bf16.mxu1 %v6458_v44  ;;  %v5588_v61 = vld [vmem:[%s10302_s1 + $0x168] sm:$0xff]  ;;  %v5590_v62 = vld [vmem:[%s10302_s1 + $0x178] sm:$0xff]  ;;  %v6464_v0 = vpack.c.bf16 %v5585_v58, %v5583_v56  ;;  %v6442_v1 = vpack.c.bf16 %v357_v60, %v355_v59  ;;  %v354_v2 = vld [vmem:[%s10302_s1 + $0xa0] sm:$0xff] }
  0x1c   : > { %v356_v3 = vld [vmem:[%s10302_s1 + $0xb0] sm:$0xff]  ;;  %v5587_v4 = vld [vmem:[%s10302_s1 + $0x160] sm:$0xff]  ;;  %v6466_v5 = vpack.c.bf16 %v5590_v62, %v5588_v61  ;;  %v5596_v8 = vld [vmem:[%s10302_s1 + $0x188] sm:$0xff] }
  0x1d   : > { %6437 = vmatpush1.bf16.msra.mxu0 %v6436_v51  ;;  %v5589_v6 = vld [vmem:[%s10302_s1 + $0x170] sm:$0xff]  ;;  %v5598_v9 = vld [vmem:[%s10302_s1 + $0x198] sm:$0xff]  ;;  %v6444_v10 = vpack.c.bf16 %v356_v3, %v354_v2  ;;  %v5595_v13 = vld [vmem:[%s10302_s1 + $0x180] sm:$0xff] }
  0x1e   : > { %6461 = vmatpush1.bf16.msra.mxu1 %v6460_v52  ;;  %6439 = vmatprep.subr.bf16.mxu0 %v6438_v53  ;;  %v6468_v11 = vpack.c.bf16 %v5589_v6, %v5587_v4  ;;  %v6470_v12 = vpack.c.bf16 %v5598_v9, %v5596_v8  ;;  %v5597_v14 = vld [vmem:[%s10302_s1 + $0x190] sm:$0xff]  ;;  %v5600_v15 = vld [vmem:[%s10302_s1 + $0x1a8] sm:$0xff]  ;;  %v5602_v16 = vld [vmem:[%s10302_s1 + $0x1b8] sm:$0xff] }
  0x1f   : > { %6463 = vmatprep.subr.bf16.mxu1 %v6462_v57  ;;  %v7796_v17 = vld [vmem:[%s7781_s14] sm:$0xff]  ;;  %v6472_v18 = vpack.c.bf16 %v5597_v14, %v5595_v13  ;;  %v5601_v20 = vld [vmem:[%s10302_s1 + $0x1b0] sm:$0xff]  ;;  %v6474_v21 = vpack.c.bf16 %v5602_v16, %v5600_v15  ;;  %v5604_v22 = vld [vmem:[%s10302_s1 + $0x1c8] sm:$0xff] }
  0x20   : > { %v5599_v19 = vld [vmem:[%s10302_s1 + $0x1a0] sm:$0xff]  ;;  %v5606_v23 = vld [vmem:[%s10302_s1 + $0x1d8] sm:$0xff]  ;;  %v7815_v24 = vld [vmem:[%s7781_s14 + $0x8] sm:$0xff] }
  0x21   : > { %6441 = vmatpush1.bf16.msra.mxu0 %v6440_v63  ;;  %v6476_v25 = vpack.c.bf16 %v5601_v20, %v5599_v19  ;;  %v6478_v26 = vpack.c.bf16 %v5606_v23, %v5604_v22  ;;  %v5603_v27 = vld [vmem:[%s10302_s1 + $0x1c0] sm:$0xff]  ;;  %v5605_v28 = vld [vmem:[%s10302_s1 + $0x1d0] sm:$0xff]  ;;  %v5608_v29 = vld [vmem:[%s10302_s1 + $0x1e8] sm:$0xff] }
  0x22   : > { %6465 = vmatpush1.bf16.msra.mxu1 %v6464_v0  ;;  %6443 = vmatprep.subr.bf16.mxu0 %v6442_v1  ;;  %v5610_v30 = vld [vmem:[%s10302_s1 + $0x1f8] sm:$0xff]  ;;  %v6480_v31 = vpack.c.bf16 %v5605_v28, %v5603_v27  ;;  %v7837_v32 = vld [vmem:[%s7781_s14 + $0x10] sm:$0xff]  ;;  %v5607_v34 = vld [vmem:[%s10302_s1 + $0x1e0] sm:$0xff] }
  0x23   : > { %6467 = vmatprep.subr.bf16.mxu1 %v6466_v5  ;;  %v6482_v33 = vpack.c.bf16 %v5610_v30, %v5608_v29  ;;  %v5609_v35 = vld [vmem:[%s10302_s1 + $0x1f0] sm:$0xff]  ;;  %v5612_v36 = vld [vmem:[%s10302_s1 + $0x208] sm:$0xff]  ;;  %v5614_v37 = vld [vmem:[%s10302_s1 + $0x218] sm:$0xff] }
  0x24   : > { %v6484_v38 = vpack.c.bf16 %v5609_v35, %v5607_v34  ;;  %v7858_v39 = vld [vmem:[%s7781_s14 + $0x18] sm:$0xff]  ;;  %v6486_v40 = vpack.c.bf16 %v5614_v37, %v5612_v36  ;;  %v5611_v41 = vld [vmem:[%s10302_s1 + $0x200] sm:$0xff]  ;;  %v5613_v42 = vld [vmem:[%s10302_s1 + $0x210] sm:$0xff]  ;;  %s323_s14 = sand.u32 1, %s7509_s10  }
  0x25   : > { %6445 = vmatpush1.bf16.msra.mxu0 %v6444_v10  ;;  %v5616_v43 = vld [vmem:[%s10302_s1 + $0x228] sm:$0xff]  ;;  %v5618_v44 = vld [vmem:[%s10302_s1 + $0x238] sm:$0xff]  ;;  %v6488_v45 = vpack.c.bf16 %v5613_v42, %v5611_v41  ;;  %v5615_v47 = vld [vmem:[%s10302_s1 + $0x220] sm:$0xff]  ;;  %s324_s27 = scalar_lea.vmem [#allocation2], %s323_s14  ;;  %s5488_s17 = scalar_lea.sflag [#allocation3], %s323_s14 }
  0x26   : > { %6469 = vmatpush1.bf16.msra.mxu1 %v6468_v11  ;;  %6471 = vmatprep.subr.bf16.mxu0 %v6470_v12  ;;  %v6490_v46 = vpack.c.bf16 %v5618_v44, %v5616_v43  ;;  %v5617_v48 = vld [vmem:[%s10302_s1 + $0x230] sm:$0xff]  ;;  %v5634_v49 = vld [vmem:[%s10302_s1 + $0x248] sm:$0xff]  ;;  %v5636_v50 = vld [vmem:[%s10302_s1 + $0x258] sm:$0xff]  ;;  %s5500_s23 = sshll.u32 %s324_s27, 4  ;;  %s10256_s23 = int_to_ptr.vmem [resolvable:$true] %s5500_s23 }
  0x27   : > { %v6492_v51 = vpack.c.bf16 %v5617_v48, %v5615_v47  ;;  %v6526_v52 = vpack.c.bf16 %v5636_v50, %v5634_v49  ;;  %v5633_v53 = vld [vmem:[%s10302_s1 + $0x240] sm:$0xff]  ;;  %v5635_v54 = vld [vmem:[%s10302_s1 + $0x250] sm:$0xff]  ;;  %v5638_v55 = vld [vmem:[%s10302_s1 + $0x268] sm:$0xff]  ;;  %s7455_s22 = scalar_lea.vmem %s10256_s23, 16  ;;  %p7462_p0 = scmp.lt.s32.totalorder %s10256_s23, %s7460_s24 }
  0x28   : > { %5561 = vmatmul.mubr.msk.f32.vlgmr.msra.gmra.mrb[0].mxu0 %vm358_vm0, %v7796_v17  ;;  %v5640_v56 = vld [vmem:[%s10302_s1 + $0x278] sm:$0xff]  ;;  %v6528_v57 = vpack.c.bf16 %v5635_v54, %v5633_v53  ;;  %v5637_v59 = vld [vmem:[%s10302_s1 + $0x260] sm:$0xff]  ;;  %v5639_v60 = vld [vmem:[%s10302_s1 + $0x270] sm:$0xff]  ;;  %p7456_p11 = scmp.ne.s32.totalorder %s10256_s23, %s7455_s22  ;;  %p7463_p1 = scmp.lt.s32.totalorder %s7461_s25, %s7455_s22 }
  0x29   : > { %5591 = vmatmul.mubr.msk.f32.vlgmr.msra.gmra.mrb[0].mxu1 %vm358_vm0, %v7796_v17  ;;  %6473 = vmatpush1.bf16.msra.mxu0 %v6472_v18  ;;  %v6530_v58 = vpack.c.bf16 %v5640_v56, %v5638_v55  ;;  %v5642_v61 = vld [vmem:[%s10302_s1 + $0x288] sm:$0xff]  ;;  %v5644_v62 = vld [vmem:[%s10302_s1 + $0x298] sm:$0xff]  ;;  %v6532_v63 = vpack.c.bf16 %v5639_v60, %v5637_v59  ;;  %v5641_v1 = vld [vmem:[%s10302_s1 + $0x280] sm:$0xff] }
  0x2a   : > { %441 = vmatprep.mubr.f32.mxu0 %v7519_v7  ;;  %560 = vmatprep.mubr.f32.mxu1 %v7519_v7  ;;  %v6534_v0 = vpack.c.bf16 %v5644_v62, %v5642_v61  ;;  %v5643_v2 = vld [vmem:[%s10302_s1 + $0x290] sm:$0xff]  ;;  %v5646_v3 = vld [vmem:[%s10302_s1 + $0x2a8] sm:$0xff]  ;;  %v5648_v4 = vld [vmem:[%s10302_s1 + $0x2b8] sm:$0xff]  ;;  %p7457_p12 = pnand %p7456_p11, %p7612_p5  ;;  %p7464_p2 = por %p7463_p1, %p7462_p0 }
  0x2b   : > { %6475 = vmatprep.subr.bf16.mxu0 %v6474_v21  ;;  %v6536_v5 = vpack.c.bf16 %v5643_v2, %v5641_v1  ;;  %v6538_v6 = vpack.c.bf16 %v5648_v4, %v5646_v3  ;;  %v5645_v8 = vld [vmem:[%s10302_s1 + $0x2a0] sm:$0xff]  ;;  %v5647_v9 = vld [vmem:[%s10302_s1 + $0x2b0] sm:$0xff]  ;;  %v5650_v10 = vld [vmem:[%s10302_s1 + $0x2c8] sm:$0xff] }
  0x2c   : > { %5562 = vmatmul.mubr.msk.f32.gmra.mrb[2].mxu0 %vm358_vm0, %v7815_v24  ;;  %v5652_v11 = vld [vmem:[%s10302_s1 + $0x2d8] sm:$0xff]  ;;  %v6540_v12 = vpack.c.bf16 %v5647_v9, %v5645_v8  ;;  %v5649_v14 = vld [vmem:[%s10302_s1 + $0x2c0] sm:$0xff]  ;;  %v5651_v15 = vld [vmem:[%s10302_s1 + $0x2d0] sm:$0xff]  ;;  %p7458_p13 = pneg %p7457_p12 }
  0x2d   : > { %5592 = vmatmul.mubr.msk.f32.gmra.mrb[2].mxu1 %vm358_vm0, %v7815_v24  ;;  %6477 = vmatpush1.bf16.msra.mxu0 %v6476_v25  ;;  %v6542_v13 = vpack.c.bf16 %v5652_v11, %v5650_v10  ;;  %v5654_v16 = vld [vmem:[%s10302_s1 + $0x2e8] sm:$0xff]  ;;  %v5656_v18 = vld [vmem:[%s10302_s1 + $0x2f8] sm:$0xff]  ;;  %v6544_v19 = vpack.c.bf16 %v5651_v15, %v5649_v14  ;;  %v5653_v21 = vld [vmem:[%s10302_s1 + $0x2e0] sm:$0xff] }
  0x2e   : > { %566 = vmatprep.mubr.f32.mxu1 %v7519_v7  ;;  %6479 = vmatprep.subr.bf16.mxu0 %v6478_v26  ;;  %v6546_v20 = vpack.c.bf16 %v5656_v18, %v5654_v16  ;;  %v5655_v22 = vld [vmem:[%s10302_s1 + $0x2f0] sm:$0xff]  ;;  %v5704_v44 = vld [vmem:[%s10302_s1 + $0x3c8] sm:$0xff]  ;;  %v5703_v54 = vld [vmem:[%s10302_s1 + $0x3c0] sm:$0xff]  ;;  %p7465_p3 = pnand %p7464_p2, %p7458_p13 }
  0x2f   : > { %447 = vmatprep.mubr.f32.mxu0 %v7519_v7  ;;  %v6548_v23 = vpack.c.bf16 %v5655_v22, %v5653_v21  ;;  %v5705_v55 = vld [vmem:[%s10302_s1 + $0x3d0] sm:$0xff]  ;;  %v5708_v56 = vld [vmem:[%s10302_s1 + $0x3e8] sm:$0xff]  ;;  %v5707_v61 = vld [vmem:[%s10302_s1 + $0x3e0] sm:$0xff] }
  0x30   : > { %5563 = vmatmul.mubr.msk.f32.gmra.mrb[4].mxu0 %vm358_vm0, %v7837_v32  ;;  %v6624_v59 = vpack.c.bf16 %v5705_v55, %v5703_v54  ;;  %v5709_v62 = vld [vmem:[%s10302_s1 + $0x3f0] sm:$0xff]  ;;  %v8042_v2 = vld [vmem:[%s10303_s2 + $0x18] sm:$0x7f]  ;;  %v5711_v4 = vld [vmem:[%s10302_s1 + $0x400] sm:$0xff] }
  0x31   : > { %5593 = vmatmul.mubr.msk.f32.gmra.mrb[4].mxu1 %vm358_vm0, %v7837_v32  ;;  %6481 = vmatpush1.bf16.msra.mxu0 %v6480_v31  ;;  %v6628_v1 = vpack.c.bf16 %v5709_v62, %v5707_v61  ;;  %v5716_v8 = vld [vmem:[%s10302_s1 + $0x428] sm:$0xff]  ;;  %v5718_v9 = vld [vmem:[%s10302_s1 + $0x438] sm:$0xff]  ;;  %v5717_v14 = vld [vmem:[%s10302_s1 + $0x430] sm:$0xff] }
  0x32   : > { %572 = vmatprep.mubr.f32.mxu1 %v7519_v7  ;;  %6483 = vmatprep.subr.bf16.mxu0 %v6482_v33  ;;  %v5720_v16 = vld [vmem:[%s10302_s1 + $0x448] sm:$0xff]  ;;  %v5722_v18 = vld [vmem:[%s10302_s1 + $0x458] sm:$0xff]  ;;  %vm8859_vm5 = vmpackc.low %vm2449_vm3, %vm7520_vm4 }
  0x33   : > { %453 = vmatprep.mubr.f32.mxu0 %v7519_v7  ;;  %v461_v55 = vld [vmem:[%s10303_s2 + $0x8] sm:$0x7f] }
  0x34   : > { %5564 = vmatmul.mubr.msk.f32.gmra.mrb[6].mxu0 %vm358_vm0, %v7858_v39 }
  0x35   : > { %5594 = vmatmul.mubr.msk.f32.gmra.mrb[6].mxu1 %vm358_vm0, %v7858_v39  ;;  %6485 = vmatpush1.bf16.msra.mxu0 %v6484_v38 }
  0x36   : > { %6487 = vmatprep.subr.bf16.mxu0 %v6486_v40  ;;  %668 = vmatprep.mubr.f32.mxu0 %v7519_v7 }
  0x37   : > { %764 = vmatprep.mubr.f32.mxu1 %v7519_v7 }
  0x39   : > { %6489 = vmatpush1.bf16.msra.mxu0 %v6488_v45  ;;  %v5706_v45 = vld [vmem:[%s10302_s1 + $0x3d8] sm:$0xff] }
  0x3a   : > { %6491 = vmatprep.subr.bf16.mxu0 %v6490_v46  ;;  %v6622_v53 = vpack.c.bf16 %v5706_v45, %v5704_v44 }
  0x3d   : > { %6493 = vmatpush1.bf16.msra.mxu0 %v6492_v51 }
  0x3e   : > { %6527 = vmatprep.subr.bf16.mxu0 %v6526_v52 }
  0x40   : > { %5619 = vmatmul.mubr.msk.f32.vlgmr.msra.gmra.mrb[8].mxu0 %vm358_vm0, %v7796_v17 }
  0x41   : > { %674 = vmatprep.mubr.f32.mxu0 %v7519_v7  ;;  %6529 = vmatpush1.bf16.msra.mxu0 %v6528_v57  ;;  %v5710_v57 = vld [vmem:[%s10302_s1 + $0x3f8] sm:$0xff] }
  0x42   : > { %6531 = vmatprep.subr.bf16.mxu0 %v6530_v58  ;;  %v8022_v58 = vld [vmem:[%s10303_s2 + $0x10] sm:$0xff]  ;;  %v6626_v60 = vpack.c.bf16 %v5710_v57, %v5708_v56 }
  0x44   : > { %5620 = vmatmul.mubr.msk.f32.gmra.mrb[10].mxu0 %vm358_vm0, %v7815_v24 }
  0x45   : > { %680 = vmatprep.mubr.f32.mxu0 %v7519_v7  ;;  %6533 = vmatpush1.bf16.msra.mxu0 %v6532_v63  ;;  %v5712_v63 = vld [vmem:[%s10302_s1 + $0x408] sm:$0xff] }
  0x46   : > { %6535 = vmatprep.subr.bf16.mxu0 %v6534_v0  ;;  %v5714_v0 = vld [vmem:[%s10302_s1 + $0x418] sm:$0xff] }
  0x47   : > { %v6630_v3 = vpack.c.bf16 %v5714_v0, %v5712_v63  ;;  %v8134_v0 = vld [vmem:[%s10303_s2 + $0x28] sm:$0x7f] }
  0x48   : > { %5621 = vmatmul.mubr.msk.f32.gmra.mrb[12].mxu0 %vm358_vm0, %v7837_v32 }
  0x49   : > { %686 = vmatprep.mubr.f32.mxu0 %v7519_v7  ;;  %6537 = vmatpush1.bf16.msra.mxu0 %v6536_v5  ;;  %v5713_v5 = vld [vmem:[%s10302_s1 + $0x410] sm:$0xff] }
  0x4a   : > { %6539 = vmatprep.subr.bf16.mxu0 %v6538_v6  ;;  %v6632_v11 = vpack.c.bf16 %v5713_v5, %v5711_v4  ;;  %v5675_v4 = vld [vmem:[%s10302_s1 + $0x330] sm:$0xff]  ;;  %v5678_v5 = vld [vmem:[%s10302_s1 + $0x348] sm:$0xff] }
  0x4c   : > { %5622 = vmatmul.mubr.msk.f32.gmra.mrb[14].mxu0 %vm358_vm0, %v7858_v39 }
  0x4d   : > { %6541 = vmatpush1.bf16.msra.mxu0 %v6540_v12  ;;  %1112 = vmatprep.mubr.f32.mxu0 %v7519_v7  ;;  %v6634_v12 = vpack.c.bf16 %v5718_v9, %v5716_v8 }
  0x4e   : > { %6543 = vmatprep.subr.bf16.mxu0 %v6542_v13  ;;  %v5715_v13 = vld [vmem:[%s10302_s1 + $0x420] sm:$0xff] }
  0x4f   : > { %v6636_v22 = vpack.c.bf16 %v5717_v14, %v5715_v13  ;;  %v5684_v13 = vld [vmem:[%s10302_s1 + $0x378] sm:$0xff] }
  0x51   : > { %6545 = vmatpush1.bf16.msra.mxu0 %v6544_v19 }
  0x52   : > { %6547 = vmatprep.subr.bf16.mxu0 %v6546_v20 }
  0x55   : > { %6549 = vmatpush1.bf16.msra.mxu0 %v6548_v23  ;;  %v6638_v23 = vpack.c.bf16 %v5722_v18, %v5720_v16  ;;  %v5681_v16 = vld [vmem:[%s10302_s1 + $0x360] sm:$0xff]  ;;  %v5683_v18 = vld [vmem:[%s10302_s1 + $0x370] sm:$0xff] }
  0x58   : > { %5657 = vmatmul.mubr.msk.f32.vlgmr.msra.gmra.mrb[16].mxu0 %vm358_vm0, %v7796_v17 }
  0x59   : > { %1118 = vmatprep.mubr.f32.mxu0 %v7519_v7 }
  0x5c   : > { %5658 = vmatmul.mubr.msk.f32.gmra.mrb[18].mxu0 %vm358_vm0, %v7815_v24 }
  0x5d   : > { %1124 = vmatprep.mubr.f32.mxu0 %v7519_v7 }
  0x60   : > { %5659 = vmatmul.mubr.msk.f32.gmra.mrb[20].mxu0 %vm358_vm0, %v7837_v32 }
  0x61   : > { %1130 = vmatprep.mubr.f32.mxu0 %v7519_v7 }
  0x64   : > { %5660 = vmatmul.mubr.msk.f32.gmra.mrb[22].mxu0 %vm358_vm0, %v7858_v39 }
  0x65   : > { %1432 = vmatprep.mubr.f32.mxu0 %v7519_v7 }
  0xfb   : > { %v437_v25 = vpop.f32.mrb[0].mxu0 }
  0xfc   : > { %v439_v26 = vpop.f32.mrb[1].mxu0  ;;  %v556_v27 = vpop.f32.mrb[0].mxu1 }
  0xfd   : > { %v558_v28 = vpop.f32.mrb[1].mxu1 }
  0xff   : > { %v443_v29 = vpop.f32.mrb[2].mxu0 }
 0x100   : > { %v7981_v30 = vpack.c.bf16 %v443_v29, %v437_v25  ;;  %v445_v31 = vpop.f32.mrb[3].mxu0  ;;  %v562_v33 = vpop.f32.mrb[2].mxu1  ;;  %v5719_v25 = vld [vmem:[%s10302_s1 + $0x440] sm:$0xff]  ;;  %v5726_v29 = vld [vmem:[%s10302_s1 + $0x478] sm:$0xff] }
 0x101   : > { %v7983_v34 = vpack.c.bf16 %v445_v31, %v439_v26  ;;  %v7985_v35 = vpack.c.bf16 %v562_v33, %v556_v27  ;;  %v564_v36 = vpop.f32.mrb[3].mxu1  ;;  %v5721_v26 = vld [vmem:[%s10302_s1 + $0x450] sm:$0xff] }
 0x102   : > { %v7987_v37 = vpack.c.bf16 %v564_v36, %v558_v28  ;;  %v5724_v28 = vld [vmem:[%s10302_s1 + $0x468] sm:$0xff]  ;;  %v6640_v33 = vpack.c.bf16 %v5721_v26, %v5719_v25  ;;  %v5687_v25 = vld [vmem:[%s10302_s1 + $0x390] sm:$0xff] }
 0x103   : > { %v449_v38 = vpop.f32.mrb[4].mxu0  ;;  %v6642_v36 = vpack.c.bf16 %v5726_v29, %v5724_v28  ;;  %v5690_v26 = vld [vmem:[%s10302_s1 + $0x3a8] sm:$0xff] }
 0x104   : > { %v568_v40 = vpop.f32.mrb[4].mxu1  ;;  %6575 = vmatprep.subr.bf16.mxu0 %v7987_v37  ;;  %v451_v41 = vpop.f32.mrb[5].mxu0 }
 0x105   : > { %v570_v42 = vpop.f32.mrb[5].mxu1  ;;  %6577 = vmatpush1.bf16.msra.mxu0 %v7985_v35 }
 0x107   : > { %v455_v43 = vpop.f32.mrb[6].mxu0 }
 0x108   : > { %v574_v46 = vpop.f32.mrb[6].mxu1  ;;  %v7997_v47 = vpack.c.bf16 %v455_v43, %v449_v38  ;;  %v457_v48 = vpop.f32.mrb[7].mxu0  ;;  %v5723_v38 = vld [vmem:[%s10302_s1 + $0x460] sm:$0xff] }
 0x109   : > { %v7999_v49 = vpack.c.bf16 %v574_v46, %v568_v40  ;;  %v576_v50 = vpop.f32.mrb[7].mxu1  ;;  %v8001_v51 = vpack.c.bf16 %v457_v48, %v451_v41  ;;  %v5725_v40 = vld [vmem:[%s10302_s1 + $0x470] sm:$0xff]  ;;  %v460_v48 = vld [vmem:[%s10303_s2] sm:$0xff] }
 0x10a   : > { %v8003_v52 = vpack.c.bf16 %v576_v50, %v570_v42  ;;  %v6644_v45 = vpack.c.bf16 %v5725_v40, %v5723_v38 }
 0x10c   : > { %6579 = vmatprep.subr.bf16.mxu0 %v8003_v52 }
 0x10d   : > { %6581 = vmatpush1.bf16.msra.mxu0 %v7999_v49 }
 0x10e   : > { %6623 = vmatprep.subr.bf16.mxu0 %v6622_v53 }
 0x110   : > { %5667 = vmatmul.mubr.msk.f32.vlgmr.msra.gmra.mrb[24].mxu0 %vm693_vm1, %v8022_v58 }
 0x111   : > { %6625 = vmatpush1.bf16.msra.mxu0 %v6624_v59  ;;  %1438 = vmatprep.mubr.f32.mxu0 %v7519_v7 }
 0x112   : > { %6627 = vmatprep.subr.bf16.mxu0 %v6626_v60  ;;  %v8122_v60 = vld [vmem:[%s10303_s2 + $0x20] sm:$0xff] }
 0x113   : > { %v670_v6 = vpop.f32.mrb[8].mxu0 }
 0x114   : > { %v672_v10 = vpop.f32.mrb[9].mxu0  ;;  %5668 = vmatmul.mubr.msk.f32.gmra.mrb[26].mxu0 %vm693_vm1, %v8042_v2 }
 0x115   : > { %6629 = vmatpush1.bf16.msra.mxu0 %v6628_v1  ;;  %1819 = vmatprep.mubr.f32.mxu0 %v7519_v7 }
 0x116   : > { %6631 = vmatprep.subr.bf16.mxu0 %v6630_v3  ;;  %v5673_v3 = vld [vmem:[%s10302_s1 + $0x320] sm:$0xff] }
 0x117   : > { %v676_v15 = vpop.f32.mrb[10].mxu0  ;;  %v6588_v8 = vpack.c.bf16 %v5675_v4, %v5673_v3  ;;  %v2024_v3 = vld [vmem:[%s10304_s3 + $0x10] sm:$0xff]  ;;  %v5741_v4 = vld [vmem:[%s10304_s3 + $0x1f8] sm:$0xff] }
 0x118   : > { %v6496_v19 = vpack.c.bf16 %v676_v15, %v670_v6  ;;  %v678_v20 = vpop.f32.mrb[11].mxu0  ;;  %v5680_v6 = vld [vmem:[%s10302_s1 + $0x358] sm:$0xff] }
 0x119   : > { %v6494_v21 = vpack.c.bf16 %v678_v20, %v672_v10  ;;  %6633 = vmatpush1.bf16.msra.mxu0 %v6632_v11  ;;  %v6590_v9 = vpack.c.bf16 %v5680_v6, %v5678_v5  ;;  %v5677_v10 = vld [vmem:[%s10302_s1 + $0x340] sm:$0xff]  ;;  %v5679_v11 = vld [vmem:[%s10302_s1 + $0x350] sm:$0xff]  ;;  %v5688_v20 = vld [vmem:[%s10302_s1 + $0x398] sm:$0xff] }
 0x11a   : > { %6635 = vmatprep.subr.bf16.mxu0 %v6634_v12  ;;  %v5682_v12 = vld [vmem:[%s10302_s1 + $0x368] sm:$0xff]  ;;  %v6592_v14 = vpack.c.bf16 %v5679_v11, %v5677_v10 }
 0x11b   : > { %v682_v27 = vpop.f32.mrb[12].mxu0  ;;  %6495 = vmatprep.subr.bf16.mxu1 %v6494_v21  ;;  %v6594_v15 = vpack.c.bf16 %v5684_v13, %v5682_v12  ;;  %v2027_v10 = vld [vmem:[%s10304_s3 + $0x28] sm:$0xff]  ;;  %v2026_v12 = vld [vmem:[%s10304_s3 + $0x20] sm:$0xff]  ;;  %v2028_v13 = vld [vmem:[%s10304_s3 + $0x30] sm:$0xff] }
 0x11c   : > { %v684_v31 = vpop.f32.mrb[13].mxu0  ;;  %6497 = vmatpush1.bf16.msra.mxu1 %v6496_v19 }
 0x11d   : > { %6637 = vmatpush1.bf16.msra.mxu0 %v6636_v22 }
 0x11e   : > { %6639 = vmatprep.subr.bf16.mxu0 %v6638_v23  ;;  %v5685_v23 = vld [vmem:[%s10302_s1 + $0x380] sm:$0xff] }
 0x11f   : > { %v688_v41 = vpop.f32.mrb[14].mxu0  ;;  %v6600_v28 = vpack.c.bf16 %v5687_v25, %v5685_v23  ;;  %v2033_v23 = vld [vmem:[%s10304_s3 + $0x58] sm:$0xff] }
 0x120   : > { %v6500_v42 = vpack.c.bf16 %v688_v41, %v682_v27  ;;  %v690_v43 = vpop.f32.mrb[15].mxu0  ;;  %v5692_v27 = vld [vmem:[%s10302_s1 + $0x3b8] sm:$0xff] }
 0x121   : > { %v6498_v44 = vpack.c.bf16 %v690_v43, %v684_v31  ;;  %6641 = vmatpush1.bf16.msra.mxu0 %v6640_v33  ;;  %v6602_v29 = vpack.c.bf16 %v5692_v27, %v5690_v26  ;;  %v5689_v31 = vld [vmem:[%s10302_s1 + $0x3a0] sm:$0xff]  ;;  %v5691_v33 = vld [vmem:[%s10302_s1 + $0x3b0] sm:$0xff] }
 0x122   : > { %6643 = vmatprep.subr.bf16.mxu0 %v6642_v36  ;;  %v6604_v36 = vpack.c.bf16 %v5691_v33, %v5689_v31  ;;  %v2030_v27 = vld [vmem:[%s10304_s3 + $0x40] sm:$0xff]  ;;  %v5749_v31 = vld [vmem:[%s10304_s3 + $0x238] sm:$0xff] }
 0x123   : > { %6499 = vmatprep.subr.bf16.mxu1 %v6498_v44  ;;  %v5746_v33 = vld [vmem:[%s10304_s3 + $0x220] sm:$0xff] }
 0x124   : > { %6501 = vmatpush1.bf16.msra.mxu1 %v6500_v42 }
 0x125   : > { %6645 = vmatpush1.bf16.msra.mxu0 %v6644_v45  ;;  %6503 = vmatprep.subr.bf16.mxu1 %v7983_v34 }
 0x127   : > { %5623 = vmatmul.mubr.msk.f32.vlgmr.msra.gmra.mrb[8].mxu1 %vm693_vm1, %v8022_v58 }
 0x128   : > { %5727 = vmatmul.mubr.msk.f32.vlgmr.msra.gmra.mrb[28].mxu0 %vm358_vm0, %v7796_v17  ;;  %6505 = vmatpush1.bf16.msra.mxu1 %v7981_v30 }
 0x129   : > { %6507 = vmatprep.subr.bf16.mxu1 %v8001_v51  ;;  %770 = vmatprep.mubr.f32.mxu1 %v7519_v7 }
 0x12a   : > { %1825 = vmatprep.mubr.f32.mxu0 %v7519_v7 }
 0x12b   : > { %5624 = vmatmul.mubr.msk.f32.gmra.mrb[10].mxu1 %vm693_vm1, %v8042_v2  ;;  %v1114_v46 = vpop.f32.mrb[16].mxu0 }
 0x12c   : > { %5728 = vmatmul.mubr.msk.f32.gmra.mrb[30].mxu0 %vm358_vm0, %v7815_v24  ;;  %6509 = vmatpush1.bf16.msra.mxu1 %v7997_v47  ;;  %v1116_v50 = vpop.f32.mrb[17].mxu0 }
 0x12d   : > { %6511 = vmatprep.subr.bf16.mxu1 %v6494_v21  ;;  %847 = vmatprep.mubr.f32.mxu1 %v7519_v7  ;;  %v6596_v21 = vpack.c.bf16 %v5683_v18, %v5681_v16  ;;  %v5743_v16 = vld [vmem:[%s10304_s3 + $0x208] sm:$0xff]  ;;  %v5745_v18 = vld [vmem:[%s10304_s3 + $0x218] sm:$0xff] }
 0x12e   : > { %1831 = vmatprep.mubr.f32.mxu0 %v7519_v7 }
 0x12f   : > { %5625 = vmatmul.mubr.msk.f32.vlgmr.msra.gmra.mrb[8].mxu1 %vm693_vm1, %v460_v48  ;;  %v1120_v53 = vpop.f32.mrb[18].mxu0 }
 0x130   : > { %5729 = vmatmul.mubr.msk.f32.gmra.mrb[32].mxu0 %vm358_vm0, %v7837_v32  ;;  %6513 = vmatpush1.bf16.msra.mxu1 %v6496_v19  ;;  %v6552_v54 = vpack.c.bf16 %v1120_v53, %v1114_v46  ;;  %v1122_v56 = vpop.f32.mrb[19].mxu0  ;;  %v5686_v19 = vld [vmem:[%s10302_s1 + $0x388] sm:$0xff] }
 0x131   : > { %6515 = vmatprep.subr.bf16.mxu1 %v6498_v44  ;;  %853 = vmatprep.mubr.f32.mxu1 %v7519_v7  ;;  %v6550_v57 = vpack.c.bf16 %v1122_v56, %v1116_v50  ;;  %v6598_v22 = vpack.c.bf16 %v5688_v20, %v5686_v19  ;;  %v5700_v50 = vld [vmem:[%s10303_s2 + $0x38] sm:$0x7f]  ;;  %v5742_v19 = vld [vmem:[%s10304_s3 + $0x200] sm:$0xff]  ;;  %v6726_v20 = vpack.c.bf16 %v5745_v18, %v5743_v16  ;;  %v2048_v18 = vld [vmem:[%s10304_s3 + $0xd0] sm:$0xff] }
 0x132   : > { %1837 = vmatprep.mubr.f32.mxu0 %v7519_v7  ;;  %v2046_v16 = vld [vmem:[%s10304_s3 + $0xc0] sm:$0xff] }
 0x133   : > { %5626 = vmatmul.mubr.msk.f32.gmra.mrb[10].mxu1 %vm693_vm1, %v461_v55  ;;  %v1126_v59 = vpop.f32.mrb[20].mxu0 }
 0x134   : > { %5730 = vmatmul.mubr.msk.f32.gmra.mrb[34].mxu0 %vm358_vm0, %v7858_v39  ;;  %6517 = vmatpush1.bf16.msra.mxu1 %v6500_v42  ;;  %v1128_v61 = vpop.f32.mrb[21].mxu0 }
 0x135   : > { %6519 = vmatprep.subr.bf16.mxu1 %v7983_v34  ;;  %933 = vmatprep.mubr.f32.mxu1 %v7519_v7 }
 0x136   : > { %1989 = vmatprep.mubr.f32.mxu0 %v7519_v7 }
 0x137   : > { %5629 = vmatmul.mubr.msk.f32.vlgmr.msra.gmra.mrb[12].mxu1 %vm693_vm1, %v8122_v60  ;;  %v1132_v62 = vpop.f32.mrb[22].mxu0 }
 0x138   : > { %6521 = vmatpush1.bf16.msra.mxu1 %v7981_v30  ;;  %939 = vmatprep.mubr.f32.mxu1 %v7519_v7  ;;  %v6556_v63 = vpack.c.bf16 %v1132_v62, %v1126_v59  ;;  %v1134_v1 = vpop.f32.mrb[23].mxu0  ;;  %v5670_v30 = vld [vmem:[%s10302_s1 + $0x308] sm:$0xff] }
 0x139   : > { %6523 = vmatprep.subr.bf16.mxu1 %v8001_v51  ;;  %v6554_v34 = vpack.c.bf16 %v1134_v1, %v1128_v61  ;;  %v5674_v51 = vld [vmem:[%s10302_s1 + $0x328] sm:$0xff] }
 0x13b   : > { %5630 = vmatmul.mubr.msk.f32.gmra.mrb[14].mxu1 %vm693_vm1, %v8134_v0 }
 0x13c   : > { %6525 = vmatpush1.bf16.msra.mxu1 %v7997_v47  ;;  %1010 = vmatprep.mubr.f32.mxu1 %v7519_v7  ;;  %v5669_v47 = vld [vmem:[%s10302_s1 + $0x300] sm:$0xff] }
 0x13d   : > { %6551 = vmatprep.subr.bf16.mxu1 %v6550_v57 }
 0x13f   : > { %5631 = vmatmul.mubr.msk.f32.vlgmr.msra.gmra.mrb[12].mxu1 %vm693_vm1, %v8022_v58 }
 0x140   : > { %6553 = vmatpush1.bf16.msra.mxu1 %v6552_v54  ;;  %1016 = vmatprep.mubr.f32.mxu1 %v7519_v7 }
 0x141   : > { %6555 = vmatprep.subr.bf16.mxu1 %v6554_v34 }
 0x143   : > { %5632 = vmatmul.mubr.msk.f32.gmra.mrb[14].mxu1 %vm693_vm1, %v8042_v2 }
 0x144   : > { %6557 = vmatpush1.bf16.msra.mxu1 %v6556_v63  ;;  %1201 = vmatprep.mubr.f32.mxu1 %v7519_v7 }
 0x145   : > { %6559 = vmatprep.subr.bf16.mxu1 %v7987_v37 }
 0x147   : > { %5661 = vmatmul.mubr.msk.f32.vlgmr.msra.gmra.mrb[16].mxu1 %vm693_vm1, %v8022_v58 }
 0x148   : > { %6561 = vmatpush1.bf16.msra.mxu1 %v7985_v35  ;;  %1207 = vmatprep.mubr.f32.mxu1 %v7519_v7  ;;  %v5672_v35 = vld [vmem:[%s10302_s1 + $0x318] sm:$0xff] }
 0x149   : > { %6563 = vmatprep.subr.bf16.mxu1 %v8003_v52  ;;  %v6582_v37 = vpack.c.bf16 %v5672_v35, %v5670_v30  ;;  %v5676_v52 = vld [vmem:[%s10302_s1 + $0x338] sm:$0xff] }
 0x14b   : > { %5662 = vmatmul.mubr.msk.f32.gmra.mrb[18].mxu1 %vm693_vm1, %v8042_v2  ;;  %v6586_v2 = vpack.c.bf16 %v5676_v52, %v5674_v51  ;;  %v2023_v51 = vld [vmem:[%s10304_s3 + $0x8] sm:$0xff]  ;;  %v2025_v52 = vld [vmem:[%s10304_s3 + $0x18] sm:$0xff] }
 0x14c   : > { %6565 = vmatpush1.bf16.msra.mxu1 %v7999_v49  ;;  %1278 = vmatprep.mubr.f32.mxu1 %v7519_v7  ;;  %v5671_v49 = vld [vmem:[%s10302_s1 + $0x310] sm:$0xff] }
 0x14d   : > { %6567 = vmatprep.subr.bf16.mxu1 %v6550_v57  ;;  %v6584_v58 = vpack.c.bf16 %v5671_v49, %v5669_v47 }
 0x14f   : > { %5663 = vmatmul.mubr.msk.f32.vlgmr.msra.gmra.mrb[16].mxu1 %vm693_vm1, %v460_v48 }
 0x150   : > { %6569 = vmatpush1.bf16.msra.mxu1 %v6552_v54  ;;  %1284 = vmatprep.mubr.f32.mxu1 %v7519_v7 }
 0x151   : > { %6571 = vmatprep.subr.bf16.mxu1 %v6554_v34 }
 0x153   : > { %5664 = vmatmul.mubr.msk.f32.gmra.mrb[18].mxu1 %vm693_vm1, %v461_v55 }
 0x154   : > { %6573 = vmatpush1.bf16.msra.mxu1 %v6556_v63  ;;  %1355 = vmatprep.mubr.f32.mxu1 %v7519_v7 }
 0x155   : > { %6583 = vmatprep.subr.bf16.mxu1 %v6582_v37 }
 0x157   : > { %5665 = vmatmul.mubr.msk.f32.vlgmr.msra.gmra.mrb[20].mxu1 %vm693_vm1, %v8122_v60 }
 0x158   : > { %6585 = vmatpush1.bf16.msra.mxu1 %v6584_v58  ;;  %1361 = vmatprep.mubr.f32.mxu1 %v7519_v7  ;;  %v2022_v58 = vld [vmem:[%s10304_s3] sm:$0xff] }
 0x159   : > { %6587 = vmatprep.subr.bf16.mxu1 %v6586_v2  ;;  %v6662_v2 = vpack.c.bf16 %v2025_v52, %v2023_v51  ;;  %v6664_v5 = vpack.c.bf16 %v2024_v3, %v2022_v58  ;;  %v2045_v51 = vld [vmem:[%s10304_s3 + $0xb8] sm:$0xff]  ;;  %v5759_v52 = vld [vmem:[%s10304_s3 + $0x288] sm:$0xff] }
 0x15a   : > { %v5761_v58 = vld [vmem:[%s10304_s3 + $0x298] sm:$0xff] }
 0x15b   : > { %5666 = vmatmul.mubr.msk.f32.gmra.mrb[22].mxu1 %vm693_vm1, %v8134_v0 }
 0x15c   : > { %6589 = vmatpush1.bf16.msra.mxu1 %v6588_v8  ;;  %1534 = vmatprep.mubr.f32.mxu1 %v7519_v7  ;;  %v5738_v8 = vld [vmem:[%s10304_s3 + $0x1e0] sm:$0xff] }
 0x15d   : > { %6591 = vmatprep.subr.bf16.mxu1 %v6590_v9  ;;  %v5740_v9 = vld [vmem:[%s10304_s3 + $0x1f0] sm:$0xff] }
 0x15e   : > { %v6724_v11 = vpack.c.bf16 %v5740_v9, %v5738_v8  ;;  %v6742_v8 = vpack.c.bf16 %v5761_v58, %v5759_v52  ;;  %v5760_v9 = vld [vmem:[%s10304_s3 + $0x290] sm:$0xff]  ;;  %v2063_v58 = vld [vmem:[%s10304_s3 + $0x148] sm:$0xff] }
 0x160   : > { %6593 = vmatpush1.bf16.msra.mxu1 %v6592_v14 }
 0x161   : > { %6595 = vmatprep.subr.bf16.mxu1 %v6594_v15  ;;  %v6668_v15 = vpack.c.bf16 %v2028_v13, %v2026_v12  ;;  %v5765_v12 = vld [vmem:[%s10304_s3 + $0x2b8] sm:$0xff] }
 0x164   : > { %6597 = vmatpush1.bf16.msra.mxu1 %v6596_v21  ;;  %v5744_v21 = vld [vmem:[%s10304_s3 + $0x210] sm:$0xff] }
 0x165   : > { %6599 = vmatprep.subr.bf16.mxu1 %v6598_v22  ;;  %v2031_v22 = vld [vmem:[%s10304_s3 + $0x48] sm:$0xff]  ;;  %v6728_v25 = vpack.c.bf16 %v5744_v21, %v5742_v19  ;;  %v5762_v19 = vld [vmem:[%s10304_s3 + $0x2a0] sm:$0xff]  ;;  %v5764_v21 = vld [vmem:[%s10304_s3 + $0x2b0] sm:$0xff] }
 0x166   : > { %v6670_v26 = vpack.c.bf16 %v2033_v23, %v2031_v22  ;;  %v2051_v22 = vld [vmem:[%s10304_s3 + $0xe8] sm:$0xff]  ;;  %v2053_v23 = vld [vmem:[%s10304_s3 + $0xf8] sm:$0xff] }
 0x168   : > { %6601 = vmatpush1.bf16.msra.mxu1 %v6600_v28  ;;  %v2032_v28 = vld [vmem:[%s10304_s3 + $0x50] sm:$0xff] }
 0x169   : > { %6603 = vmatprep.subr.bf16.mxu1 %v6602_v29  ;;  %v5747_v29 = vld [vmem:[%s10304_s3 + $0x228] sm:$0xff] }
 0x16c   : > { %6605 = vmatpush1.bf16.msra.mxu1 %v6604_v36  ;;  %v5748_v36 = vld [vmem:[%s10304_s3 + $0x230] sm:$0xff] }
 0x16f   : > { %5693 = vmatmul.mubr.msk.f32.vlgmr.msra.gmra.mrb[24].mxu1 %vm358_vm0, %v7796_v17 }
 0x170   : > { %1540 = vmatprep.mubr.f32.mxu1 %v7519_v7 }
 0x173   : > { %5694 = vmatmul.mubr.msk.f32.gmra.mrb[26].mxu1 %vm358_vm0, %v7815_v24 }
 0x174   : > { %1546 = vmatprep.mubr.f32.mxu1 %v7519_v7 }
 0x177   : > { %5695 = vmatmul.mubr.msk.f32.gmra.mrb[28].mxu1 %vm358_vm0, %v7837_v32 }
 0x178   : > { %1552 = vmatprep.mubr.f32.mxu1 %v7519_v7 }
 0x17b   : > { %5696 = vmatmul.mubr.msk.f32.gmra.mrb[30].mxu1 %vm358_vm0, %v7858_v39  ;;  %v5699_v39 = vld [vmem:[%s10303_s2 + $0x30] sm:$0xff] }
 0x17c   : > { %1623 = vmatprep.mubr.f32.mxu1 %v7519_v7 }
 0x1fb   : > { %v1821_v38 = vpop.f32.mrb[28].mxu0 }
 0x1fc   : > { %v1823_v40 = vpop.f32.mrb[29].mxu0 }
 0x1ff   : > { %v1827_v17 = vpop.f32.mrb[30].mxu0 }
 0x200   : > { %v6648_v41 = vpack.c.bf16 %v1827_v17, %v1821_v38  ;;  %v1829_v42 = vpop.f32.mrb[31].mxu0  ;;  %v6672_v38 = vpack.c.bf16 %v2032_v28, %v2030_v27  ;;  %v2035_v17 = vld [vmem:[%s10304_s3 + $0x68] sm:$0xff]  ;;  %v6688_v27 = vpack.c.bf16 %v2048_v18, %v2046_v16  ;;  %v6748_v28 = vpack.c.bf16 %v5764_v21, %v5762_v19  ;;  %v2068_v16 = vld [vmem:[%s10304_s3 + $0x170] sm:$0xff]  ;;  %v5782_v21 = vld [vmem:[%s10304_s3 + $0x340] sm:$0xff] }
 0x201   : > { %v6646_v43 = vpack.c.bf16 %v1829_v42, %v1823_v40  ;;  %v6730_v40 = vpack.c.bf16 %v5749_v31, %v5747_v29  ;;  %v2034_v42 = vld [vmem:[%s10304_s3 + $0x60] sm:$0xff]  ;;  %v6690_v29 = vpack.c.bf16 %v2053_v23, %v2051_v22  ;;  %v5783_v18 = vld [vmem:[%s10304_s3 + $0x348] sm:$0xff]  ;;  %v5784_v22 = vld [vmem:[%s10304_s3 + $0x350] sm:$0xff] }
 0x202   : > { %v2050_v31 = vld [vmem:[%s10304_s3 + $0xe0] sm:$0xff] }
 0x203   : > { %v1833_v44 = vpop.f32.mrb[32].mxu0  ;;  %6655 = vmatprep.subr.bf16.mxu0 %v6646_v43 }
 0x204   : > { %v1835_v24 = vpop.f32.mrb[33].mxu0  ;;  %6657 = vmatpush1.bf16.msra.mxu0 %v6648_v41 }
 0x207   : > { %v1839_v45 = vpop.f32.mrb[34].mxu0 }
 0x208   : > { %v6652_v46 = vpack.c.bf16 %v1839_v45, %v1833_v44  ;;  %v1841_v32 = vpop.f32.mrb[35].mxu0  ;;  %v5751_v45 = vld [vmem:[%s10304_s3 + $0x248] sm:$0xff] }
 0x209   : > { %v6650_v48 = vpack.c.bf16 %v1841_v32, %v1835_v24  ;;  %v2036_v24 = vld [vmem:[%s10304_s3 + $0x70] sm:$0xff] }
 0x20b   : > { %6659 = vmatprep.subr.bf16.mxu0 %v6650_v48 }
 0x20c   : > { %6661 = vmatpush1.bf16.msra.mxu0 %v6652_v46 }
 0x20d   : > { %6663 = vmatprep.subr.bf16.mxu0 %v6662_v2 }
 0x20f   : > { %5733 = vmatmul.mubr.msk.f32.vlgmr.msra.gmra.mrb[24].mxu0 %vm693_vm1, %v5699_v39 }
 0x210   : > { %1995 = vmatprep.mubr.f32.mxu0 %v7519_v7  ;;  %6665 = vmatpush1.bf16.msra.mxu0 %v6664_v5  ;;  %v2044_v5 = vld [vmem:[%s10304_s3 + $0xb0] sm:$0xff] }
 0x213   : > { %5734 = vmatmul.mubr.msk.f32.gmra.mrb[26].mxu0 %vm693_vm1, %v5700_v50 }
 0x22a   : > { %v8260_v53 = vpop.f32.mrb[20].mxu1 }
 0x22b   : > { %v8262_v54 = vpop.f32.mrb[21].mxu1 }
 0x22e   : > { %v8264_v55 = vpop.f32.mrb[22].mxu1 }
 0x22f   : > { %v8266_v56 = vpop.f32.mrb[23].mxu1 }
 0x242   : > { %v1536_v57 = vpop.f32.mrb[24].mxu1 }
 0x243   : > { %v1538_v59 = vpop.f32.mrb[25].mxu1 }
 0x246   : > { %v1542_v61 = vpop.f32.mrb[26].mxu1 }
 0x247   : > { %v6608_v62 = vpack.c.bf16 %v1542_v61, %v1536_v57  ;;  %v1544_v63 = vpop.f32.mrb[27].mxu1  ;;  %v2041_v57 = vld [vmem:[%s10304_s3 + $0x98] sm:$0xff]  ;;  %v5755_v61 = vld [vmem:[%s10304_s3 + $0x268] sm:$0xff] }
 0x248   : > { %v6606_v1 = vpack.c.bf16 %v1544_v63, %v1538_v59  ;;  %v6676_v59 = vpack.c.bf16 %v2036_v24, %v2034_v42  ;;  %v5771_v42 = vld [vmem:[%s10304_s3 + $0x2e8] sm:$0xff] }
 0x24a   : > { %v1548_v34 = vpop.f32.mrb[28].mxu1  ;;  %6607 = vmatprep.subr.bf16.mxu1 %v6606_v1 }
 0x24b   : > { %v1550_v30 = vpop.f32.mrb[29].mxu1  ;;  %6609 = vmatpush1.bf16.msra.mxu1 %v6608_v62 }
 0x24e   : > { %v1554_v35 = vpop.f32.mrb[30].mxu1 }
 0x24f   : > { %v6612_v37 = vpack.c.bf16 %v1554_v35, %v1548_v34  ;;  %v1556_v47 = vpop.f32.mrb[31].mxu1  ;;  %v2038_v34 = vld [vmem:[%s10304_s3 + $0x80] sm:$0xff] }
 0x250   : > { %v6610_v49 = vpack.c.bf16 %v1556_v47, %v1550_v30  ;;  %v2040_v30 = vld [vmem:[%s10304_s3 + $0x90] sm:$0xff]  ;;  %v5754_v35 = vld [vmem:[%s10304_s3 + $0x260] sm:$0xff] }
 0x251   : > { %v5756_v47 = vld [vmem:[%s10304_s3 + $0x270] sm:$0xff]  ;;  %v6680_v2 = vpack.c.bf16 %v2040_v30, %v2038_v34  ;;  %v5775_v30 = vld [vmem:[%s10304_s3 + $0x308] sm:$0xff] }
 0x252   : > { %6611 = vmatprep.subr.bf16.mxu1 %v6610_v49  ;;  %v6740_v3 = vpack.c.bf16 %v5756_v47, %v5754_v35  ;;  %v2060_v34 = vld [vmem:[%s10304_s3 + $0x130] sm:$0xff]  ;;  %v5774_v47 = vld [vmem:[%s10304_s3 + $0x300] sm:$0xff] }
 0x253   : > { %6613 = vmatpush1.bf16.msra.mxu1 %v6612_v37 }
 0x254   : > { %6615 = vmatprep.subr.bf16.mxu1 %v6606_v1 }
 0x256   : > { %5697 = vmatmul.mubr.msk.f32.vlgmr.msra.gmra.mrb[8].mxu1 %vm693_vm1, %v8122_v60 }
 0x257   : > { %6617 = vmatpush1.bf16.msra.mxu1 %v6608_v62  ;;  %1629 = vmatprep.mubr.f32.mxu1 %v7519_v7  ;;  %v5757_v62 = vld [vmem:[%s10304_s3 + $0x278] sm:$0xff] }
 0x258   : > { %6619 = vmatprep.subr.bf16.mxu1 %v6610_v49  ;;  %v2043_v49 = vld [vmem:[%s10304_s3 + $0xa8] sm:$0xff] }
 0x25a   : > { %5698 = vmatmul.mubr.msk.f32.gmra.mrb[10].mxu1 %vm693_vm1, %v8134_v0 }
 0x25b   : > { %6621 = vmatpush1.bf16.msra.mxu1 %v6612_v37  ;;  %1713 = vmatprep.mubr.f32.mxu1 %v7519_v7  ;;  %v6738_v37 = vpack.c.bf16 %v5757_v62, %v5755_v61  ;;  %v2059_v61 = vld [vmem:[%s10304_s3 + $0x128] sm:$0xff]  ;;  %v2061_v62 = vld [vmem:[%s10304_s3 + $0x138] sm:$0xff] }
 0x25c   : > { %6647 = vmatprep.subr.bf16.mxu1 %v6646_v43  ;;  %v6732_v43 = vpack.c.bf16 %v5748_v36, %v5746_v33  ;;  %v2052_v33 = vld [vmem:[%s10304_s3 + $0xf0] sm:$0xff]  ;;  %v5766_v36 = vld [vmem:[%s10304_s3 + $0x2c0] sm:$0xff] }
 0x25e   : > { %5701 = vmatmul.mubr.msk.f32.vlgmr.msra.gmra.mrb[12].mxu1 %vm693_vm1, %v5699_v39  ;;  %v5752_v39 = vld [vmem:[%s10304_s3 + $0x250] sm:$0xff] }
 0x25f   : > { %6649 = vmatpush1.bf16.msra.mxu1 %v6648_v41  ;;  %1719 = vmatprep.mubr.f32.mxu1 %v7519_v7  ;;  %v2037_v41 = vld [vmem:[%s10304_s3 + $0x78] sm:$0xff] }
 0x260   : > { %6651 = vmatprep.subr.bf16.mxu1 %v6650_v48  ;;  %v6674_v44 = vpack.c.bf16 %v2037_v41, %v2035_v17  ;;  %v5750_v48 = vld [vmem:[%s10304_s3 + $0x240] sm:$0xff]  ;;  %v2055_v17 = vld [vmem:[%s10304_s3 + $0x108] sm:$0xff]  ;;  %v2057_v41 = vld [vmem:[%s10304_s3 + $0x118] sm:$0xff] }
 0x261   : > { %v6736_v63 = vpack.c.bf16 %v5752_v39, %v5750_v48  ;;  %v5770_v39 = vld [vmem:[%s10304_s3 + $0x2e0] sm:$0xff] }
 0x262   : > { %5702 = vmatmul.mubr.msk.f32.gmra.mrb[14].mxu1 %vm693_vm1, %v5700_v50  ;;  %v2039_v50 = vld [vmem:[%s10304_s3 + $0x88] sm:$0xff] }
 0x263   : > { %6653 = vmatpush1.bf16.msra.mxu1 %v6652_v46  ;;  %1908 = vmatprep.mubr.f32.mxu1 %v7519_v7  ;;  %v5753_v46 = vld [vmem:[%s10304_s3 + $0x258] sm:$0xff]  ;;  %v6678_v1 = vpack.c.bf16 %v2041_v57, %v2039_v50  ;;  %v5772_v50 = vld [vmem:[%s10304_s3 + $0x2f0] sm:$0xff] }
 0x264   : > { %v6734_v32 = vpack.c.bf16 %v5753_v46, %v5751_v45  ;;  %v6694_v45 = vpack.c.bf16 %v2057_v41, %v2055_v17  ;;  %v2054_v46 = vld [vmem:[%s10304_s3 + $0x100] sm:$0xff]  ;;  %v5788_v17 = vld [vmem:[%s10304_s3 + $0x370] sm:$0xff] }
 0x266   : > { %5731 = vmatmul.mubr.msk.f32.vlgmr.msra.gmra.mrb[16].mxu1 %vm693_vm1, %v8122_v60  ;;  %v5739_v60 = vld [vmem:[%s10304_s3 + $0x1e8] sm:$0xff] }
 0x267   : > { %1914 = vmatprep.mubr.f32.mxu1 %v7519_v7  ;;  %v6722_v6 = vpack.c.bf16 %v5741_v4, %v5739_v60  ;;  %v6682_v60 = vpack.c.bf16 %v2045_v51, %v2043_v49  ;;  %v2042_v4 = vld [vmem:[%s10304_s3 + $0xa0] sm:$0xff]  ;;  %v5776_v49 = vld [vmem:[%s10304_s3 + $0x310] sm:$0xff] }
 0x268   : > { %v6684_v13 = vpack.c.bf16 %v2044_v5, %v2042_v4  ;;  %v6760_v52 = vpack.c.bf16 %v5776_v49, %v5774_v47  ;;  %v2064_v4 = vld [vmem:[%s10304_s3 + $0x150] sm:$0xff]  ;;  %v5779_v5 = vld [vmem:[%s10304_s3 + $0x328] sm:$0xff]  ;;  %v5797_v47 = vld [vmem:[%s10304_s3 + $0x3b8] sm:$0xff] }
 0x269   : > { %6723 = vmatprep.subr.bf16.mxu1 %v6722_v6  ;;  %v5758_v6 = vld [vmem:[%s10304_s3 + $0x280] sm:$0xff] }
 0x26a   : > { %5732 = vmatmul.mubr.msk.f32.gmra.mrb[18].mxu1 %vm693_vm1, %v8134_v0  ;;  %v2029_v0 = vld [vmem:[%s10304_s3 + $0x38] sm:$0xff]  ;;  %v5794_v49 = vld [vmem:[%s10304_s3 + $0x3a0] sm:$0xff] }
 0x26b   : > { %v6666_v14 = vpack.c.bf16 %v2029_v0, %v2027_v10  ;;  %6725 = vmatpush1.bf16.msra.mxu1 %v6724_v11  ;;  %v2047_v10 = vld [vmem:[%s10304_s3 + $0xc8] sm:$0xff]  ;;  %v2049_v11 = vld [vmem:[%s10304_s3 + $0xd8] sm:$0xff] }
 0x26c   : > { %6727 = vmatprep.subr.bf16.mxu1 %v6726_v20  ;;  %v5763_v0 = vld [vmem:[%s10304_s3 + $0x2a8] sm:$0xff] }
 0x26d   : > { %6667 = vmatprep.subr.bf16.mxu0 %v6666_v14  ;;  %v6744_v14 = vpack.c.bf16 %v5760_v9, %v5758_v6  ;;  %v6746_v20 = vpack.c.bf16 %v5765_v12, %v5763_v0  ;;  %v5778_v9 = vld [vmem:[%s10304_s3 + $0x320] sm:$0xff]  ;;  %v2067_v12 = vld [vmem:[%s10304_s3 + $0x168] sm:$0xff] }
 0x26e   : > { %6669 = vmatpush1.bf16.msra.mxu0 %v6668_v15  ;;  %v6686_v15 = vpack.c.bf16 %v2049_v11, %v2047_v10  ;;  %v5780_v10 = vld [vmem:[%s10304_s3 + $0x330] sm:$0xff] }
 0x26f   : > { %6729 = vmatpush1.bf16.msra.mxu1 %v6728_v25  ;;  %6671 = vmatprep.subr.bf16.mxu0 %v6670_v26  ;;  %v5767_v25 = vld [vmem:[%s10304_s3 + $0x2c8] sm:$0xff]  ;;  %v5769_v26 = vld [vmem:[%s10304_s3 + $0x2d8] sm:$0xff]  ;;  %v6764_v0 = vpack.c.bf16 %v5780_v10, %v5778_v9 }
 0x270   : > { %6731 = vmatprep.subr.bf16.mxu1 %v6730_v40  ;;  %v5768_v40 = vld [vmem:[%s10304_s3 + $0x2d0] sm:$0xff] }
 0x271   : > { %v6752_v24 = vpack.c.bf16 %v5768_v40, %v5766_v36  ;;  %v5786_v40 = vld [vmem:[%s10304_s3 + $0x360] sm:$0xff] }
 0x272   : > { %6673 = vmatpush1.bf16.msra.mxu0 %v6672_v38  ;;  %v6750_v38 = vpack.c.bf16 %v5769_v26, %v5767_v25  ;;  %v6768_v25 = vpack.c.bf16 %v5784_v22, %v5782_v21  ;;  %v2071_v26 = vld [vmem:[%s10304_s3 + $0x188] sm:$0xff] }
 0x273   : > { %6733 = vmatpush1.bf16.msra.mxu1 %v6732_v43  ;;  %6675 = vmatprep.subr.bf16.mxu0 %v6674_v44  ;;  %v5773_v43 = vld [vmem:[%s10304_s3 + $0x2f8] sm:$0xff]  ;;  %v6692_v44 = vpack.c.bf16 %v2052_v33, %v2050_v31  ;;  %v2072_v31 = vld [vmem:[%s10304_s3 + $0x190] sm:$0xff]  ;;  %v5787_v33 = vld [vmem:[%s10304_s3 + $0x368] sm:$0xff] }
 0x274   : > { %6735 = vmatprep.subr.bf16.mxu1 %v6734_v32  ;;  %v2056_v32 = vld [vmem:[%s10304_s3 + $0x110] sm:$0xff]  ;;  %v6754_v48 = vpack.c.bf16 %v5773_v43, %v5771_v42  ;;  %v6772_v42 = vpack.c.bf16 %v5788_v17, %v5786_v40  ;;  %v2075_v43 = vld [vmem:[%s10304_s3 + $0x1a8] sm:$0xff] }
 0x275   : > { %v6696_v57 = vpack.c.bf16 %v2056_v32, %v2054_v46  ;;  %v2076_v46 = vld [vmem:[%s10304_s3 + $0x1b0] sm:$0xff]  ;;  %v5791_v32 = vld [vmem:[%s10304_s3 + $0x388] sm:$0xff] }
 0x276   : > { %6677 = vmatpush1.bf16.msra.mxu0 %v6676_v59  ;;  %v6756_v59 = vpack.c.bf16 %v5772_v50, %v5770_v39  ;;  %v5793_v39 = vld [vmem:[%s10304_s3 + $0x398] sm:$0xff]  ;;  %v5790_v50 = vld [vmem:[%s10304_s3 + $0x380] sm:$0xff] }
 0x277   : > { %6737 = vmatpush1.bf16.msra.mxu1 %v6736_v63  ;;  %6679 = vmatprep.subr.bf16.mxu0 %v6678_v1  ;;  %v6698_v63 = vpack.c.bf16 %v2061_v62, %v2059_v61  ;;  %v2058_v1 = vld [vmem:[%s10304_s3 + $0x120] sm:$0xff]  ;;  %v2079_v62 = vld [vmem:[%s10304_s3 + $0x1c8] sm:$0xff] }
 0x278   : > { %6739 = vmatprep.subr.bf16.mxu1 %v6738_v37  ;;  %v6700_v35 = vpack.c.bf16 %v2060_v34, %v2058_v1  ;;  %v5777_v37 = vld [vmem:[%s10304_s3 + $0x318] sm:$0xff]  ;;  %v2078_v34 = vld [vmem:[%s10304_s3 + $0x1c0] sm:$0xff] }
 0x279   : > { %v6758_v51 = vpack.c.bf16 %v5777_v37, %v5775_v30  ;;  %v2080_v30 = vld [vmem:[%s10304_s3 + $0x1d0] sm:$0xff] }
 0x27a   : > { %6681 = vmatpush1.bf16.msra.mxu0 %v6680_v2  ;;  %v2065_v2 = vld [vmem:[%s10304_s3 + $0x158] sm:$0xff]  ;;  %v6720_v37 = vpack.c.bf16 %v2080_v30, %v2078_v34 }
 0x27b   : > { %6741 = vmatpush1.bf16.msra.mxu1 %v6740_v3  ;;  %6683 = vmatprep.subr.bf16.mxu0 %v6682_v60  ;;  %v6702_v3 = vpack.c.bf16 %v2065_v2, %v2063_v58  ;;  %v2062_v60 = vld [vmem:[%s10304_s3 + $0x140] sm:$0xff]  ;;  %v5801_v2 = vld [vmem:[%s10304_s3 + $0x3c8] sm:$0xff]  ;;  %v5815_v34 = vld [vmem:[%s10304_s3 + $0x438] sm:$0xff] }
 0x27c   : > { %6743 = vmatprep.subr.bf16.mxu1 %v6742_v8  ;;  %v6704_v6 = vpack.c.bf16 %v2064_v4, %v2062_v60  ;;  %v5781_v8 = vld [vmem:[%s10304_s3 + $0x338] sm:$0xff] }
 0x27d   : > { %v6762_v11 = vpack.c.bf16 %v5781_v8, %v5779_v5 }
 0x27e   : > { %6685 = vmatpush1.bf16.msra.mxu0 %v6684_v13  ;;  %v2069_v13 = vld [vmem:[%s10304_s3 + $0x178] sm:$0xff] }
 0x27f   : > { %6745 = vmatpush1.bf16.msra.mxu1 %v6744_v14  ;;  %6687 = vmatprep.subr.bf16.mxu0 %v6686_v15  ;;  %v6706_v14 = vpack.c.bf16 %v2069_v13, %v2067_v12  ;;  %v2066_v15 = vld [vmem:[%s10304_s3 + $0x160] sm:$0xff] }
 0x280   : > { %6747 = vmatprep.subr.bf16.mxu1 %v6746_v20  ;;  %v6708_v19 = vpack.c.bf16 %v2068_v16, %v2066_v15  ;;  %v5785_v20 = vld [vmem:[%s10304_s3 + $0x358] sm:$0xff] }
 0x281   : > { %v6766_v23 = vpack.c.bf16 %v5785_v20, %v5783_v18 }
 0x282   : > { %6689 = vmatpush1.bf16.msra.mxu0 %v6688_v27  ;;  %v2073_v27 = vld [vmem:[%s10304_s3 + $0x198] sm:$0xff] }
 0x283   : > { %6749 = vmatpush1.bf16.msra.mxu1 %v6748_v28  ;;  %6691 = vmatprep.subr.bf16.mxu0 %v6690_v29  ;;  %v6710_v28 = vpack.c.bf16 %v2073_v27, %v2071_v26  ;;  %v2070_v29 = vld [vmem:[%s10304_s3 + $0x180] sm:$0xff] }
 0x284   : > { %6751 = vmatprep.subr.bf16.mxu1 %v6750_v38  ;;  %v6712_v36 = vpack.c.bf16 %v2072_v31, %v2070_v29  ;;  %v5789_v38 = vld [vmem:[%s10304_s3 + $0x378] sm:$0xff] }
 0x285   : > { %v6770_v41 = vpack.c.bf16 %v5789_v38, %v5787_v33  ;;  %v5805_v33 = vld [vmem:[%s10304_s3 + $0x3e8] sm:$0xff] }
 0x286   : > { %6693 = vmatpush1.bf16.msra.mxu0 %v6692_v44  ;;  %v2077_v44 = vld [vmem:[%s10304_s3 + $0x1b8] sm:$0xff] }
 0x287   : > { %6753 = vmatpush1.bf16.msra.mxu1 %v6752_v24  ;;  %6695 = vmatprep.subr.bf16.mxu0 %v6694_v45  ;;  %v6714_v24 = vpack.c.bf16 %v2077_v44, %v2075_v43  ;;  %v2074_v45 = vld [vmem:[%s10304_s3 + $0x1a0] sm:$0xff] }
 0x288   : > { %6755 = vmatprep.subr.bf16.mxu1 %v6754_v48  ;;  %v6716_v48 = vpack.c.bf16 %v2076_v46, %v2074_v45  ;;  %v5804_v45 = vld [vmem:[%s10304_s3 + $0x3e0] sm:$0xff]  ;;  %v5806_v46 = vld [vmem:[%s10304_s3 + $0x3f0] sm:$0xff] }
 0x28a   : > { %6697 = vmatpush1.bf16.msra.mxu0 %v6696_v57  ;;  %v5792_v57 = vld [vmem:[%s10304_s3 + $0x390] sm:$0xff] }
 0x28b   : > { %6757 = vmatpush1.bf16.msra.mxu1 %v6756_v59  ;;  %6699 = vmatprep.subr.bf16.mxu0 %v6698_v63  ;;  %v6774_v59 = vpack.c.bf16 %v5793_v39, %v5791_v32  ;;  %v6776_v61 = vpack.c.bf16 %v5792_v57, %v5790_v50  ;;  %v2081_v63 = vld [vmem:[%s10304_s3 + $0x1d8] sm:$0xff]  ;;  %v6788_v57 = vpack.c.bf16 %v5806_v46, %v5804_v45 }
 0x28c   : > { %6759 = vmatprep.subr.bf16.mxu1 %v6758_v51  ;;  %v6718_v1 = vpack.c.bf16 %v2081_v63, %v2079_v62  ;;  %v5796_v51 = vld [vmem:[%s10304_s3 + $0x3b0] sm:$0xff]  ;;  %v5811_v39 = vld [vmem:[%s10304_s3 + $0x418] sm:$0xff]  ;;  %v5808_v62 = vld [vmem:[%s10304_s3 + $0x400] sm:$0xff] }
 0x28d   : > { %v6780_v58 = vpack.c.bf16 %v5796_v51, %v5794_v49  ;;  %v5810_v63 = vld [vmem:[%s10304_s3 + $0x410] sm:$0xff]  ;;  %v5817_v49 = vld [vmem:[%s10304_s3 + $0x448] sm:$0xff]  ;;  %v5819_v51 = vld [vmem:[%s10304_s3 + $0x458] sm:$0xff] }
 0x28e   : > { %6701 = vmatpush1.bf16.msra.mxu0 %v6700_v35  ;;  %v5795_v35 = vld [vmem:[%s10304_s3 + $0x3a8] sm:$0xff]  ;;  %v6792_v30 = vpack.c.bf16 %v5810_v63, %v5808_v62  ;;  %v5848_v63 = vld [vmem:[%s10304_s3 + $0x540] sm:$0xff] }
 0x28f   : > { %6761 = vmatpush1.bf16.msra.mxu1 %v6760_v52  ;;  %6703 = vmatprep.subr.bf16.mxu0 %v6702_v3  ;;  %v6778_v52 = vpack.c.bf16 %v5797_v47, %v5795_v35  ;;  %v5803_v3 = vld [vmem:[%s10304_s3 + $0x3d8] sm:$0xff]  ;;  %v5814_v47 = vld [vmem:[%s10304_s3 + $0x430] sm:$0xff] }
 0x290   : > { %6763 = vmatprep.subr.bf16.mxu1 %v6762_v11  ;;  %v6782_v60 = vpack.c.bf16 %v5803_v3, %v5801_v2  ;;  %v5816_v2 = vld [vmem:[%s10304_s3 + $0x440] sm:$0xff]  ;;  %v5818_v3 = vld [vmem:[%s10304_s3 + $0x450] sm:$0xff] }
 0x292   : > { %6705 = vmatpush1.bf16.msra.mxu0 %v6704_v6 }
 0x293   : > { %6765 = vmatpush1.bf16.msra.mxu1 %v6764_v0  ;;  %6707 = vmatprep.subr.bf16.mxu0 %v6706_v14 }
 0x294   : > { %6767 = vmatprep.subr.bf16.mxu1 %v6766_v23 }
 0x296   : > { %6709 = vmatpush1.bf16.msra.mxu0 %v6708_v19 }
 0x297   : > { %6769 = vmatpush1.bf16.msra.mxu1 %v6768_v25  ;;  %6711 = vmatprep.subr.bf16.mxu0 %v6710_v28  ;;  %v5802_v28 = vld [vmem:[%s10304_s3 + $0x3d0] sm:$0xff] }
 0x298   : > { %6771 = vmatprep.subr.bf16.mxu1 %v6770_v41 }
 0x29a   : > { %6713 = vmatpush1.bf16.msra.mxu0 %v6712_v36  ;;  %v5807_v36 = vld [vmem:[%s10304_s3 + $0x3f8] sm:$0xff] }
 0x29b   : > { %6773 = vmatpush1.bf16.msra.mxu1 %v6772_v42  ;;  %6715 = vmatprep.subr.bf16.mxu0 %v6714_v24  ;;  %v6786_v24 = vpack.c.bf16 %v5807_v36, %v5805_v33  ;;  %v5841_v33 = vld [vmem:[%s10304_s3 + $0x508] sm:$0xff]  ;;  %v5843_v36 = vld [vmem:[%s10304_s3 + $0x518] sm:$0xff] }
 0x29c   : > { %6775 = vmatprep.subr.bf16.mxu1 %v6774_v59 }
 0x29e   : > { %6717 = vmatpush1.bf16.msra.mxu0 %v6716_v48  ;;  %v5809_v48 = vld [vmem:[%s10304_s3 + $0x408] sm:$0xff] }
 0x29f   : > { %6777 = vmatpush1.bf16.msra.mxu1 %v6776_v61  ;;  %6719 = vmatprep.subr.bf16.mxu0 %v6718_v1  ;;  %v6790_v61 = vpack.c.bf16 %v5811_v39, %v5809_v48  ;;  %v5813_v1 = vld [vmem:[%s10304_s3 + $0x428] sm:$0xff]  ;;  %v5846_v48 = vld [vmem:[%s10304_s3 + $0x530] sm:$0xff] }
 0x2a0   : > { %6779 = vmatprep.subr.bf16.mxu1 %v6778_v52  ;;  %v6794_v35 = vpack.c.bf16 %v5815_v34, %v5813_v1  ;;  %v5849_v39 = vld [vmem:[%s10304_s3 + $0x548] sm:$0xff]  ;;  %v5850_v1 = vld [vmem:[%s10304_s3 + $0x550] sm:$0xff] }
 0x2a1   : > { %v5853_v34 = vld [vmem:[%s10304_s3 + $0x568] sm:$0xff] }
 0x2a2   : > { %6721 = vmatpush1.bf16.msra.mxu0 %v6720_v37  ;;  %v5812_v37 = vld [vmem:[%s10304_s3 + $0x420] sm:$0xff] }
 0x2a3   : > { %6781 = vmatpush1.bf16.msra.mxu1 %v6780_v58  ;;  %6783 = vmatprep.subr.bf16.mxu0 %v6782_v60  ;;  %v6796_v52 = vpack.c.bf16 %v5814_v47, %v5812_v37  ;;  %v6798_v58 = vpack.c.bf16 %v5819_v51, %v5817_v49  ;;  %v5821_v60 = vld [vmem:[%s10304_s3 + $0x468] sm:$0xff]  ;;  %v5852_v47 = vld [vmem:[%s10304_s3 + $0x560] sm:$0xff]  ;;  %v5854_v49 = vld [vmem:[%s10304_s3 + $0x570] sm:$0xff] }
 0x2a4   : > { %v5857_v51 = vld [vmem:[%s10304_s3 + $0x588] sm:$0xff] }
 0x2e2   : > { %v1991_v4 = vpop.f32.mrb[24].mxu0 }
 0x2e3   : > { %v7346_v5 = vadd.f32 %v1991_v4, %v8260_v53  ;;  %v1993_v6 = vpop.f32.mrb[25].mxu0  ;;  %v5823_v4 = vld [vmem:[%s10304_s3 + $0x478] sm:$0xff] }
 0x2e4   : > { %v7347_v8 = vadd.f32 %v1993_v6, %v8262_v54  ;;  %v6802_v6 = vpack.c.bf16 %v5823_v4, %v5821_v60  ;;  %v5858_v60 = vld [vmem:[%s10304_s3 + $0x590] sm:$0xff] }
 0x2e6   : > { %v1997_v9 = vpop.f32.mrb[26].mxu0 }
 0x2e7   : > { %v7348_v10 = vadd.f32 %v1997_v9, %v8264_v55  ;;  %v1999_v11 = vpop.f32.mrb[27].mxu0  ;;  %v5822_v9 = vld [vmem:[%s10304_s3 + $0x470] sm:$0xff] }
 0x2e8   : > { %v7349_v0 = vadd.f32 %v1999_v11, %v8266_v56  ;;  %v5800_v56 = vld [vmem:[%s10304_s3 + $0x3c0] sm:$0xff]  ;;  %v5827_v11 = vld [vmem:[%s10304_s3 + $0x498] sm:$0xff] }
 0x2e9   : > { %v6784_v42 = vpack.c.bf16 %v5802_v28, %v5800_v56 }
 0x329   : > { %v1625_v12 = vpop.f32.mrb[8].mxu1 }
 0x32a   : > { %v1627_v13 = vpop.f32.mrb[9].mxu1 }
 0x32d   : > { %v1631_v14 = vpop.f32.mrb[10].mxu1 }
 0x32e   : > { %v1633_v15 = vpop.f32.mrb[11].mxu1 }
 0x331   : > { %v1715_v16 = vpop.f32.mrb[12].mxu1 }
 0x332   : > { %v2010_v18 = vmax.f32 %v1715_v16, %v7346_v5  ;;  %v1717_v19 = vpop.f32.mrb[13].mxu1  ;;  %v6800_v5 = vpack.c.bf16 %v5818_v3, %v5816_v2  ;;  %v5831_v16 = vld [vmem:[%s10304_s3 + $0x4b8] sm:$0xff]  ;;  %v5856_v3 = vld [vmem:[%s10304_s3 + $0x580] sm:$0xff] }
 0x333   : > { %v2011_v20 = vmax.f32 %v1717_v19, %v7347_v8  ;;  %v5820_v8 = vld [vmem:[%s10304_s3 + $0x460] sm:$0xff]  ;;  %v6840_v4 = vpack.c.bf16 %v5858_v60, %v5856_v3  ;;  %v5897_v3 = vld [vmem:[%s10304_s3 + $0x650] sm:$0xff]  ;;  %v5900_v60 = vld [vmem:[%s10304_s3 + $0x668] sm:$0xff] }
 0x335   : > { %v1721_v21 = vpop.f32.mrb[14].mxu1 }
 0x336   : > { %v2012_v22 = vmax.f32 %v1721_v21, %v7348_v10  ;;  %v1723_v53 = vpop.f32.mrb[15].mxu1  ;;  %v5825_v10 = vld [vmem:[%s10304_s3 + $0x488] sm:$0xff]  ;;  %v5830_v21 = vld [vmem:[%s10304_s3 + $0x4b0] sm:$0xff] }
 0x337   : > { %v2013_v23 = vmax.f32 %v1723_v53, %v7349_v0  ;;  %v6804_v0 = vpack.c.bf16 %v5822_v9, %v5820_v8  ;;  %v5835_v53 = vld [vmem:[%s10304_s3 + $0x4d8] sm:$0xff] }
 0x339   : > { %v1910_v25 = vpop.f32.mrb[16].mxu1 }
 0x33a   : > { %v2006_v54 = vmax.f32 %v1625_v12, %v1910_v25  ;;  %v1912_v26 = vpop.f32.mrb[17].mxu1  ;;  %v6806_v12 = vpack.c.bf16 %v5827_v11, %v5825_v10 }
 0x33b   : > { %v2007_v27 = vmax.f32 %v1627_v13, %v1912_v26  ;;  %v5824_v13 = vld [vmem:[%s10304_s3 + $0x480] sm:$0xff]  ;;  %v5834_v26 = vld [vmem:[%s10304_s3 + $0x4d0] sm:$0xff] }
 0x33c   : > { %v2014_v55 = vmax.f32 %v2006_v54, %v2010_v18  ;;  %v5832_v54 = vld [vmem:[%s10304_s3 + $0x4c0] sm:$0xff] }
 0x33d   : > { %v2015_v29 = vmax.f32 %v2007_v27, %v2011_v20  ;;  %v1916_v31 = vpop.f32.mrb[18].mxu1  ;;  %v5828_v20 = vld [vmem:[%s10304_s3 + $0x4a0] sm:$0xff]  ;;  %v5837_v27 = vld [vmem:[%s10304_s3 + $0x4e8] sm:$0xff]  ;;  %v6816_v56 = vpack.c.bf16 %v5834_v26, %v5832_v54 }
 0x33e   : > { %v2008_v38 = vmax.f32 %v1631_v14, %v1916_v31  ;;  %v1918_v40 = vpop.f32.mrb[19].mxu1  ;;  %v8667_v43 = vmax.f32 %v2014_v55, 0.0  ;;  %v5826_v14 = vld [vmem:[%s10304_s3 + $0x490] sm:$0xff]  ;;  %v5839_v55 = vld [vmem:[%s10304_s3 + $0x4f8] sm:$0xff]  ;;  %v8884_v54 = vld [vmem:[%s10305_s4] sm:$0x3f] }
 0x33f   : > { %v8665_v17 = vmax.f32 %v2015_v29, 0.0  ;;  %v2009_v41 = vmax.f32 %v1633_v15, %v1918_v40  ;;  %v5829_v15 = vld [vmem:[%s10304_s3 + $0x4a8] sm:$0xff]  ;;  %v6808_v18 = vpack.c.bf16 %v5826_v14, %v5824_v13  ;;  %v6818_v28 = vpack.c.bf16 %v5839_v55, %v5837_v27  ;;  %v5836_v29 = vld [vmem:[%s10304_s3 + $0x4e0] sm:$0xff]  ;;  %v5838_v31 = vld [vmem:[%s10304_s3 + $0x4f0] sm:$0xff] }
 0x340   : > { %v2016_v44 = vmax.f32 %v2008_v38, %v2012_v22  ;;  %v6810_v19 = vpack.c.bf16 %v5831_v16, %v5829_v15  ;;  %v5833_v22 = vld [vmem:[%s10304_s3 + $0x4c8] sm:$0xff]  ;;  %v6820_v38 = vpack.c.bf16 %v5838_v31, %v5836_v29  ;;  %v6822_v40 = vpack.c.bf16 %v5843_v36, %v5841_v33  ;;  %v5878_v27 = vld [vmem:[%s10304_s3 + $0x5b8] sm:$0xff]  ;;  %v8900_v55 = vld [vmem:[%s10305_s4 + $0x10] sm:$0x3f] }
 0x341   : > { %v2017_v32 = vmax.f32 %v2009_v41, %v2013_v23  ;;  %5735 = vmatprep.mubr.msk.f32.mxu0 %vm2082_vm2, %v8665_v17  ;;  %5798 = vmatprep.mubr.msk.f32.mxu1 %vm2082_vm2, %v8665_v17  ;;  %v6812_v23 = vpack.c.bf16 %v5830_v21, %v5828_v20  ;;  %v6814_v25 = vpack.c.bf16 %v5835_v53, %v5833_v22  ;;  %v5840_v41 = vld [vmem:[%s10304_s3 + $0x500] sm:$0xff]  ;;  %v5876_v26 = vld [vmem:[%s10304_s3 + $0x5a8] sm:$0xff]  ;;  %v5877_v29 = vld [vmem:[%s10304_s3 + $0x5b0] sm:$0xff] }
 0x342   : > { %2154 = vmatmul.mubr.f32.vlgmr.msra.gmra.mrb[36].mxu0 %v8667_v43  ;;  %2295 = vmatmul.mubr.f32.vlgmr.msra.gmra.mrb[32].mxu1 %v8667_v43  ;;  %v8689_v59 = vmax.f32 %v2016_v44, 0.0  ;;  %v5845_v44 = vld [vmem:[%s10304_s3 + $0x528] sm:$0xff]  ;;  %v5882_v33 = vld [vmem:[%s10304_s3 + $0x5d8] sm:$0xff]  ;;  %v3785_v53 = vld [vmem:[%s10306_s5 + $0x20] sm:$0xff] }
 0x343   : > { %v8687_v50 = vmax.f32 %v2017_v32, 0.0  ;;  %6785 = vmatpush1.bf16.msra.mxu0 %v6784_v42  ;;  %v5842_v42 = vld [vmem:[%s10304_s3 + $0x510] sm:$0xff]  ;;  %v5844_v32 = vld [vmem:[%s10304_s3 + $0x520] sm:$0xff]  ;;  %v5880_v31 = vld [vmem:[%s10304_s3 + $0x5c8] sm:$0xff] }
 0x344   : > { %6787 = vmatprep.subr.bf16.mxu0 %v6786_v24  ;;  %v5847_v24 = vld [vmem:[%s10304_s3 + $0x538] sm:$0xff]  ;;  %v6824_v45 = vpack.c.bf16 %v5842_v42, %v5840_v41  ;;  %v5881_v41 = vld [vmem:[%s10304_s3 + $0x5d0] sm:$0xff]  ;;  %v5884_v42 = vld [vmem:[%s10304_s3 + $0x5e8] sm:$0xff] }
 0x345   : > { %5736 = vmatprep.mubr.msk.f32.mxu0 %vm2082_vm2, %v8687_v50  ;;  %5799 = vmatprep.mubr.msk.f32.mxu1 %vm2082_vm2, %v8687_v50  ;;  %v6826_v46 = vpack.c.bf16 %v5847_v24, %v5845_v44  ;;  %v5886_v44 = vld [vmem:[%s10304_s3 + $0x5f8] sm:$0xff] }
 0x346   : > { %2160 = vmatmul.mubr.f32.gmra.mrb[38].mxu0 %v8689_v59  ;;  %2301 = vmatmul.mubr.f32.gmra.mrb[34].mxu1 %v8689_v59 }
 0x347   : > { %6789 = vmatpush1.bf16.msra.mxu0 %v6788_v57  ;;  %5860 = vmatprep.mubr.msk.f32.mxu0 %vm2082_vm2, %v8665_v17  ;;  %v5851_v57 = vld [vmem:[%s10304_s3 + $0x558] sm:$0xff] }
 0x348   : > { %6791 = vmatprep.subr.bf16.mxu0 %v6790_v61  ;;  %2520 = vmatprep.mubr.f32.mxu1 %v7519_v7  ;;  %v6828_v61 = vpack.c.bf16 %v5846_v48, %v5844_v32  ;;  %v6830_v62 = vpack.c.bf16 %v5851_v57, %v5849_v39  ;;  %v5885_v32 = vld [vmem:[%s10304_s3 + $0x5f0] sm:$0xff]  ;;  %v5888_v48 = vld [vmem:[%s10304_s3 + $0x608] sm:$0xff]  ;;  %v5890_v39 = vld [vmem:[%s10304_s3 + $0x618] sm:$0xff] }
 0x34b   : > { %6793 = vmatpush1.bf16.msra.mxu0 %v6792_v30  ;;  %v5855_v30 = vld [vmem:[%s10304_s3 + $0x578] sm:$0xff] }
 0x34c   : > { %6795 = vmatprep.subr.bf16.mxu0 %v6794_v35  ;;  %v6832_v35 = vpack.c.bf16 %v5850_v1, %v5848_v63  ;;  %v6834_v37 = vpack.c.bf16 %v5855_v30, %v5853_v34  ;;  %v5889_v63 = vld [vmem:[%s10304_s3 + $0x610] sm:$0xff]  ;;  %v5892_v1 = vld [vmem:[%s10304_s3 + $0x628] sm:$0xff]  ;;  %v5894_v34 = vld [vmem:[%s10304_s3 + $0x638] sm:$0xff] }
 0x34f   : > { %6797 = vmatpush1.bf16.msra.mxu0 %v6796_v52  ;;  %v5859_v52 = vld [vmem:[%s10304_s3 + $0x598] sm:$0xff] }
 0x350   : > { %6799 = vmatprep.subr.bf16.mxu0 %v6798_v58  ;;  %v6836_v58 = vpack.c.bf16 %v5854_v49, %v5852_v47  ;;  %v6838_v2 = vpack.c.bf16 %v5859_v52, %v5857_v51  ;;  %v5893_v47 = vld [vmem:[%s10304_s3 + $0x630] sm:$0xff]  ;;  %v5896_v49 = vld [vmem:[%s10304_s3 + $0x648] sm:$0xff]  ;;  %v5898_v51 = vld [vmem:[%s10304_s3 + $0x658] sm:$0xff] }
 0x353   : > { %6801 = vmatpush1.bf16.msra.mxu0 %v6800_v5 }
 0x354   : > { %6803 = vmatprep.subr.bf16.mxu0 %v6802_v6 }
 0x357   : > { %6805 = vmatpush1.bf16.msra.mxu0 %v6804_v0 }
 0x358   : > { %6807 = vmatprep.subr.bf16.mxu0 %v6806_v12 }
 0x35b   : > { %6809 = vmatpush1.bf16.msra.mxu0 %v6808_v18 }
 0x35c   : > { %6811 = vmatprep.subr.bf16.mxu0 %v6810_v19 }
 0x35f   : > { %6813 = vmatpush1.bf16.msra.mxu0 %v6812_v23 }
 0x360   : > { %6815 = vmatprep.subr.bf16.mxu0 %v6814_v25  ;;  %v8870_v25 = vld [vmem:[%s10305_s4 + $0x8] sm:$0x3f] }
 0x363   : > { %6817 = vmatpush1.bf16.msra.mxu0 %v6816_v56  ;;  %v6866_v56 = vpack.c.bf16 %v5878_v27, %v5876_v26  ;;  %v5912_v26 = vld [vmem:[%s10304_s3 + $0x6c8] sm:$0xff]  ;;  %v5914_v27 = vld [vmem:[%s10304_s3 + $0x6d8] sm:$0xff] }
 0x364   : > { %6819 = vmatprep.subr.bf16.mxu0 %v6818_v28  ;;  %v5875_v28 = vld [vmem:[%s10304_s3 + $0x5a0] sm:$0xff] }
 0x365   : > { %v6868_v36 = vpack.c.bf16 %v5877_v29, %v5875_v28  ;;  %v6902_v28 = vpack.c.bf16 %v5914_v27, %v5912_v26  ;;  %v5911_v29 = vld [vmem:[%s10304_s3 + $0x6c0] sm:$0xff] }
 0x367   : > { %6821 = vmatpush1.bf16.msra.mxu0 %v6820_v38  ;;  %v6870_v38 = vpack.c.bf16 %v5882_v33, %v5880_v31  ;;  %v5913_v31 = vld [vmem:[%s10304_s3 + $0x6d0] sm:$0xff]  ;;  %v5916_v33 = vld [vmem:[%s10304_s3 + $0x6e8] sm:$0xff] }
 0x368   : > { %6823 = vmatprep.subr.bf16.mxu0 %v6822_v40  ;;  %v5879_v40 = vld [vmem:[%s10304_s3 + $0x5c0] sm:$0xff] }
 0x369   : > { %v6872_v24 = vpack.c.bf16 %v5881_v41, %v5879_v40  ;;  %v5915_v41 = vld [vmem:[%s10304_s3 + $0x6e0] sm:$0xff] }
 0x36b   : > { %6825 = vmatpush1.bf16.msra.mxu0 %v6824_v45  ;;  %v6874_v45 = vpack.c.bf16 %v5886_v44, %v5884_v42  ;;  %v5917_v42 = vld [vmem:[%s10304_s3 + $0x6f0] sm:$0xff]  ;;  %v5920_v44 = vld [vmem:[%s10304_s3 + $0x708] sm:$0xff] }
 0x36c   : > { %6827 = vmatprep.subr.bf16.mxu0 %v6826_v46  ;;  %v5883_v46 = vld [vmem:[%s10304_s3 + $0x5e0] sm:$0xff] }
 0x36d   : > { %v6876_v57 = vpack.c.bf16 %v5885_v32, %v5883_v46  ;;  %v5919_v32 = vld [vmem:[%s10304_s3 + $0x700] sm:$0xff] }
 0x36f   : > { %6829 = vmatpush1.bf16.msra.mxu0 %v6828_v61  ;;  %v6878_v61 = vpack.c.bf16 %v5890_v39, %v5888_v48  ;;  %v5921_v48 = vld [vmem:[%s10304_s3 + $0x710] sm:$0xff]  ;;  %v5924_v39 = vld [vmem:[%s10304_s3 + $0x728] sm:$0xff] }
 0x370   : > { %6831 = vmatprep.subr.bf16.mxu0 %v6830_v62  ;;  %v5887_v62 = vld [vmem:[%s10304_s3 + $0x600] sm:$0xff] }
 0x371   : > { %v6880_v30 = vpack.c.bf16 %v5889_v63, %v5887_v62  ;;  %v5923_v63 = vld [vmem:[%s10304_s3 + $0x720] sm:$0xff] }
 0x373   : > { %6833 = vmatpush1.bf16.msra.mxu0 %v6832_v35  ;;  %v6882_v35 = vpack.c.bf16 %v5894_v34, %v5892_v1  ;;  %v5925_v1 = vld [vmem:[%s10304_s3 + $0x730] sm:$0xff]  ;;  %v5928_v34 = vld [vmem:[%s10304_s3 + $0x748] sm:$0xff] }
 0x374   : > { %6835 = vmatprep.subr.bf16.mxu0 %v6834_v37  ;;  %v5891_v37 = vld [vmem:[%s10304_s3 + $0x620] sm:$0xff] }
 0x375   : > { %v6884_v52 = vpack.c.bf16 %v5893_v47, %v5891_v37  ;;  %v5927_v47 = vld [vmem:[%s10304_s3 + $0x740] sm:$0xff] }
 0x377   : > { %6837 = vmatpush1.bf16.msra.mxu0 %v6836_v58  ;;  %v6886_v58 = vpack.c.bf16 %v5898_v51, %v5896_v49  ;;  %v5929_v49 = vld [vmem:[%s10304_s3 + $0x750] sm:$0xff]  ;;  %v5932_v51 = vld [vmem:[%s10304_s3 + $0x768] sm:$0xff] }
 0x378   : > { %6839 = vmatprep.subr.bf16.mxu0 %v6838_v2  ;;  %v5895_v2 = vld [vmem:[%s10304_s3 + $0x640] sm:$0xff] }
 0x37b   : > { %6841 = vmatpush1.bf16.msra.mxu0 %v6840_v4  ;;  %v5902_v4 = vld [vmem:[%s10304_s3 + $0x678] sm:$0xff] }
 0x37e   : > { %2433 = vmatmul.mubr.f32.vlgmr.msra.gmra.mrb[40].mxu0 %v8667_v43 }
 0x37f   : > { %5861 = vmatprep.mubr.msk.f32.mxu0 %vm2082_vm2, %v8687_v50 }
 0x382   : > { %2439 = vmatmul.mubr.f32.gmra.mrb[42].mxu0 %v8689_v59 }
 0x383   : > { %2962 = vmatprep.mubr.f32.mxu0 %v7519_v7 }
 0x415   : > { %v2155_v5 = vpop.f32.mrb[36].mxu0  ;;  %v2296_v6 = vpop.f32.mrb[32].mxu1 }
 0x416   : > { %v2157_v8 = vpop.f32.mrb[37].mxu0  ;;  %v2298_v9 = vpop.f32.mrb[33].mxu1 }
 0x419   : > { %v2161_v10 = vpop.f32.mrb[38].mxu0  ;;  %v2302_v11 = vpop.f32.mrb[34].mxu1 }
 0x41a   : > { %v6851_v0 = vpack.c.bf16 %v2161_v10, %v2155_v5  ;;  %v8855_v12 = vpack.c.bf16 %v2302_v11, %v2296_v6  ;;  %v2163_v13 = vpop.f32.mrb[39].mxu0  ;;  %v2304_v14 = vpop.f32.mrb[35].mxu1  ;;  %v6888_v5 = vpack.c.bf16 %v5897_v3, %v5895_v2  ;;  %v6890_v6 = vpack.c.bf16 %v5902_v4, %v5900_v60  ;;  %v5904_v10 = vld [vmem:[%s10304_s3 + $0x688] sm:$0xff]  ;;  %v5906_v11 = vld [vmem:[%s10304_s3 + $0x698] sm:$0xff]  ;;  %v5931_v3 = vld [vmem:[%s10304_s3 + $0x760] sm:$0xff] }
 0x41b   : > { %v6848_v15 = vpack.c.bf16 %v2163_v13, %v2157_v8  ;;  %v8857_v16 = vpack.c.bf16 %v2304_v14, %v2298_v9  ;;  %v5899_v8 = vld [vmem:[%s10304_s3 + $0x660] sm:$0xff]  ;;  %v5901_v9 = vld [vmem:[%s10304_s3 + $0x670] sm:$0xff]  ;;  %v6894_v13 = vpack.c.bf16 %v5906_v11, %v5904_v10 }
 0x41c   : > { %v5903_v14 = vld [vmem:[%s10304_s3 + $0x680] sm:$0xff]  ;;  %v5933_v60 = vld [vmem:[%s10304_s3 + $0x770] sm:$0xff] }
 0x41d   : > { %v6924_v4 = vpack.c.bf16 %v5933_v60, %v5931_v3  ;;  %v5984_v3 = vld [vmem:[%s10304_s3 + $0x898] sm:$0xff] }
 0x451   : > { %v2434_v18 = vpop.f32.mrb[40].mxu0 }
 0x452   : > { %v2436_v19 = vpop.f32.mrb[41].mxu0 }
 0x455   : > { %v2440_v20 = vpop.f32.mrb[42].mxu0 }
 0x456   : > { %v6845_v21 = vpack.c.bf16 %v2440_v20, %v2434_v18  ;;  %v2442_v22 = vpop.f32.mrb[43].mxu0  ;;  %v5908_v18 = vld [vmem:[%s10304_s3 + $0x6a8] sm:$0xff] }
 0x457   : > { %v6842_v23 = vpack.c.bf16 %v2442_v22, %v2436_v19  ;;  %v5910_v19 = vld [vmem:[%s10304_s3 + $0x6b8] sm:$0xff]  ;;  %v5907_v22 = vld [vmem:[%s10304_s3 + $0x6a0] sm:$0xff] }
 0x459   : > { %6844 = vmatprep.subr.msk.bf16.mxu1 %vm8859_vm5, %v6842_v23 }
 0x45a   : > { %6847 = vmatpush1.bf16.msk.msra.mxu1 %vm8859_vm5, %v6845_v21 }
 0x45b   : > { %6850 = vmatprep.subr.msk.bf16.mxu1 %vm8859_vm5, %v6848_v15 }
 0x45d   : > { %5864 = vmatmul.mubr.msk.f32.vlgmr.msra.gmra.mrb[36].mxu1 %vm2445_vm6, %v8870_v25 }
 0x45e   : > { %6853 = vmatpush1.bf16.msk.msra.mxu1 %vm8859_vm5, %v6851_v0  ;;  %2600 = vmatprep.mubr.f32.mxu1 %v7519_v7 }
 0x45f   : > { %6856 = vmatprep.subr.msk.bf16.mxu1 %vm8859_vm5, %v6842_v23  ;;  %v5909_v23 = vld [vmem:[%s10304_s3 + $0x6b0] sm:$0xff] }
 0x465   : > { %5867 = vmatmul.mubr.msk.f32.vlgmr.msra.gmra.mrb[36].mxu1 %vm2445_vm6, %v8884_v54 }
 0x466   : > { %6859 = vmatpush1.bf16.msk.msra.mxu1 %vm8859_vm5, %v6845_v21  ;;  %2676 = vmatprep.mubr.f32.mxu1 %v7519_v7  ;;  %v6898_v21 = vpack.c.bf16 %v5910_v19, %v5908_v18  ;;  %v5956_v18 = vld [vmem:[%s10304_s3 + $0x7b8] sm:$0xff] }
 0x467   : > { %6862 = vmatprep.subr.msk.bf16.mxu1 %vm8859_vm5, %v6848_v15  ;;  %v5905_v15 = vld [vmem:[%s10304_s3 + $0x690] sm:$0xff] }
 0x468   : > { %v6896_v20 = vpack.c.bf16 %v5905_v15, %v5903_v14  ;;  %v5951_v15 = vld [vmem:[%s10304_s3 + $0x790] sm:$0xff] }
 0x469   : > { %5871 = vmatmul.mubr.msk.f32.vlgmr.msra.gmra.mrb[38].mxu1 %vm2445_vm6, %v8900_v55 }
 0x46a   : > { %6865 = vmatpush1.bf16.msk.msra.mxu1 %vm8859_vm5, %v6851_v0  ;;  %2747 = vmatprep.mubr.f32.mxu1 %v7519_v7  ;;  %v6892_v0 = vpack.c.bf16 %v5901_v9, %v5899_v8 }
 0x46b   : > { %6867 = vmatprep.subr.bf16.mxu1 %v6866_v56  ;;  %v6900_v56 = vpack.c.bf16 %v5909_v23, %v5907_v22  ;;  %v5958_v22 = vld [vmem:[%s10304_s3 + $0x7c8] sm:$0xff]  ;;  %v5960_v23 = vld [vmem:[%s10304_s3 + $0x7d8] sm:$0xff] }
 0x46c   : > { %v6958_v27 = vpack.c.bf16 %v5960_v23, %v5958_v22  ;;  %v5993_v23 = vld [vmem:[%s10304_s3 + $0x8e0] sm:$0xff] }
 0x471   : > { %5874 = vmatmul.mubr.msk.f32.vlgmr.msra.gmra.mrb[38].mxu1 %vm2445_vm6, %v8870_v25 }
 0x472   : > { %6869 = vmatpush1.bf16.msra.mxu1 %v6868_v36  ;;  %5935 = vmatprep.mubr.msk.f32.mxu1 %vm2082_vm2, %v8665_v17  ;;  %v5918_v36 = vld [vmem:[%s10304_s3 + $0x6f8] sm:$0xff] }
 0x473   : > { %6871 = vmatprep.subr.bf16.mxu1 %v6870_v38  ;;  %v6904_v38 = vpack.c.bf16 %v5913_v31, %v5911_v29  ;;  %v6906_v40 = vpack.c.bf16 %v5918_v36, %v5916_v33  ;;  %v5962_v29 = vld [vmem:[%s10304_s3 + $0x7e8] sm:$0xff]  ;;  %v5961_v36 = vld [vmem:[%s10304_s3 + $0x7e0] sm:$0xff] }
 0x476   : > { %6873 = vmatpush1.bf16.msra.mxu1 %v6872_v24  ;;  %v5922_v24 = vld [vmem:[%s10304_s3 + $0x718] sm:$0xff] }
 0x477   : > { %6875 = vmatprep.subr.bf16.mxu1 %v6874_v45  ;;  %v6908_v45 = vpack.c.bf16 %v5917_v42, %v5915_v41  ;;  %v6910_v46 = vpack.c.bf16 %v5922_v24, %v5920_v44  ;;  %v5968_v41 = vld [vmem:[%s10304_s3 + $0x818] sm:$0xff]  ;;  %v5965_v24 = vld [vmem:[%s10304_s3 + $0x800] sm:$0xff] }
 0x47a   : > { %6877 = vmatpush1.bf16.msra.mxu1 %v6876_v57  ;;  %v5926_v57 = vld [vmem:[%s10304_s3 + $0x738] sm:$0xff] }
 0x47b   : > { %6879 = vmatprep.subr.bf16.mxu1 %v6878_v61  ;;  %v6912_v61 = vpack.c.bf16 %v5921_v48, %v5919_v32  ;;  %v6914_v62 = vpack.c.bf16 %v5926_v57, %v5924_v39  ;;  %v5972_v32 = vld [vmem:[%s10304_s3 + $0x838] sm:$0xff]  ;;  %v5969_v57 = vld [vmem:[%s10304_s3 + $0x820] sm:$0xff] }
 0x47e   : > { %6881 = vmatpush1.bf16.msra.mxu1 %v6880_v30  ;;  %v5930_v30 = vld [vmem:[%s10304_s3 + $0x758] sm:$0xff] }
 0x47f   : > { %6883 = vmatprep.subr.bf16.mxu1 %v6882_v35  ;;  %v6916_v35 = vpack.c.bf16 %v5925_v1, %v5923_v63  ;;  %v6918_v37 = vpack.c.bf16 %v5930_v30, %v5928_v34  ;;  %v5976_v63 = vld [vmem:[%s10304_s3 + $0x858] sm:$0xff]  ;;  %v5973_v30 = vld [vmem:[%s10304_s3 + $0x840] sm:$0xff] }
 0x482   : > { %6885 = vmatpush1.bf16.msra.mxu1 %v6884_v52  ;;  %v5934_v52 = vld [vmem:[%s10304_s3 + $0x778] sm:$0xff] }
 0x483   : > { %6887 = vmatprep.subr.bf16.mxu1 %v6886_v58  ;;  %v6920_v58 = vpack.c.bf16 %v5929_v49, %v5927_v47  ;;  %v6922_v2 = vpack.c.bf16 %v5934_v52, %v5932_v51  ;;  %v5980_v47 = vld [vmem:[%s10304_s3 + $0x878] sm:$0xff]  ;;  %v5977_v52 = vld [vmem:[%s10304_s3 + $0x860] sm:$0xff] }
 0x486   : > { %6889 = vmatpush1.bf16.msra.mxu1 %v6888_v5 }
 0x487   : > { %6891 = vmatprep.subr.bf16.mxu1 %v6890_v6 }
 0x48a   : > { %6893 = vmatpush1.bf16.msra.mxu1 %v6892_v0  ;;  %v5950_v0 = vld [vmem:[%s10304_s3 + $0x788] sm:$0xff] }
 0x48b   : > { %6895 = vmatprep.subr.bf16.mxu1 %v6894_v13  ;;  %v5952_v13 = vld [vmem:[%s10304_s3 + $0x798] sm:$0xff] }
 0x48c   : > { %v6950_v14 = vpack.c.bf16 %v5952_v13, %v5950_v0  ;;  %v5985_v0 = vld [vmem:[%s10304_s3 + $0x8a0] sm:$0xff]  ;;  %v5987_v13 = vld [vmem:[%s10304_s3 + $0x8b0] sm:$0xff] }
 0x48e   : > { %6897 = vmatpush1.bf16.msra.mxu1 %v6896_v20  ;;  %v5953_v20 = vld [vmem:[%s10304_s3 + $0x7a0] sm:$0xff] }
 0x48f   : > { %6899 = vmatprep.subr.bf16.mxu1 %v6898_v21  ;;  %v5955_v21 = vld [vmem:[%s10304_s3 + $0x7b0] sm:$0xff] }
 0x490   : > { %v6956_v26 = vpack.c.bf16 %v5955_v21, %v5953_v20  ;;  %v5996_v20 = vld [vmem:[%s10304_s3 + $0x8f8] sm:$0xff] }
 0x492   : > { %6901 = vmatpush1.bf16.msra.mxu1 %v6900_v56  ;;  %v5957_v56 = vld [vmem:[%s10304_s3 + $0x7c0] sm:$0xff] }
 0x493   : > { %6903 = vmatprep.subr.bf16.mxu1 %v6902_v28  ;;  %v5959_v28 = vld [vmem:[%s10304_s3 + $0x7d0] sm:$0xff] }
 0x494   : > { %v6960_v31 = vpack.c.bf16 %v5959_v28, %v5957_v56  ;;  %v6000_v56 = vld [vmem:[%s10304_s3 + $0x918] sm:$0xff] }
 0x496   : > { %6905 = vmatpush1.bf16.msra.mxu1 %v6904_v38  ;;  %v5963_v38 = vld [vmem:[%s10304_s3 + $0x7f0] sm:$0xff] }
 0x497   : > { %6907 = vmatprep.subr.bf16.mxu1 %v6906_v40  ;;  %v5966_v40 = vld [vmem:[%s10304_s3 + $0x808] sm:$0xff]  ;;  %v6964_v42 = vpack.c.bf16 %v5963_v38, %v5961_v36  ;;  %v6004_v36 = vld [vmem:[%s10304_s3 + $0x938] sm:$0xff] }
 0x498   : > { %v6966_v44 = vpack.c.bf16 %v5968_v41, %v5966_v40  ;;  %v6001_v41 = vld [vmem:[%s10304_s3 + $0x920] sm:$0xff] }
 0x49a   : > { %6909 = vmatpush1.bf16.msra.mxu1 %v6908_v45  ;;  %v5967_v45 = vld [vmem:[%s10304_s3 + $0x810] sm:$0xff] }
 0x49b   : > { %6911 = vmatprep.subr.bf16.mxu1 %v6910_v46  ;;  %v5970_v46 = vld [vmem:[%s10304_s3 + $0x828] sm:$0xff]  ;;  %v6968_v48 = vpack.c.bf16 %v5967_v45, %v5965_v24  ;;  %v6008_v24 = vld [vmem:[%s10304_s3 + $0x958] sm:$0xff] }
 0x49c   : > { %v6970_v39 = vpack.c.bf16 %v5972_v32, %v5970_v46  ;;  %v6005_v32 = vld [vmem:[%s10304_s3 + $0x940] sm:$0xff] }
 0x49e   : > { %6913 = vmatpush1.bf16.msra.mxu1 %v6912_v61  ;;  %v5971_v61 = vld [vmem:[%s10304_s3 + $0x830] sm:$0xff] }
 0x49f   : > { %6915 = vmatprep.subr.bf16.mxu1 %v6914_v62  ;;  %v5974_v62 = vld [vmem:[%s10304_s3 + $0x848] sm:$0xff]  ;;  %v6972_v1 = vpack.c.bf16 %v5971_v61, %v5969_v57 }
 0x4a0   : > { %v6974_v34 = vpack.c.bf16 %v5976_v63, %v5974_v62 }
 0x4a2   : > { %6917 = vmatpush1.bf16.msra.mxu1 %v6916_v35  ;;  %v5975_v35 = vld [vmem:[%s10304_s3 + $0x850] sm:$0xff] }
 0x4a3   : > { %6919 = vmatprep.subr.bf16.mxu1 %v6918_v37  ;;  %v5978_v37 = vld [vmem:[%s10304_s3 + $0x868] sm:$0xff]  ;;  %v6976_v49 = vpack.c.bf16 %v5975_v35, %v5973_v30  ;;  %v6021_v35 = vld [vmem:[%s10304_s3 + $0x978] sm:$0xff] }
 0x4a4   : > { %v6978_v51 = vpack.c.bf16 %v5980_v47, %v5978_v37  ;;  %v6019_v30 = vld [vmem:[%s10304_s3 + $0x968] sm:$0xff]  ;;  %v6018_v47 = vld [vmem:[%s10304_s3 + $0x960] sm:$0xff] }
 0x4a5   : > { %v7022_v37 = vpack.c.bf16 %v6021_v35, %v6019_v30  ;;  %v6054_v30 = vld [vmem:[%s10304_s3 + $0xa80] sm:$0xff]  ;;  %v6056_v35 = vld [vmem:[%s10304_s3 + $0xa90] sm:$0xff] }
 0x4a6   : > { %6921 = vmatpush1.bf16.msra.mxu1 %v6920_v58  ;;  %v5979_v58 = vld [vmem:[%s10304_s3 + $0x870] sm:$0xff] }
 0x4a7   : > { %6923 = vmatprep.subr.bf16.mxu1 %v6922_v2  ;;  %v5982_v2 = vld [vmem:[%s10304_s3 + $0x888] sm:$0xff]  ;;  %v6980_v60 = vpack.c.bf16 %v5979_v58, %v5977_v52  ;;  %v6025_v52 = vld [vmem:[%s10304_s3 + $0x998] sm:$0xff] }
 0x4a8   : > { %v9342_v58 = vld [vmem:[%s10305_s4 + $0x18] sm:$0x3f] }
 0x4aa   : > { %6925 = vmatpush1.bf16.msra.mxu1 %v6924_v4  ;;  %v6982_v4 = vpack.c.bf16 %v5984_v3, %v5982_v2 }
 0x4ad   : > { %2880 = vmatmul.mubr.f32.vlgmr.msra.gmra.mrb[40].mxu1 %v8667_v43 }
 0x4ae   : > { %5936 = vmatprep.mubr.msk.f32.mxu1 %vm2082_vm2, %v8687_v50 }
 0x4b1   : > { %2886 = vmatmul.mubr.f32.gmra.mrb[42].mxu1 %v8689_v59 }
 0x4b2   : > { %3396 = vmatprep.mubr.f32.mxu1 %v7519_v7 }
 0x580   : > { %v2881_v5 = vpop.f32.mrb[40].mxu1 }
 0x581   : > { %v2883_v6 = vpop.f32.mrb[41].mxu1 }
 0x584   : > { %v2887_v8 = vpop.f32.mrb[42].mxu1 }
 0x585   : > { %v6929_v9 = vpack.c.bf16 %v2887_v8, %v2881_v5  ;;  %v2889_v10 = vpop.f32.mrb[43].mxu1  ;;  %v5981_v5 = vld [vmem:[%s10304_s3 + $0x880] sm:$0xff]  ;;  %v5986_v8 = vld [vmem:[%s10304_s3 + $0x8a8] sm:$0xff] }
 0x586   : > { %v6926_v11 = vpack.c.bf16 %v2889_v10, %v2883_v6  ;;  %v5983_v6 = vld [vmem:[%s10304_s3 + $0x890] sm:$0xff] }
 0x587   : > { %v6984_v10 = vpack.c.bf16 %v5983_v6, %v5981_v5  ;;  %v6027_v5 = vld [vmem:[%s10304_s3 + $0x9a8] sm:$0xff]  ;;  %v6029_v6 = vld [vmem:[%s10304_s3 + $0x9b8] sm:$0xff] }
 0x588   : > { %6928 = vmatprep.subr.msk.bf16.mxu0 %vm8859_vm5, %v6926_v11 }
 0x589   : > { %6931 = vmatpush1.bf16.msk.msra.mxu0 %vm8859_vm5, %v6929_v9 }
 0x58a   : > { %6934 = vmatprep.subr.msk.bf16.mxu0 %vm8859_vm5, %v8857_v16 }
 0x58c   : > { %5939 = vmatmul.mubr.msk.f32.vlgmr.msra.gmra.mrb[44].mxu0 %vm2445_vm6, %v8870_v25 }
 0x58d   : > { %6937 = vmatpush1.bf16.msk.msra.mxu0 %vm8859_vm5, %v8855_v12  ;;  %3039 = vmatprep.mubr.f32.mxu0 %v7519_v7 }
 0x58e   : > { %6940 = vmatprep.subr.msk.bf16.mxu0 %vm8859_vm5, %v6926_v11 }
 0x594   : > { %5942 = vmatmul.mubr.msk.f32.vlgmr.msra.gmra.mrb[44].mxu0 %vm2445_vm6, %v8884_v54  ;;  %v5949_v54 = vld [vmem:[%s10304_s3 + $0x780] sm:$0xff] }
 0x595   : > { %6943 = vmatpush1.bf16.msk.msra.mxu0 %vm8859_vm5, %v6929_v9  ;;  %3110 = vmatprep.mubr.f32.mxu0 %v7519_v7  ;;  %v5988_v9 = vld [vmem:[%s10304_s3 + $0x8b8] sm:$0xff] }
 0x596   : > { %6946 = vmatprep.subr.msk.bf16.mxu0 %vm8859_vm5, %v8857_v16  ;;  %v5954_v16 = vld [vmem:[%s10304_s3 + $0x7a8] sm:$0xff]  ;;  %v6986_v11 = vpack.c.bf16 %v5988_v9, %v5986_v8  ;;  %v7030_v9 = vpack.c.bf16 %v6029_v6, %v6027_v5  ;;  %v6062_v6 = vld [vmem:[%s10304_s3 + $0xac0] sm:$0xff] }
 0x597   : > { %v6954_v19 = vpack.c.bf16 %v5956_v18, %v5954_v16  ;;  %v5989_v18 = vld [vmem:[%s10304_s3 + $0x8c0] sm:$0xff] }
 0x598   : > { %5945 = vmatmul.mubr.msk.f32.vlgmr.msra.gmra.mrb[46].mxu0 %vm2445_vm6, %v8900_v55 }
 0x599   : > { %6949 = vmatpush1.bf16.msk.msra.mxu0 %vm8859_vm5, %v8855_v12  ;;  %3181 = vmatprep.mubr.f32.mxu0 %v7519_v7  ;;  %v6952_v12 = vpack.c.bf16 %v5951_v15, %v5949_v54  ;;  %v5992_v54 = vld [vmem:[%s10304_s3 + $0x8d8] sm:$0xff]  ;;  %v6988_v15 = vpack.c.bf16 %v5987_v13, %v5985_v0  ;;  %v6031_v0 = vld [vmem:[%s10304_s3 + $0x9c8] sm:$0xff] }
 0x59a   : > { %6951 = vmatprep.subr.bf16.mxu0 %v6950_v14  ;;  %v5990_v14 = vld [vmem:[%s10304_s3 + $0x8c8] sm:$0xff]  ;;  %v6033_v13 = vld [vmem:[%s10304_s3 + $0x9d8] sm:$0xff] }
 0x59b   : > { %v6990_v16 = vpack.c.bf16 %v5992_v54, %v5990_v14  ;;  %v7034_v14 = vpack.c.bf16 %v6033_v13, %v6031_v0  ;;  %v6030_v54 = vld [vmem:[%s10304_s3 + $0x9c0] sm:$0xff] }
 0x59c   : > { %v6066_v13 = vld [vmem:[%s10304_s3 + $0xae0] sm:$0xff] }
 0x5a0   : > { %5948 = vmatmul.mubr.msk.f32.vlgmr.msra.gmra.mrb[46].mxu0 %vm2445_vm6, %v8870_v25  ;;  %v5964_v25 = vld [vmem:[%s10304_s3 + $0x7f8] sm:$0xff] }
 0x5a1   : > { %6953 = vmatpush1.bf16.msra.mxu0 %v6952_v12  ;;  %6009 = vmatprep.mubr.msk.f32.mxu0 %vm2082_vm2, %v8665_v17  ;;  %v6962_v33 = vpack.c.bf16 %v5964_v25, %v5962_v29  ;;  %v5991_v12 = vld [vmem:[%s10304_s3 + $0x8d0] sm:$0xff]  ;;  %v5997_v25 = vld [vmem:[%s10304_s3 + $0x900] sm:$0xff] }
 0x5a2   : > { %6955 = vmatprep.subr.bf16.mxu0 %v6954_v19  ;;  %v5994_v19 = vld [vmem:[%s10304_s3 + $0x8e8] sm:$0xff]  ;;  %v6992_v21 = vpack.c.bf16 %v5991_v12, %v5989_v18  ;;  %v6037_v18 = vld [vmem:[%s10304_s3 + $0x9f8] sm:$0xff] }
 0x5a3   : > { %v6994_v22 = vpack.c.bf16 %v5996_v20, %v5994_v19  ;;  %v6034_v20 = vld [vmem:[%s10304_s3 + $0x9e0] sm:$0xff] }
 0x5a5   : > { %6957 = vmatpush1.bf16.msra.mxu0 %v6956_v26  ;;  %v5995_v26 = vld [vmem:[%s10304_s3 + $0x8f0] sm:$0xff] }
 0x5a6   : > { %6959 = vmatprep.subr.bf16.mxu0 %v6958_v27  ;;  %v5998_v27 = vld [vmem:[%s10304_s3 + $0x908] sm:$0xff]  ;;  %v6996_v28 = vpack.c.bf16 %v5995_v26, %v5993_v23  ;;  %v6041_v23 = vld [vmem:[%s10304_s3 + $0xa18] sm:$0xff] }
 0x5a7   : > { %v6998_v29 = vpack.c.bf16 %v6000_v56, %v5998_v27  ;;  %v6038_v56 = vld [vmem:[%s10304_s3 + $0xa00] sm:$0xff] }
 0x5a9   : > { %6961 = vmatpush1.bf16.msra.mxu0 %v6960_v31  ;;  %v5999_v31 = vld [vmem:[%s10304_s3 + $0x910] sm:$0xff] }
 0x5aa   : > { %6963 = vmatprep.subr.bf16.mxu0 %v6962_v33  ;;  %v6002_v33 = vld [vmem:[%s10304_s3 + $0x928] sm:$0xff]  ;;  %v7000_v38 = vpack.c.bf16 %v5999_v31, %v5997_v25  ;;  %v6045_v25 = vld [vmem:[%s10304_s3 + $0xa38] sm:$0xff] }
 0x5ab   : > { %v7002_v40 = vpack.c.bf16 %v6004_v36, %v6002_v33  ;;  %v6042_v36 = vld [vmem:[%s10304_s3 + $0xa20] sm:$0xff] }
 0x5ad   : > { %6965 = vmatpush1.bf16.msra.mxu0 %v6964_v42  ;;  %v6003_v42 = vld [vmem:[%s10304_s3 + $0x930] sm:$0xff] }
 0x5ae   : > { %6967 = vmatprep.subr.bf16.mxu0 %v6966_v44  ;;  %v6006_v44 = vld [vmem:[%s10304_s3 + $0x948] sm:$0xff]  ;;  %v7004_v45 = vpack.c.bf16 %v6003_v42, %v6001_v41  ;;  %v6049_v41 = vld [vmem:[%s10304_s3 + $0xa58] sm:$0xff] }
 0x5af   : > { %v7006_v46 = vpack.c.bf16 %v6008_v24, %v6006_v44  ;;  %v6046_v24 = vld [vmem:[%s10304_s3 + $0xa40] sm:$0xff] }
 0x5b1   : > { %6969 = vmatpush1.bf16.msra.mxu0 %v6968_v48  ;;  %v6007_v48 = vld [vmem:[%s10304_s3 + $0x950] sm:$0xff] }
 0x5b2   : > { %6971 = vmatprep.subr.bf16.mxu0 %v6970_v39  ;;  %v7008_v39 = vpack.c.bf16 %v6007_v48, %v6005_v32  ;;  %v6053_v32 = vld [vmem:[%s10304_s3 + $0xa78] sm:$0xff] }
 0x5b5   : > { %6973 = vmatpush1.bf16.msra.mxu0 %v6972_v1 }
 0x5b6   : > { %6975 = vmatprep.subr.bf16.mxu0 %v6974_v34 }
 0x5b9   : > { %6977 = vmatpush1.bf16.msra.mxu0 %v6976_v49  ;;  %v6020_v49 = vld [vmem:[%s10304_s3 + $0x970] sm:$0xff] }
 0x5ba   : > { %6979 = vmatprep.subr.bf16.mxu0 %v6978_v51  ;;  %v6023_v51 = vld [vmem:[%s10304_s3 + $0x988] sm:$0xff]  ;;  %v7024_v2 = vpack.c.bf16 %v6020_v49, %v6018_v47  ;;  %v6061_v47 = vld [vmem:[%s10304_s3 + $0xab8] sm:$0xff]  ;;  %v7060_v49 = vpack.c.bf16 %v6056_v35, %v6054_v30 }
 0x5bb   : > { %v7026_v3 = vpack.c.bf16 %v6025_v52, %v6023_v51  ;;  %v6058_v52 = vld [vmem:[%s10304_s3 + $0xaa0] sm:$0xff] }
 0x5bd   : > { %6981 = vmatpush1.bf16.msra.mxu0 %v6980_v60  ;;  %v6022_v60 = vld [vmem:[%s10304_s3 + $0x980] sm:$0xff] }
 0x5be   : > { %6983 = vmatprep.subr.bf16.mxu0 %v6982_v4  ;;  %v6024_v4 = vld [vmem:[%s10304_s3 + $0x990] sm:$0xff] }
 0x5bf   : > { %v7028_v8 = vpack.c.bf16 %v6024_v4, %v6022_v60  ;;  %v6065_v60 = vld [vmem:[%s10304_s3 + $0xad8] sm:$0xff] }
 0x5c1   : > { %6985 = vmatpush1.bf16.msra.mxu0 %v6984_v10  ;;  %v6026_v10 = vld [vmem:[%s10304_s3 + $0x9a0] sm:$0xff] }
 0x5c2   : > { %6987 = vmatprep.subr.bf16.mxu0 %v6986_v11  ;;  %v6028_v11 = vld [vmem:[%s10304_s3 + $0x9b0] sm:$0xff] }
 0x5c5   : > { %6989 = vmatpush1.bf16.msra.mxu0 %v6988_v15  ;;  %v6032_v15 = vld [vmem:[%s10304_s3 + $0x9d0] sm:$0xff] }
 0x5c6   : > { %6991 = vmatprep.subr.bf16.mxu0 %v6990_v16  ;;  %v6035_v16 = vld [vmem:[%s10304_s3 + $0x9e8] sm:$0xff]  ;;  %v7036_v12 = vpack.c.bf16 %v6032_v15, %v6030_v54  ;;  %v6073_v54 = vld [vmem:[%s10304_s3 + $0xb18] sm:$0xff] }
 0x5c7   : > { %v7038_v19 = vpack.c.bf16 %v6037_v18, %v6035_v16  ;;  %v6070_v18 = vld [vmem:[%s10304_s3 + $0xb00] sm:$0xff] }
 0x5c9   : > { %6993 = vmatpush1.bf16.msra.mxu0 %v6992_v21  ;;  %v6036_v21 = vld [vmem:[%s10304_s3 + $0x9f0] sm:$0xff] }
 0x5ca   : > { %6995 = vmatprep.subr.bf16.mxu0 %v6994_v22  ;;  %v6039_v22 = vld [vmem:[%s10304_s3 + $0xa08] sm:$0xff]  ;;  %v7040_v26 = vpack.c.bf16 %v6036_v21, %v6034_v20  ;;  %v6077_v20 = vld [vmem:[%s10304_s3 + $0xb38] sm:$0xff] }
 0x5cb   : > { %v7042_v27 = vpack.c.bf16 %v6041_v23, %v6039_v22  ;;  %v6074_v23 = vld [vmem:[%s10304_s3 + $0xb20] sm:$0xff] }
 0x5cd   : > { %6997 = vmatpush1.bf16.msra.mxu0 %v6996_v28  ;;  %v6040_v28 = vld [vmem:[%s10304_s3 + $0xa10] sm:$0xff] }
 0x5ce   : > { %6999 = vmatprep.subr.bf16.mxu0 %v6998_v29  ;;  %v6043_v29 = vld [vmem:[%s10304_s3 + $0xa28] sm:$0xff]  ;;  %v7044_v31 = vpack.c.bf16 %v6040_v28, %v6038_v56  ;;  %v7521_v56 = vmov 0.0|0.0   ;;  %v6088_v28 = vld [vmem:[%s10306_s5 + $0xc0] sm:$0xff] }
 0x5cf   : > { %v7046_v33 = vpack.c.bf16 %v6045_v25, %v6043_v29  ;;  %v6089_v29 = vld [vmem:[%s10306_s5 + $0xc8] sm:$0xff] }
 0x5d0   : > { %v7131_v25 = vpack.c.bf16 %v6089_v29, %v6088_v28  ;;  %v3798_v28 = vld [vmem:[%s10306_s5 + $0x88] sm:$0xff] }
 0x5d1   : > { %7001 = vmatpush1.bf16.msra.mxu0 %v7000_v38  ;;  %v6044_v38 = vld [vmem:[%s10304_s3 + $0xa30] sm:$0xff] }
 0x5d2   : > { %7003 = vmatprep.subr.bf16.mxu0 %v7002_v40  ;;  %v6047_v40 = vld [vmem:[%s10304_s3 + $0xa48] sm:$0xff]  ;;  %v7048_v42 = vpack.c.bf16 %v6044_v38, %v6042_v36  ;;  %v6094_v38 = vld [vmem:[%s10306_s5 + $0xf0] sm:$0xff] }
 0x5d3   : > { %v7050_v44 = vpack.c.bf16 %v6049_v41, %v6047_v40  ;;  %v6095_v40 = vld [vmem:[%s10306_s5 + $0xf8] sm:$0xff] }
 0x5d4   : > { %v7140_v41 = vpack.c.bf16 %v6095_v40, %v6094_v38  ;;  %v3802_v38 = vld [vmem:[%s10306_s5 + $0xa8] sm:$0xff] }
 0x5d5   : > { %7005 = vmatpush1.bf16.msra.mxu0 %v7004_v45  ;;  %v6048_v45 = vld [vmem:[%s10304_s3 + $0xa50] sm:$0xff] }
 0x5d6   : > { %7007 = vmatprep.subr.bf16.mxu0 %v7006_v46  ;;  %v6051_v46 = vld [vmem:[%s10304_s3 + $0xa68] sm:$0xff]  ;;  %v7052_v48 = vpack.c.bf16 %v6048_v45, %v6046_v24  ;;  %v6098_v45 = vld [vmem:[%s10306_s5 + $0x110] sm:$0xff] }
 0x5d9   : > { %7009 = vmatpush1.bf16.msra.mxu0 %v7008_v39  ;;  %v7054_v39 = vpack.c.bf16 %v6053_v32, %v6051_v46  ;;  %v6099_v46 = vld [vmem:[%s10306_s5 + $0x118] sm:$0xff] }
 0x5da   : > { %v7146_v32 = vpack.c.bf16 %v6099_v46, %v6098_v45  ;;  %v3804_v45 = vld [vmem:[%s10306_s5 + $0xb8] sm:$0xff] }
 0x5dc   : > { %3314 = vmatmul.mubr.f32.vlgmr.msra.gmra.mrb[48].mxu0 %v8667_v43 }
 0x5dd   : > { %6010 = vmatprep.mubr.msk.f32.mxu0 %vm2082_vm2, %v8687_v50 }
 0x5e0   : > { %3320 = vmatmul.mubr.f32.gmra.mrb[50].mxu0 %v8689_v59 }
 0x5e1   : > { %3691 = vmatprep.mubr.f32.mxu0 %v7519_v7 }
 0x6af   : > { %v3315_v57 = vpop.f32.mrb[48].mxu0 }
 0x6b0   : > { %v3317_v61 = vpop.f32.mrb[49].mxu0 }
 0x6b3   : > { %v3321_v62 = vpop.f32.mrb[50].mxu0 }
 0x6b4   : > { %v7013_v63 = vpack.c.bf16 %v3321_v62, %v3315_v57  ;;  %v3323_v1 = vpop.f32.mrb[51].mxu0  ;;  %v6050_v57 = vld [vmem:[%s10304_s3 + $0xa60] sm:$0xff]  ;;  %v6055_v62 = vld [vmem:[%s10304_s3 + $0xa88] sm:$0xff] }
 0x6b5   : > { %v7010_v34 = vpack.c.bf16 %v3323_v1, %v3317_v61  ;;  %v6052_v61 = vld [vmem:[%s10304_s3 + $0xa70] sm:$0xff] }
 0x6b6   : > { %v7056_v1 = vpack.c.bf16 %v6052_v61, %v6050_v57  ;;  %v6102_v61 = vld [vmem:[%s10306_s5 + $0x130] sm:$0xff] }
 0x6b7   : > { %7012 = vmatprep.subr.msk.bf16.mxu1 %vm8859_vm5, %v7010_v34 }
 0x6b8   : > { %7015 = vmatpush1.bf16.msk.msra.mxu1 %vm8859_vm5, %v7013_v63 }
 0x6b9   : > { %7018 = vmatprep.subr.msk.bf16.mxu1 %vm8859_vm5, %v7010_v34 }
 0x6bb   : > { %6013 = vmatmul.mubr.msk.f32.vlgmr.msra.gmra.mrb[36].mxu1 %vm2445_vm6, %v8900_v55 }
 0x6bc   : > { %7021 = vmatpush1.bf16.msk.msra.mxu1 %vm8859_vm5, %v7013_v63  ;;  %3474 = vmatprep.mubr.f32.mxu1 %v7519_v7  ;;  %v6057_v63 = vld [vmem:[%s10304_s3 + $0xa98] sm:$0xff] }
 0x6bd   : > { %7023 = vmatprep.subr.bf16.mxu1 %v7022_v37  ;;  %v7058_v34 = vpack.c.bf16 %v6057_v63, %v6055_v62  ;;  %v6059_v37 = vld [vmem:[%s10304_s3 + $0xaa8] sm:$0xff]  ;;  %v6103_v62 = vld [vmem:[%s10306_s5 + $0x138] sm:$0xff] }
 0x6be   : > { %v7062_v51 = vpack.c.bf16 %v6061_v47, %v6059_v37  ;;  %v7152_v63 = vpack.c.bf16 %v6103_v62, %v6102_v61 }
 0x6bf   : > { %6017 = vmatmul.mubr.msk.f32.vlgmr.msra.gmra.mrb[38].mxu1 %vm2445_vm6, %v9342_v58 }
 0x6c0   : > { %7025 = vmatpush1.bf16.msra.mxu1 %v7024_v2  ;;  %6078 = vmatprep.mubr.msk.f32.mxu1 %vm2082_vm2, %v8665_v17  ;;  %v7032_v17 = vpack.c.bf16 %v6028_v11, %v6026_v10  ;;  %v6060_v2 = vld [vmem:[%s10304_s3 + $0xab0] sm:$0xff]  ;;  %v6069_v10 = vld [vmem:[%s10304_s3 + $0xaf8] sm:$0xff] }
 0x6c1   : > { %7027 = vmatprep.subr.bf16.mxu1 %v7026_v3  ;;  %v6063_v3 = vld [vmem:[%s10304_s3 + $0xac8] sm:$0xff]  ;;  %v7064_v4 = vpack.c.bf16 %v6060_v2, %v6058_v52 }
 0x6c2   : > { %v7066_v5 = vpack.c.bf16 %v6065_v60, %v6063_v3 }
 0x6c4   : > { %7029 = vmatpush1.bf16.msra.mxu1 %v7028_v8  ;;  %v6064_v8 = vld [vmem:[%s10304_s3 + $0xad0] sm:$0xff] }
 0x6c5   : > { %7031 = vmatprep.subr.bf16.mxu1 %v7030_v9  ;;  %v6067_v9 = vld [vmem:[%s10304_s3 + $0xae8] sm:$0xff]  ;;  %v7068_v11 = vpack.c.bf16 %v6064_v8, %v6062_v6 }
 0x6c6   : > { %v7070_v0 = vpack.c.bf16 %v6069_v10, %v6067_v9  ;;  %v3782_v6 = vld [vmem:[%s10306_s5 + $0x8] sm:$0xff]  ;;  %v3783_v9 = vld [vmem:[%s10306_s5 + $0x10] sm:$0xff]  ;;  %v3784_v10 = vld [vmem:[%s10306_s5 + $0x18] sm:$0xff] }
 0x6c8   : > { %7033 = vmatpush1.bf16.msra.mxu1 %v7032_v17  ;;  %v6068_v17 = vld [vmem:[%s10304_s3 + $0xaf0] sm:$0xff] }
 0x6c9   : > { %7035 = vmatprep.subr.bf16.mxu1 %v7034_v14  ;;  %v6071_v14 = vld [vmem:[%s10304_s3 + $0xb08] sm:$0xff]  ;;  %v7072_v15 = vpack.c.bf16 %v6068_v17, %v6066_v13  ;;  %v3788_v13 = vld [vmem:[%s10306_s5 + $0x38] sm:$0xff] }
 0x6ca   : > { %v7074_v16 = vpack.c.bf16 %v6073_v54, %v6071_v14  ;;  %v3789_v14 = vld [vmem:[%s10306_s5 + $0x40] sm:$0xff]  ;;  %v3790_v54 = vld [vmem:[%s10306_s5 + $0x48] sm:$0xff] }
 0x6cc   : > { %7037 = vmatpush1.bf16.msra.mxu1 %v7036_v12  ;;  %v6072_v12 = vld [vmem:[%s10304_s3 + $0xb10] sm:$0xff] }
 0x6cd   : > { %7039 = vmatprep.subr.bf16.mxu1 %v7038_v19  ;;  %v6075_v19 = vld [vmem:[%s10304_s3 + $0xb28] sm:$0xff]  ;;  %v7076_v21 = vpack.c.bf16 %v6072_v12, %v6070_v18  ;;  %v3792_v18 = vld [vmem:[%s10306_s5 + $0x58] sm:$0xff] }
 0x6ce   : > { %v7078_v22 = vpack.c.bf16 %v6077_v20, %v6075_v19  ;;  %v3793_v19 = vld [vmem:[%s10306_s5 + $0x60] sm:$0xff]  ;;  %v3794_v20 = vld [vmem:[%s10306_s5 + $0x68] sm:$0xff] }
 0x6d0   : > { %7041 = vmatpush1.bf16.msra.mxu1 %v7040_v26  ;;  %v6076_v26 = vld [vmem:[%s10304_s3 + $0xb30] sm:$0xff] }
 0x6d1   : > { %7043 = vmatprep.subr.bf16.mxu1 %v7042_v27  ;;  %v7080_v27 = vpack.c.bf16 %v6076_v26, %v6074_v23  ;;  %v3796_v23 = vld [vmem:[%s10306_s5 + $0x78] sm:$0xff] }
 0x6d4   : > { %7045 = vmatpush1.bf16.msra.mxu1 %v7044_v31  ;;  %v6092_v31 = vld [vmem:[%s10306_s5 + $0xe0] sm:$0xff] }
 0x6d5   : > { %7047 = vmatprep.subr.bf16.mxu1 %v7046_v33  ;;  %v6093_v33 = vld [vmem:[%s10306_s5 + $0xe8] sm:$0xff] }
 0x6d6   : > { %v7137_v36 = vpack.c.bf16 %v6093_v33, %v6092_v31  ;;  %v6107_v31 = vld [vmem:[%s10306_s5 + $0x158] sm:$0xff] }
 0x6d8   : > { %7049 = vmatpush1.bf16.msra.mxu1 %v7048_v42  ;;  %v6096_v42 = vld [vmem:[%s10306_s5 + $0x100] sm:$0xff] }
 0x6d9   : > { %7051 = vmatprep.subr.bf16.mxu1 %v7050_v44  ;;  %v6097_v44 = vld [vmem:[%s10306_s5 + $0x108] sm:$0xff] }
 0x6da   : > { %v7143_v24 = vpack.c.bf16 %v6097_v44, %v6096_v42  ;;  %v6109_v42 = vld [vmem:[%s10306_s5 + $0x168] sm:$0xff] }
 0x6dc   : > { %7053 = vmatpush1.bf16.msra.mxu1 %v7052_v48  ;;  %v6100_v48 = vld [vmem:[%s10306_s5 + $0x120] sm:$0xff] }
 0x6dd   : > { %7055 = vmatprep.subr.bf16.mxu1 %v7054_v39  ;;  %v6101_v39 = vld [vmem:[%s10306_s5 + $0x128] sm:$0xff] }
 0x6de   : > { %v7149_v57 = vpack.c.bf16 %v6101_v39, %v6100_v48  ;;  %v6111_v48 = vld [vmem:[%s10306_s5 + $0x178] sm:$0xff] }
 0x6e0   : > { %7057 = vmatpush1.bf16.msra.mxu1 %v7056_v1  ;;  %v6104_v1 = vld [vmem:[%s10306_s5 + $0x140] sm:$0xff] }
 0x6e1   : > { %7059 = vmatprep.subr.bf16.mxu1 %v7058_v34  ;;  %v6105_v34 = vld [vmem:[%s10306_s5 + $0x148] sm:$0xff] }
 0x6e2   : > { %v7155_v30 = vpack.c.bf16 %v6105_v34, %v6104_v1 }
 0x6e4   : > { %7061 = vmatpush1.bf16.msra.mxu1 %v7060_v49 }
 0x6e5   : > { %7063 = vmatprep.subr.bf16.mxu1 %v7062_v51 }
 0x6e8   : > { %7065 = vmatpush1.bf16.msra.mxu1 %v7064_v4 }
 0x6e9   : > { %7067 = vmatprep.subr.bf16.mxu1 %v7066_v5  ;;  %v3781_v5 = vld [vmem:[%s10306_s5] sm:$0xff] }
 0x6ea   : > { %v7095_v8 = vpack.c.bf16 %v3782_v6, %v3781_v5  ;;  %v6117_v6 = vld [vmem:[%s10306_s5 + $0x1a0] sm:$0xff] }
 0x6ec   : > { %7069 = vmatpush1.bf16.msra.mxu1 %v7068_v11  ;;  %v3786_v11 = vld [vmem:[%s10306_s5 + $0x28] sm:$0xff] }
 0x6ed   : > { %7071 = vmatprep.subr.bf16.mxu1 %v7070_v0  ;;  %v7101_v0 = vpack.c.bf16 %v3786_v11, %v3785_v53  ;;  %v6121_v11 = vld [vmem:[%s10306_s5 + $0x1c0] sm:$0xff] }
 0x6f0   : > { %7073 = vmatpush1.bf16.msra.mxu1 %v7072_v15  ;;  %v7107_v15 = vpack.c.bf16 %v3790_v54, %v3789_v14  ;;  %v6125_v54 = vld [vmem:[%s10306_s5 + $0x1e0] sm:$0xff] }
 0x6f1   : > { %7075 = vmatprep.subr.bf16.mxu1 %v7074_v16  ;;  %v3791_v16 = vld [vmem:[%s10306_s5 + $0x50] sm:$0xff] }
 0x6f2   : > { %v7110_v12 = vpack.c.bf16 %v3792_v18, %v3791_v16  ;;  %v6127_v18 = vld [vmem:[%s10306_s5 + $0x1f0] sm:$0xff] }
 0x6f4   : > { %7077 = vmatpush1.bf16.msra.mxu1 %v7076_v21  ;;  %v7113_v21 = vpack.c.bf16 %v3794_v20, %v3793_v19  ;;  %v6129_v20 = vld [vmem:[%s10306_s5 + $0x200] sm:$0xff] }
 0x6f5   : > { %7079 = vmatprep.subr.bf16.mxu1 %v7078_v22  ;;  %v3795_v22 = vld [vmem:[%s10306_s5 + $0x70] sm:$0xff] }
 0x6f6   : > { %v7116_v26 = vpack.c.bf16 %v3796_v23, %v3795_v22  ;;  %v6131_v23 = vld [vmem:[%s10306_s5 + $0x210] sm:$0xff] }
 0x6f8   : > { %7081 = vmatpush1.bf16.msra.mxu1 %v7080_v27  ;;  %v3797_v27 = vld [vmem:[%s10306_s5 + $0x80] sm:$0xff] }
 0x6f9   : > { %7130 = vmatprep.subr.bf16.mxu1 %v7521_v56  ;;  %v7119_v29 = vpack.c.bf16 %v3798_v28, %v3797_v27  ;;  %v6133_v28 = vld [vmem:[%s10306_s5 + $0x220] sm:$0xff] }
 0x6fb   : > { %3609 = vmatmul.mubr.f32.vlgmr.msra.gmra.mrb[44].mxu1 %v8667_v43  ;;  %v6090_v43 = vld [vmem:[%s10306_s5 + $0xd0] sm:$0xff] }
 0x6fc   : > { %6079 = vmatprep.mubr.msk.f32.mxu1 %vm2082_vm2, %v8687_v50  ;;  %7132 = vmatpush1.bf16.msra.mxu1 %v7131_v25  ;;  %v6091_v50 = vld [vmem:[%s10306_s5 + $0xd8] sm:$0xff]  ;;  %v3799_v25 = vld [vmem:[%s10306_s5 + $0x90] sm:$0xff] }
 0x6fd   : > { %7133 = vmatprep.subr.bf16.mxu1 %v7521_v56 }
 0x6ff   : > { %3615 = vmatmul.mubr.f32.gmra.mrb[46].mxu1 %v8689_v59  ;;  %v7134_v59 = vpack.c.bf16 %v6091_v50, %v6090_v43  ;;  %v3800_v43 = vld [vmem:[%s10306_s5 + $0x98] sm:$0xff] }
 0x700   : > { %v7122_v50 = vpack.c.bf16 %v3800_v43, %v3799_v25  ;;  %v6135_v43 = vld [vmem:[%s10306_s5 + $0x230] sm:$0xff] }
 0x701   : > { %7135 = vmatpush1.bf16.msra.mxu1 %v7134_v59  ;;  %v6106_v59 = vld [vmem:[%s10306_s5 + $0x150] sm:$0xff] }
 0x702   : > { %7136 = vmatprep.subr.bf16.mxu1 %v7521_v56  ;;  %v7158_v33 = vpack.c.bf16 %v6107_v31, %v6106_v59 }
 0x705   : > { %7138 = vmatpush1.bf16.msra.mxu1 %v7137_v36  ;;  %v3801_v36 = vld [vmem:[%s10306_s5 + $0xa0] sm:$0xff] }
 0x706   : > { %7139 = vmatprep.subr.bf16.mxu1 %v7521_v56  ;;  %v7125_v40 = vpack.c.bf16 %v3802_v38, %v3801_v36 }
 0x709   : > { %7141 = vmatpush1.bf16.msra.mxu1 %v7140_v41  ;;  %v6108_v41 = vld [vmem:[%s10306_s5 + $0x160] sm:$0xff] }
 0x70a   : > { %7142 = vmatprep.subr.bf16.mxu1 %v7521_v56  ;;  %v7161_v44 = vpack.c.bf16 %v6109_v42, %v6108_v41 }
 0x70d   : > { %7144 = vmatpush1.bf16.msra.mxu1 %v7143_v24  ;;  %v3803_v24 = vld [vmem:[%s10306_s5 + $0xb0] sm:$0xff] }
 0x70e   : > { %7145 = vmatprep.subr.bf16.mxu1 %v7521_v56  ;;  %v7128_v46 = vpack.c.bf16 %v3804_v45, %v3803_v24  ;;  %v9838_v24 = vld [vmem:[%s10307_s6 + $0x4] sm:$0x3] }
 0x70f   : > { %v6147_v45 = vld [vmem:[%s10306_s5 + $0x240] sm:$0xff] }
 0x711   : > { %7147 = vmatpush1.bf16.msra.mxu1 %v7146_v32  ;;  %v6110_v32 = vld [vmem:[%s10306_s5 + $0x170] sm:$0xff] }
 0x712   : > { %7148 = vmatprep.subr.bf16.mxu1 %v7521_v56  ;;  %v7164_v39 = vpack.c.bf16 %v6111_v48, %v6110_v32  ;;  %v6149_v48 = vld [vmem:[%s10306_s5 + $0x250] sm:$0xff] }
 0x715   : > { %7150 = vmatpush1.bf16.msra.mxu1 %v7149_v57 }
 0x716   : > { %7151 = vmatprep.subr.bf16.mxu1 %v7521_v56 }
 0x719   : > { %7153 = vmatpush1.bf16.msra.mxu1 %v7152_v63 }
 0x71a   : > { %7154 = vmatprep.subr.bf16.mxu1 %v7521_v56 }
 0x71d   : > { %7156 = vmatpush1.bf16.msra.mxu1 %v7155_v30 }
 0x71e   : > { %7157 = vmatprep.subr.bf16.mxu1 %v7521_v56 }
 0x721   : > { %7159 = vmatpush1.bf16.msra.mxu1 %v7158_v33 }
 0x722   : > { %7160 = vmatprep.subr.bf16.mxu1 %v7521_v56 }
 0x725   : > { %7162 = vmatpush1.bf16.msra.mxu1 %v7161_v44  ;;  %v9828_v44 = vld [vmem:[%s10307_s6] sm:$0x3] }
 0x726   : > { %7163 = vmatprep.subr.bf16.mxu1 %v7521_v56 }
 0x729   : > { %7165 = vmatpush1.bf16.msra.mxu1 %v7164_v39  ;;  %v6150_v39 = vld [vmem:[%s10306_s5 + $0x258] sm:$0xff] }
 0x72a   : > { %6305 = vmatprep.subr.mxu1 %v7519_v7 }
 0x78e   : > { %v9578_v35 = vpop.f32.mrb[36].mxu1 }
 0x78f   : > { %v9580_v37 = vpop.f32.mrb[37].mxu1 }
 0x792   : > { %v9582_v47 = vpop.f32.mrb[38].mxu1 }
 0x793   : > { %v9584_v49 = vpop.f32.mrb[39].mxu1 }
 0x7ce   : > { %v3610_v51 = vpop.f32.mrb[44].mxu1 }
 0x7cf   : > { %v3612_v52 = vpop.f32.mrb[45].mxu1 }
 0x7d2   : > { %v3616_v2 = vpop.f32.mrb[46].mxu1 }
 0x7d3   : > { %v7085_v3 = vpack.c.bf16 %v3616_v2, %v3610_v51  ;;  %v3618_v60 = vpop.f32.mrb[47].mxu1  ;;  %v6113_v2 = vld [vmem:[%s10306_s5 + $0x180] sm:$0xff] }
 0x7d4   : > { %v7082_v4 = vpack.c.bf16 %v3618_v60, %v3612_v52 }
 0x7d6   : > { %7084 = vmatprep.subr.msk.bf16.mxu0 %vm8859_vm5, %v7082_v4 }
 0x7d7   : > { %7087 = vmatpush1.bf16.msk.msra.mxu0 %vm8859_vm5, %v7085_v3 }
 0x7d8   : > { %7090 = vmatprep.subr.msk.bf16.mxu0 %vm8859_vm5, %v7082_v4 }
 0x7da   : > { %6082 = vmatmul.mubr.msk.f32.vlgmr.msra.gmra.mrb[44].mxu0 %vm2445_vm6, %v8900_v55  ;;  %v7098_v55 = vpack.c.bf16 %v3784_v10, %v3783_v9  ;;  %v6119_v10 = vld [vmem:[%s10306_s5 + $0x1b0] sm:$0xff] }
 0x7db   : > { %7093 = vmatpush1.bf16.msk.msra.mxu0 %vm8859_vm5, %v7085_v3  ;;  %3764 = vmatprep.mubr.f32.mxu0 %v7519_v7  ;;  %v6114_v3 = vld [vmem:[%s10306_s5 + $0x188] sm:$0xff] }
 0x7dc   : > { %7094 = vmatprep.subr.bf16.mxu0 %v7521_v56 }
 0x7de   : > { %6085 = vmatmul.mubr.msk.f32.vlgmr.msra.gmra.mrb[46].mxu0 %vm2445_vm6, %v9342_v58  ;;  %v3787_v58 = vld [vmem:[%s10306_s5 + $0x30] sm:$0xff] }
 0x7df   : > { %7096 = vmatpush1.bf16.msra.mxu0 %v7095_v8  ;;  %v7104_v17 = vpack.c.bf16 %v3788_v13, %v3787_v58  ;;  %v6118_v8 = vld [vmem:[%s10306_s5 + $0x1a8] sm:$0xff]  ;;  %v6123_v13 = vld [vmem:[%s10306_s5 + $0x1d0] sm:$0xff] }
 0x7e0   : > { %7097 = vmatprep.subr.bf16.mxu0 %v7521_v56  ;;  %v7173_v9 = vpack.c.bf16 %v6118_v8, %v6117_v6  ;;  %v6161_v6 = vld [vmem:[%s10306_s5 + $0x2b0] sm:$0xff]  ;;  %v6162_v8 = vld [vmem:[%s10306_s5 + $0x2b8] sm:$0xff] }
 0x7e3   : > { %7099 = vmatpush1.bf16.msra.mxu0 %v7098_v55  ;;  %v6120_v55 = vld [vmem:[%s10306_s5 + $0x1b8] sm:$0xff] }
 0x7e4   : > { %7100 = vmatprep.subr.bf16.mxu0 %v7521_v56  ;;  %v7176_v53 = vpack.c.bf16 %v6120_v55, %v6119_v10  ;;  %v6163_v10 = vld [vmem:[%s10306_s5 + $0x2c0] sm:$0xff]  ;;  %v6164_v55 = vld [vmem:[%s10306_s5 + $0x2c8] sm:$0xff] }
 0x7e7   : > { %7102 = vmatpush1.bf16.msra.mxu0 %v7101_v0  ;;  %v6122_v0 = vld [vmem:[%s10306_s5 + $0x1c8] sm:$0xff] }
 0x7e8   : > { %7103 = vmatprep.subr.bf16.mxu0 %v7521_v56  ;;  %v7179_v58 = vpack.c.bf16 %v6122_v0, %v6121_v11  ;;  %v6165_v11 = vld [vmem:[%s10306_s5 + $0x2d0] sm:$0xff]  ;;  %v6166_v0 = vld [vmem:[%s10306_s5 + $0x2d8] sm:$0xff] }
 0x7eb   : > { %7105 = vmatpush1.bf16.msra.mxu0 %v7104_v17  ;;  %v6124_v17 = vld [vmem:[%s10306_s5 + $0x1d8] sm:$0xff] }
 0x7ec   : > { %7106 = vmatprep.subr.bf16.mxu0 %v7521_v56  ;;  %v7182_v14 = vpack.c.bf16 %v6124_v17, %v6123_v13  ;;  %v6167_v13 = vld [vmem:[%s10306_s5 + $0x2e0] sm:$0xff]  ;;  %v6168_v17 = vld [vmem:[%s10306_s5 + $0x2e8] sm:$0xff] }
 0x7ef   : > { %7108 = vmatpush1.bf16.msra.mxu0 %v7107_v15  ;;  %v6126_v15 = vld [vmem:[%s10306_s5 + $0x1e8] sm:$0xff] }
 0x7f0   : > { %7109 = vmatprep.subr.bf16.mxu0 %v7521_v56  ;;  %v7185_v16 = vpack.c.bf16 %v6126_v15, %v6125_v54  ;;  %v6169_v54 = vld [vmem:[%s10306_s5 + $0x2f0] sm:$0xff]  ;;  %v6170_v15 = vld [vmem:[%s10306_s5 + $0x2f8] sm:$0xff] }
 0x7f3   : > { %7111 = vmatpush1.bf16.msra.mxu0 %v7110_v12  ;;  %v6128_v12 = vld [vmem:[%s10306_s5 + $0x1f8] sm:$0xff] }
 0x7f4   : > { %7112 = vmatprep.subr.bf16.mxu0 %v7521_v56  ;;  %v7188_v19 = vpack.c.bf16 %v6128_v12, %v6127_v18 }
 0x7f7   : > { %7114 = vmatpush1.bf16.msra.mxu0 %v7113_v21  ;;  %v6130_v21 = vld [vmem:[%s10306_s5 + $0x208] sm:$0xff] }
 0x7f8   : > { %7115 = vmatprep.subr.bf16.mxu0 %v7521_v56  ;;  %v7191_v22 = vpack.c.bf16 %v6130_v21, %v6129_v20  ;;  %v6181_v20 = vld [vmem:[%s10306_s5 + $0x308] sm:$0xff] }
 0x7fb   : > { %7117 = vmatpush1.bf16.msra.mxu0 %v7116_v26  ;;  %v6132_v26 = vld [vmem:[%s10306_s5 + $0x218] sm:$0xff] }
 0x7fc   : > { %7118 = vmatprep.subr.bf16.mxu0 %v7521_v56  ;;  %v7194_v27 = vpack.c.bf16 %v6132_v26, %v6131_v23  ;;  %v6183_v23 = vld [vmem:[%s10306_s5 + $0x318] sm:$0xff] }
 0x7ff   : > { %7120 = vmatpush1.bf16.msra.mxu0 %v7119_v29  ;;  %v6134_v29 = vld [vmem:[%s10306_s5 + $0x228] sm:$0xff] }
 0x800   : > { %7121 = vmatprep.subr.bf16.mxu0 %v7521_v56  ;;  %v7197_v25 = vpack.c.bf16 %v6134_v29, %v6133_v28  ;;  %v6185_v28 = vld [vmem:[%s10306_s5 + $0x328] sm:$0xff] }
 0x803   : > { %7123 = vmatpush1.bf16.msra.mxu0 %v7122_v50  ;;  %v6136_v50 = vld [vmem:[%s10306_s5 + $0x238] sm:$0xff] }
 0x804   : > { %7124 = vmatprep.subr.bf16.mxu0 %v7521_v56  ;;  %v7200_v59 = vpack.c.bf16 %v6136_v50, %v6135_v43  ;;  %v6187_v43 = vld [vmem:[%s10306_s5 + $0x338] sm:$0xff] }
 0x807   : > { %7126 = vmatpush1.bf16.msra.mxu0 %v7125_v40  ;;  %v9815_v40 = vld [vmem:[%s10307_s6 + $0x2] sm:$0x3] }
 0x808   : > { %7127 = vmatprep.subr.bf16.mxu0 %v7521_v56 }
 0x80b   : > { %7129 = vmatpush1.bf16.msra.mxu0 %v7128_v46  ;;  %v6148_v46 = vld [vmem:[%s10306_s5 + $0x248] sm:$0xff] }
 0x80c   : > { %7166 = vmatprep.subr.bf16.mxu0 %v7521_v56  ;;  %v7203_v32 = vpack.c.bf16 %v6148_v46, %v6147_v45  ;;  %v6194_v45 = vld [vmem:[%s10306_s5 + $0x370] sm:$0xff]  ;;  %v6195_v46 = vld [vmem:[%s10306_s5 + $0x378] sm:$0xff] }
 0x8ad   : > { %v3693_v57 = vpop.f32.mrb[44].mxu0 }
 0x8ae   : > { %v3773_v61 = vmax.f32 %v9578_v35, %v3693_v57  ;;  %v3695_v62 = vpop.f32.mrb[45].mxu0  ;;  %v7206_v57 = vpack.c.bf16 %v6150_v39, %v6149_v48  ;;  %v6196_v48 = vld [vmem:[%s10306_s5 + $0x380] sm:$0xff]  ;;  %v6197_v39 = vld [vmem:[%s10306_s5 + $0x388] sm:$0xff] }
 0x8af   : > { %v3774_v63 = vmax.f32 %v9580_v37, %v3695_v62  ;;  %v7167_v37 = vpack.c.bf16 %v6114_v3, %v6113_v2  ;;  %v6152_v62 = vld [vmem:[%s10306_s5 + $0x268] sm:$0xff]  ;;  %v6157_v3 = vld [vmem:[%s10306_s5 + $0x290] sm:$0xff] }
 0x8b1   : > { %v3766_v1 = vpop.f32.mrb[46].mxu0 }
 0x8b2   : > { %v3775_v34 = vmax.f32 %v9582_v47, %v3766_v1  ;;  %v3768_v30 = vpop.f32.mrb[47].mxu0  ;;  %v6115_v47 = vld [vmem:[%s10306_s5 + $0x190] sm:$0xff] }
 0x8b3   : > { %v3776_v51 = vmax.f32 %v9584_v49, %v3768_v30  ;;  %v6116_v49 = vld [vmem:[%s10306_s5 + $0x198] sm:$0xff]  ;;  %v6153_v1 = vld [vmem:[%s10306_s5 + $0x270] sm:$0xff] }
 0x8b4   : > { %v3777_v52 = vmax.f32 %v3773_v61, %v3775_v34  ;;  %v7170_v5 = vpack.c.bf16 %v6116_v49, %v6115_v47  ;;  %v6151_v61 = vld [vmem:[%s10306_s5 + $0x260] sm:$0xff]  ;;  %v6154_v34 = vld [vmem:[%s10306_s5 + $0x278] sm:$0xff]  ;;  %v6160_v49 = vld [vmem:[%s10306_s5 + $0x2a8] sm:$0xff] }
 0x8b5   : > { %v3778_v60 = vmax.f32 %v3774_v63, %v3776_v51  ;;  %v7209_v63 = vpack.c.bf16 %v6152_v62, %v6151_v61  ;;  %v7212_v30 = vpack.c.bf16 %v6154_v34, %v6153_v1  ;;  %v6155_v51 = vld [vmem:[%s10306_s5 + $0x280] sm:$0xff]  ;;  %v6198_v61 = vld [vmem:[%s10306_s5 + $0x390] sm:$0xff]  ;;  %v6199_v62 = vld [vmem:[%s10306_s5 + $0x398] sm:$0xff] }
 0x8b6   : > { %v9717_v4 = vmax.f32 %v3777_v52, 0.0  ;;  %v6156_v52 = vld [vmem:[%s10306_s5 + $0x288] sm:$0xff]  ;;  %v6159_v47 = vld [vmem:[%s10306_s5 + $0x2a0] sm:$0xff] }
 0x8b7   : > { %v9715_v35 = vmax.f32 %v3778_v60, 0.0  ;;  %v7215_v2 = vpack.c.bf16 %v6156_v52, %v6155_v51  ;;  %v6158_v60 = vld [vmem:[%s10306_s5 + $0x298] sm:$0xff]  ;;  %v6200_v1 = vld [vmem:[%s10306_s5 + $0x3a0] sm:$0xff]  ;;  %v6201_v34 = vld [vmem:[%s10306_s5 + $0x3a8] sm:$0xff] }
 0x8b8   : > { %v6202_v51 = vld [vmem:[%s10306_s5 + $0x3b0] sm:$0xff]  ;;  %v6203_v52 = vld [vmem:[%s10306_s5 + $0x3b8] sm:$0xff] }
 0x8b9   : > { %6086 = vmatprep.mubr.msk.f32.mxu0 %vm3805_vm7, %v9715_v35  ;;  %6112 = vmatprep.mubr.msk.f32.mxu1 %vm3805_vm7, %v9715_v35 }
 0x8ba   : > { %3874 = vmatmul.mubr.f32.vlgmr.msra.gmra.mrb[52].mxu0 %v9717_v4  ;;  %3972 = vmatmul.mubr.f32.vlgmr.msra.gmra.mrb[48].mxu1 %v9717_v4 }
 0x8bb   : > { %7168 = vmatpush1.bf16.msra.mxu0 %v7167_v37  ;;  %6137 = vmatprep.mubr.msk.f32.mxu0 %vm3805_vm7, %v9715_v35  ;;  %v7218_v37 = vpack.c.bf16 %v6158_v60, %v6157_v3  ;;  %v6210_v60 = vld [vmem:[%s10306_s5 + $0x3c0] sm:$0xff] }
 0x8bc   : > { %7169 = vmatprep.subr.bf16.mxu0 %v7521_v56  ;;  %6307 = vmatprep.mubr.msk.f32.mxu1 %vm7522_vm8, %v7519_v7 }
 0x8bf   : > { %7171 = vmatpush1.bf16.msra.mxu0 %v7170_v5  ;;  %v7221_v5 = vpack.c.bf16 %v6160_v49, %v6159_v47  ;;  %v10067_v49 = vld [vmem:[%s10307_s6 + $0x6] sm:$0x3] }
 0x8c0   : > { %7172 = vmatprep.subr.bf16.mxu0 %v7521_v56 }
 0x8c3   : > { %7174 = vmatpush1.bf16.msra.mxu0 %v7173_v9  ;;  %v7224_v9 = vpack.c.bf16 %v6162_v8, %v6161_v6  ;;  %v6212_v6 = vld [vmem:[%s10306_s5 + $0x3d0] sm:$0xff]  ;;  %v6213_v8 = vld [vmem:[%s10306_s5 + $0x3d8] sm:$0xff] }
 0x8c4   : > { %7175 = vmatprep.subr.bf16.mxu0 %v7521_v56 }
 0x8c7   : > { %7177 = vmatpush1.bf16.msra.mxu0 %v7176_v53  ;;  %v7227_v53 = vpack.c.bf16 %v6164_v55, %v6163_v10  ;;  %v6214_v10 = vld [vmem:[%s10306_s5 + $0x3e0] sm:$0xff]  ;;  %v6215_v55 = vld [vmem:[%s10306_s5 + $0x3e8] sm:$0xff] }
 0x8c8   : > { %7178 = vmatprep.subr.bf16.mxu0 %v7521_v56 }
 0x8cb   : > { %7180 = vmatpush1.bf16.msra.mxu0 %v7179_v58  ;;  %v7230_v58 = vpack.c.bf16 %v6166_v0, %v6165_v11  ;;  %v6216_v11 = vld [vmem:[%s10306_s5 + $0x3f0] sm:$0xff] }
 0x8cc   : > { %7181 = vmatprep.subr.bf16.mxu0 %v7521_v56 }
 0x8cf   : > { %7183 = vmatpush1.bf16.msra.mxu0 %v7182_v14  ;;  %v7233_v14 = vpack.c.bf16 %v6168_v17, %v6167_v13  ;;  %v6219_v13 = vld [vmem:[%s10306_s5 + $0x408] sm:$0xff] }
 0x8d0   : > { %7184 = vmatprep.subr.bf16.mxu0 %v7521_v56 }
 0x8d3   : > { %7186 = vmatpush1.bf16.msra.mxu0 %v7185_v16  ;;  %v7236_v16 = vpack.c.bf16 %v6170_v15, %v6169_v54  ;;  %v6221_v54 = vld [vmem:[%s10306_s5 + $0x418] sm:$0xff] }
 0x8d4   : > { %7187 = vmatprep.subr.bf16.mxu0 %v7521_v56 }
 0x8d7   : > { %7189 = vmatpush1.bf16.msra.mxu0 %v7188_v19  ;;  %v6180_v19 = vld [vmem:[%s10306_s5 + $0x300] sm:$0xff] }
 0x8d8   : > { %7190 = vmatprep.subr.bf16.mxu0 %v7521_v56  ;;  %v7239_v21 = vpack.c.bf16 %v6181_v20, %v6180_v19  ;;  %v6224_v19 = vld [vmem:[%s10306_s5 + $0x430] sm:$0xff]  ;;  %v6225_v20 = vld [vmem:[%s10306_s5 + $0x438] sm:$0xff] }
 0x8db   : > { %7192 = vmatpush1.bf16.msra.mxu0 %v7191_v22  ;;  %v6182_v22 = vld [vmem:[%s10306_s5 + $0x310] sm:$0xff] }
 0x8dc   : > { %7193 = vmatprep.subr.bf16.mxu0 %v7521_v56  ;;  %v7242_v26 = vpack.c.bf16 %v6183_v23, %v6182_v22  ;;  %v6226_v22 = vld [vmem:[%s10306_s5 + $0x440] sm:$0xff]  ;;  %v6227_v23 = vld [vmem:[%s10306_s5 + $0x448] sm:$0xff] }
 0x8df   : > { %7195 = vmatpush1.bf16.msra.mxu0 %v7194_v27  ;;  %v6184_v27 = vld [vmem:[%s10306_s5 + $0x320] sm:$0xff] }
 0x8e0   : > { %7196 = vmatprep.subr.bf16.mxu0 %v7521_v56  ;;  %v7245_v29 = vpack.c.bf16 %v6185_v28, %v6184_v27  ;;  %v6228_v27 = vld [vmem:[%s10306_s5 + $0x450] sm:$0xff]  ;;  %v6229_v28 = vld [vmem:[%s10306_s5 + $0x458] sm:$0xff] }
 0x8e3   : > { %7198 = vmatpush1.bf16.msra.mxu0 %v7197_v25  ;;  %v6186_v25 = vld [vmem:[%s10306_s5 + $0x330] sm:$0xff] }
 0x8e4   : > { %7199 = vmatprep.subr.bf16.mxu0 %v7521_v56  ;;  %v7248_v50 = vpack.c.bf16 %v6187_v43, %v6186_v25  ;;  %v6230_v25 = vld [vmem:[%s10306_s5 + $0x460] sm:$0xff]  ;;  %v6231_v43 = vld [vmem:[%s10306_s5 + $0x468] sm:$0xff] }
 0x8e7   : > { %7201 = vmatpush1.bf16.msra.mxu0 %v7200_v59  ;;  %v6188_v59 = vld [vmem:[%s10306_s5 + $0x340] sm:$0xff] }
 0x8e8   : > { %6325 = vmatprep.subr.mxu0 %v7519_v7 }
 0x8ea   : > { %4067 = vmatmul.mubr.f32.vlgmr.msra.gmra.mrb[54].mxu0 %v9717_v4 }
 0x8eb   : > { %6327 = vmatprep.mubr.msk.f32.mxu0 %vm7522_vm8, %v7519_v7 }
 0x98d   : > { %v3875_v31 = vpop.f32.mrb[52].mxu0  ;;  %v9810_v33 = vpop.f32.mrb[48].mxu1 }
 0x98e   : > { %v3877_v36 = vpop.f32.mrb[53].mxu0  ;;  %v3975_v38 = vpop.f32.mrb[49].mxu1 }
 0x98f   : > { %v6190_v36 = vld [vmem:[%s10306_s5 + $0x350] sm:$0xff]  ;;  %v6191_v38 = vld [vmem:[%s10306_s5 + $0x358] sm:$0xff] }
 0x9bd   : > { %v4068_v41 = vpop.f32.mrb[54].mxu0 }
 0x9be   : > { %v4070_v42 = vpop.f32.mrb[55].mxu0  ;;  %6306 = vmatpush3.msk.msra.mxu1 %vm4076_vm9, %v4068_v41 }
 0x9bf   : > { %6308 = vmatmul.mubr.msk.f32.vlgmr.msra.gmra.mrb[50].mxu1 %vm4072_vm10, %v9815_v40  ;;  %6310 = vmatprep.subr.mxu1 %v7519_v7  ;;  %v6193_v42 = vld [vmem:[%s10306_s5 + $0x368] sm:$0xff] }
 0x9c0   : > { %6311 = vmatpush3.msk.msra.mxu1 %vm4076_vm9, %v3875_v31  ;;  %6312 = vmatprep.mubr.msk.f32.mxu1 %vm7522_vm8, %v7519_v7 }
 0x9c1   : > { %6315 = vmatprep.subr.mxu1 %v7519_v7 }
 0x9c7   : > { %6313 = vmatmul.mubr.msk.f32.vlgmr.msra.gmra.mrb[50].mxu1 %vm4072_vm10, %v9828_v44 }
 0x9c8   : > { %6316 = vmatpush3.msk.msra.mxu1 %vm4076_vm9, %v4068_v41  ;;  %6317 = vmatprep.mubr.msk.f32.mxu1 %vm7522_vm8, %v7519_v7  ;;  %v6192_v41 = vld [vmem:[%s10306_s5 + $0x360] sm:$0xff] }
 0x9c9   : > { %6320 = vmatprep.subr.mxu1 %v7519_v7 }
 0x9cb   : > { %6318 = vmatmul.mubr.msk.f32.vlgmr.msra.gmra.mrb[52].mxu1 %vm4072_vm10, %v9838_v24 }
 0x9cc   : > { %6321 = vmatpush3.msk.msra.mxu1 %vm4076_vm9, %v3875_v31  ;;  %6322 = vmatprep.mubr.msk.f32.mxu1 %vm7522_vm8, %v7519_v7  ;;  %v6189_v31 = vld [vmem:[%s10306_s5 + $0x348] sm:$0xff] }
 0x9cd   : > { %7202 = vmatprep.subr.bf16.mxu1 %v7521_v56 }
 0x9d3   : > { %6323 = vmatmul.mubr.msk.f32.vlgmr.msra.gmra.mrb[52].mxu1 %vm4072_vm10, %v9815_v40 }
 0x9d4   : > { %7204 = vmatpush1.bf16.msra.mxu1 %v7203_v32  ;;  %6171 = vmatprep.mubr.msk.f32.mxu1 %vm3805_vm7, %v9715_v35  ;;  %v7260_v32 = vpack.c.bf16 %v6195_v46, %v6194_v45  ;;  %v6240_v45 = vld [vmem:[%s10308_s7 + $0x48] sm:$0xff] }
 0x9d5   : > { %7205 = vmatprep.subr.bf16.mxu1 %v7521_v56 }
 0x9d8   : > { %7207 = vmatpush1.bf16.msra.mxu1 %v7206_v57  ;;  %v7263_v57 = vpack.c.bf16 %v6197_v39, %v6196_v48  ;;  %v6243_v39 = vld [vmem:[%s10308_s7 + $0x60] sm:$0xff] }
 0x9d9   : > { %7208 = vmatprep.subr.bf16.mxu1 %v7521_v56 }
 0x9dc   : > { %7210 = vmatpush1.bf16.msra.mxu1 %v7209_v63  ;;  %v7266_v63 = vpack.c.bf16 %v6199_v62, %v6198_v61  ;;  %v6245_v62 = vld [vmem:[%s10308_s7 + $0x70] sm:$0xff] }
 0x9dd   : > { %7211 = vmatprep.subr.bf16.mxu1 %v7521_v56 }
 0x9e0   : > { %7213 = vmatpush1.bf16.msra.mxu1 %v7212_v30  ;;  %v7269_v30 = vpack.c.bf16 %v6201_v34, %v6200_v1  ;;  %v5405_v34 = vld [vmem:[%s10309_s8] sm:$0xff] }
 0x9e1   : > { %7214 = vmatprep.subr.bf16.mxu1 %v7521_v56 }
 0x9e4   : > { %7216 = vmatpush1.bf16.msra.mxu1 %v7215_v2  ;;  %v7272_v2 = vpack.c.bf16 %v6203_v52, %v6202_v51  ;;  %v5407_v51 = vld [vmem:[%s10309_s8 + $0x10] sm:$0xff] }
 0x9e5   : > { %7217 = vmatprep.subr.bf16.mxu1 %v7521_v56 }
 0x9e8   : > { %7219 = vmatpush1.bf16.msra.mxu1 %v7218_v37  ;;  %v6211_v37 = vld [vmem:[%s10306_s5 + $0x3c8] sm:$0xff] }
 0x9e9   : > { %7220 = vmatprep.subr.bf16.mxu1 %v7521_v56 }
 0x9ec   : > { %7222 = vmatpush1.bf16.msra.mxu1 %v7221_v5  ;;  %v7275_v5 = vpack.c.bf16 %v6211_v37, %v6210_v60  ;;  %v5409_v60 = vld [vmem:[%s10309_s8 + $0x20] sm:$0xff]  ;;  %v5410_v37 = vld [vmem:[%s10309_s8 + $0x28] sm:$0xff] }
 0x9ed   : > { %7223 = vmatprep.subr.bf16.mxu1 %v7521_v56 }
 0x9f0   : > { %7225 = vmatpush1.bf16.msra.mxu1 %v7224_v9  ;;  %v7278_v9 = vpack.c.bf16 %v6213_v8, %v6212_v6 }
 0x9f1   : > { %7226 = vmatprep.subr.bf16.mxu1 %v7521_v56 }
 0x9f4   : > { %7228 = vmatpush1.bf16.msra.mxu1 %v7227_v53  ;;  %v7281_v53 = vpack.c.bf16 %v6215_v55, %v6214_v10 }
 0x9f5   : > { %7229 = vmatprep.subr.bf16.mxu1 %v7521_v56 }
 0x9f8   : > { %7231 = vmatpush1.bf16.msra.mxu1 %v7230_v58  ;;  %v6218_v58 = vld [vmem:[%s10306_s5 + $0x400] sm:$0xff] }
 0x9f9   : > { %7232 = vmatprep.subr.bf16.mxu1 %v7521_v56  ;;  %v7287_v17 = vpack.c.bf16 %v6219_v13, %v6218_v58  ;;  %v5243_v13 = vld [vmem:[%s10308_s7 + $0x10] sm:$0xff] }
 0x9fc   : > { %7234 = vmatpush1.bf16.msra.mxu1 %v7233_v14  ;;  %v6220_v14 = vld [vmem:[%s10306_s5 + $0x410] sm:$0xff] }
 0x9fd   : > { %7235 = vmatprep.subr.bf16.mxu1 %v7521_v56  ;;  %v7290_v15 = vpack.c.bf16 %v6221_v54, %v6220_v14  ;;  %v5245_v54 = vld [vmem:[%s10308_s7 + $0x20] sm:$0xff] }
 0xa00   : > { %7237 = vmatpush1.bf16.msra.mxu1 %v7236_v16  ;;  %v6222_v16 = vld [vmem:[%s10306_s5 + $0x420] sm:$0xff] }
 0xa01   : > { %6345 = vmatprep.subr.mxu1 %v7519_v7 }
 0xa03   : > { %4461 = vmatmul.mubr.f32.vlgmr.msra.gmra.mrb[54].mxu1 %v9717_v4 }
 0xa04   : > { %6347 = vmatprep.mubr.msk.f32.mxu1 %vm7522_vm8, %v7519_v7 }
 0xad6   : > { %v4462_v18 = vpop.f32.mrb[54].mxu1 }
 0xad7   : > { %v4464_v12 = vpop.f32.mrb[55].mxu1  ;;  %6326 = vmatpush3.msk.msra.mxu0 %vm4076_vm9, %v4462_v18 }
 0xad8   : > { %6328 = vmatmul.mubr.msk.f32.vlgmr.msra.gmra.mrb[56].mxu0 %vm4072_vm10, %v9815_v40  ;;  %6330 = vmatprep.subr.mxu0 %v7519_v7 }
 0xad9   : > { %6331 = vmatpush3.msk.msra.mxu0 %vm4076_vm9, %v9810_v33  ;;  %6332 = vmatprep.mubr.msk.f32.mxu0 %vm7522_vm8, %v7519_v7 }
 0xada   : > { %6335 = vmatprep.subr.mxu0 %v7519_v7 }
 0xae0   : > { %6333 = vmatmul.mubr.msk.f32.vlgmr.msra.gmra.mrb[56].mxu0 %vm4072_vm10, %v9828_v44  ;;  %v7257_v44 = vpack.c.bf16 %v6193_v42, %v6192_v41 }
 0xae1   : > { %6336 = vmatpush3.msk.msra.mxu0 %vm4076_vm9, %v4462_v18  ;;  %6337 = vmatprep.mubr.msk.f32.mxu0 %vm7522_vm8, %v7519_v7  ;;  %v6223_v18 = vld [vmem:[%s10306_s5 + $0x428] sm:$0xff] }
 0xae2   : > { %6340 = vmatprep.subr.mxu0 %v7519_v7  ;;  %v7293_v12 = vpack.c.bf16 %v6223_v18, %v6222_v16  ;;  %v5247_v18 = vld [vmem:[%s10308_s7 + $0x30] sm:$0xff] }
 0xae4   : > { %6338 = vmatmul.mubr.msk.f32.vlgmr.msra.gmra.mrb[58].mxu0 %vm4072_vm10, %v9838_v24 }
 0xae5   : > { %6341 = vmatpush3.msk.msra.mxu0 %vm4076_vm9, %v9810_v33  ;;  %6342 = vmatprep.mubr.msk.f32.mxu0 %vm7522_vm8, %v7519_v7  ;;  %v7251_v33 = vpack.c.bf16 %v6189_v31, %v6188_v59  ;;  %v6232_v59 = vld [vmem:[%s10306_s5 + $0x470] sm:$0xff]  ;;  %v6233_v31 = vld [vmem:[%s10306_s5 + $0x478] sm:$0xff] }
 0xae6   : > { %7238 = vmatprep.subr.bf16.mxu0 %v7521_v56 }
 0xaec   : > { %6343 = vmatmul.mubr.msk.f32.vlgmr.msra.gmra.mrb[58].mxu0 %vm4072_vm10, %v9815_v40  ;;  %v7254_v40 = vpack.c.bf16 %v6191_v38, %v6190_v36 }
 0xaed   : > { %7240 = vmatpush1.bf16.msra.mxu0 %v7239_v21  ;;  %6204 = vmatprep.mubr.msk.f32.mxu0 %vm3805_vm7, %v9715_v35  ;;  %v7296_v21 = vpack.c.bf16 %v6225_v20, %v6224_v19  ;;  %v5411_v19 = vld [vmem:[%s10309_s8 + $0x30] sm:$0xff]  ;;  %v5412_v20 = vld [vmem:[%s10309_s8 + $0x38] sm:$0xff] }
 0xaee   : > { %7241 = vmatprep.subr.bf16.mxu0 %v7521_v56 }
 0xaf1   : > { %7243 = vmatpush1.bf16.msra.mxu0 %v7242_v26  ;;  %v7299_v26 = vpack.c.bf16 %v6227_v23, %v6226_v22 }
 0xaf2   : > { %7244 = vmatprep.subr.bf16.mxu0 %v7521_v56 }
 0xaf5   : > { %7246 = vmatpush1.bf16.msra.mxu0 %v7245_v29  ;;  %v7302_v29 = vpack.c.bf16 %v6229_v28, %v6228_v27 }
 0xaf6   : > { %7247 = vmatprep.subr.bf16.mxu0 %v7521_v56 }
 0xaf9   : > { %7249 = vmatpush1.bf16.msra.mxu0 %v7248_v50  ;;  %v7305_v50 = vpack.c.bf16 %v6231_v43, %v6230_v25 }
 0xafa   : > { %7250 = vmatprep.subr.bf16.mxu0 %v7521_v56 }
 0xafd   : > { %7252 = vmatpush1.bf16.msra.mxu0 %v7251_v33  ;;  %v7308_v33 = vpack.c.bf16 %v6233_v31, %v6232_v59 }
 0xafe   : > { %7253 = vmatprep.subr.bf16.mxu0 %v7521_v56 }
 0xb01   : > { %7255 = vmatpush1.bf16.msra.mxu0 %v7254_v40 }
 0xb02   : > { %7256 = vmatprep.subr.bf16.mxu0 %v7521_v56 }
 0xb05   : > { %7258 = vmatpush1.bf16.msra.mxu0 %v7257_v44  ;;  %v6239_v44 = vld [vmem:[%s10308_s7 + $0x40] sm:$0xff] }
 0xb06   : > { %7259 = vmatprep.subr.bf16.mxu0 %v7521_v56 }
 0xb09   : > { %7261 = vmatpush1.bf16.msra.mxu0 %v7260_v32  ;;  %v6242_v32 = vld [vmem:[%s10308_s7 + $0x58] sm:$0xff] }
 0xb0a   : > { %7262 = vmatprep.subr.bf16.mxu0 %v7521_v56 }
 0xb0d   : > { %7264 = vmatpush1.bf16.msra.mxu0 %v7263_v57  ;;  %v6244_v57 = vld [vmem:[%s10308_s7 + $0x68] sm:$0xff] }
 0xb0e   : > { %7265 = vmatprep.subr.bf16.mxu0 %v7521_v56  ;;  %v7317_v61 = vpack.c.bf16 %v6244_v57, %v6243_v39 }
 0xb11   : > { %7267 = vmatpush1.bf16.msra.mxu0 %v7266_v63  ;;  %v6246_v63 = vld [vmem:[%s10308_s7 + $0x78] sm:$0xff] }
 0xb12   : > { %7268 = vmatprep.subr.bf16.mxu0 %v7521_v56  ;;  %v7320_v1 = vpack.c.bf16 %v6246_v63, %v6245_v62 }
 0xb15   : > { %7270 = vmatpush1.bf16.msra.mxu0 %v7269_v30  ;;  %v5406_v30 = vld [vmem:[%s10309_s8 + $0x8] sm:$0xff] }
 0xb16   : > { %7271 = vmatprep.subr.bf16.mxu0 %v7521_v56  ;;  %v7335_v52 = vpack.c.bf16 %v5406_v30, %v5405_v34 }
 0xb19   : > { %7273 = vmatpush1.bf16.msra.mxu0 %v7272_v2  ;;  %v5408_v2 = vld [vmem:[%s10309_s8 + $0x18] sm:$0xff] }
 0xb1a   : > { %6355 = vmatprep.subr.mxu0 %v7519_v7 }
 0xb1c   : > { %4842 = vmatmul.mubr.f32.vlgmr.msra.gmra.mrb[60].mxu0 %v9717_v4 }
 0xb1d   : > { %6357 = vmatprep.mubr.msk.f32.mxu0 %vm7522_vm8, %v7519_v7 }
 0xbef   : > { %v4843_v3 = vpop.f32.mrb[60].mxu0 }
 0xbf0   : > { %v4845_v47 = vpop.f32.mrb[61].mxu0  ;;  %6346 = vmatpush3.msk.msra.mxu1 %vm4076_vm9, %v4843_v3 }
 0xbf1   : > { %6348 = vmatmul.mubr.msk.f32.vlgmr.msra.gmra.mrb[50].mxu1 %vm4072_vm10, %v9838_v24  ;;  %6350 = vmatprep.subr.mxu1 %v7519_v7  ;;  %v7341_v47 = vpack.c.bf16 %v5410_v37, %v5409_v60 }
 0xbf2   : > { %6351 = vmatpush3.msk.msra.mxu1 %vm4076_vm9, %v4843_v3  ;;  %6352 = vmatprep.mubr.msk.f32.mxu1 %vm7522_vm8, %v7519_v7  ;;  %v7338_v3 = vpack.c.bf16 %v5408_v2, %v5407_v51 }
 0xbf3   : > { %7274 = vmatprep.subr.bf16.mxu1 %v7521_v56 }
 0xbf5   : > { %6353 = vmatmul.mubr.msk.f32.vlgmr.msra.gmra.mrb[52].mxu1 %vm4072_vm10, %v10067_v49 }
 0xbf6   : > { %7276 = vmatpush1.bf16.msra.mxu1 %v7275_v5  ;;  %6234 = vmatprep.mubr.msk.f32.mxu1 %vm3805_vm7, %v9715_v35  ;;  %v6217_v35 = vld [vmem:[%s10306_s5 + $0x3f8] sm:$0xff] }
 0xbf7   : > { %7277 = vmatprep.subr.bf16.mxu1 %v7521_v56  ;;  %v7284_v0 = vpack.c.bf16 %v6217_v35, %v6216_v11  ;;  %v5242_v11 = vld [vmem:[%s10308_s7 + $0x8] sm:$0xff] }
 0xbfa   : > { %7279 = vmatpush1.bf16.msra.mxu1 %v7278_v9 }
 0xbfb   : > { %7280 = vmatprep.subr.bf16.mxu1 %v7521_v56 }
 0xbfe   : > { %7282 = vmatpush1.bf16.msra.mxu1 %v7281_v53  ;;  %v5241_v53 = vld [vmem:[%s10308_s7] sm:$0xff] }
 0xbff   : > { %7283 = vmatprep.subr.bf16.mxu1 %v7521_v56 }
 0xc02   : > { %7285 = vmatpush1.bf16.msra.mxu1 %v7284_v0  ;;  %v7323_v0 = vpack.c.bf16 %v5242_v11, %v5241_v53 }
 0xc03   : > { %7286 = vmatprep.subr.bf16.mxu1 %v7521_v56 }
 0xc06   : > { %7288 = vmatpush1.bf16.msra.mxu1 %v7287_v17  ;;  %v5244_v17 = vld [vmem:[%s10308_s7 + $0x18] sm:$0xff] }
 0xc07   : > { %7289 = vmatprep.subr.bf16.mxu1 %v7521_v56  ;;  %v7326_v14 = vpack.c.bf16 %v5244_v17, %v5243_v13 }
 0xc0a   : > { %7291 = vmatpush1.bf16.msra.mxu1 %v7290_v15  ;;  %v5246_v15 = vld [vmem:[%s10308_s7 + $0x28] sm:$0xff] }
 0xc0b   : > { %7292 = vmatprep.subr.bf16.mxu1 %v7521_v56  ;;  %v7329_v16 = vpack.c.bf16 %v5246_v15, %v5245_v54 }
 0xc0e   : > { %7294 = vmatpush1.bf16.msra.mxu1 %v7293_v12 }
 0xc0f   : > { %7295 = vmatprep.subr.bf16.mxu1 %v7521_v56 }
 0xc12   : > { %7297 = vmatpush1.bf16.msra.mxu1 %v7296_v21  ;;  %v7344_v21 = vpack.c.bf16 %v5412_v20, %v5411_v19 }
 0xc13   : > { %7298 = vmatprep.subr.bf16.mxu1 %v7521_v56 }
 0xc16   : > { %7300 = vmatpush1.bf16.msra.mxu1 %v7299_v26 }
 0xc17   : > { %7301 = vmatprep.subr.bf16.mxu1 %v7521_v56 }
 0xc1a   : > { %7303 = vmatpush1.bf16.msra.mxu1 %v7302_v29 }
 0xc1b   : > { %7304 = vmatprep.subr.bf16.mxu1 %v7521_v56 }
 0xc1e   : > { %7306 = vmatpush1.bf16.msra.mxu1 %v7305_v50 }
 0xc1f   : > { %7307 = vmatprep.subr.bf16.mxu1 %v7521_v56 }
 0xc22   : > { %7309 = vmatpush1.bf16.msra.mxu1 %v7308_v33 }
 0xc23   : > { %7334 = vmatprep.subr.bf16.mxu1 %v7521_v56 }
 0xc25   : > { %5087 = vmatmul.mubr.f32.vlgmr.msra.gmra.mrb[56].mxu1 %v9717_v4  ;;  %v7311_v4 = vpack.c.bf16 %v6240_v45, %v6239_v44 }
 0xc26   : > { %6419 = vmatprep.mubr.msk.f32.mxu1 %vm7522_vm8, %v7519_v7  ;;  %7336 = vmatpush3.bf16.msra.mxu1 %v7335_v52 }
 0xc27   : > { %7337 = vmatprep.subr.bf16.mxu1 %v7521_v56 }
 0xc2a   : > { %7339 = vmatpush3.bf16.msra.mxu1 %v7338_v3 }
 0xc2b   : > { %7340 = vmatprep.subr.bf16.mxu1 %v7521_v56 }
 0xc2e   : > { %7342 = vmatpush3.bf16.msra.mxu1 %v7341_v47 }
 0xc2f   : > { %7343 = vmatprep.subr.bf16.mxu1 %v7521_v56 }
 0xc32   : > { %7345 = vmatpush3.bf16.msra.mxu1 %v7344_v21 }
 0xcc4   : > { %v4916_v36 = vpop.f32.mrb[50].mxu1 }
 0xcc5   : > { %v6349_v38 = vpop.f32.mrb[51].mxu1 }
 0xcc8   : > { %v4992_v40 = vpop.f32.mrb[52].mxu1 }
 0xcc9   : > { %v6354_v41 = vpop.f32.mrb[53].mxu1 }
 0xcf8   : > { %v5088_v42 = vpop.f32.mrb[56].mxu1 }
 0xcf9   : > { %v5090_v46 = vpop.f32.mrb[57].mxu1  ;;  %6356 = vmatpush3.msk.msra.mxu0 %vm4076_vm9, %v5088_v42 }
 0xcfa   : > { %6358 = vmatmul.mubr.msk.f32.vlgmr.msra.gmra.mrb[56].mxu0 %vm4072_vm10, %v9838_v24  ;;  %6360 = vmatprep.subr.mxu0 %v7519_v7  ;;  %v6241_v24 = vld [vmem:[%s10308_s7 + $0x50] sm:$0xff] }
 0xcfb   : > { %6361 = vmatpush3.msk.msra.mxu0 %vm4076_vm9, %v5088_v42  ;;  %6362 = vmatprep.mubr.msk.f32.mxu0 %vm7522_vm8, %v7519_v7  ;;  %v7314_v48 = vpack.c.bf16 %v6242_v32, %v6241_v24 }
 0xcfc   : > { %7310 = vmatprep.subr.bf16.mxu0 %v7521_v56 }
 0xcfe   : > { %6363 = vmatmul.mubr.msk.f32.vlgmr.msra.gmra.mrb[58].mxu0 %vm4072_vm10, %v10067_v49 }
 0xcff   : > { %7312 = vmatpush3.bf16.msra.mxu0 %v7311_v4  ;;  %6381 = vmatprep.mubr.msk.f32.mxu0 %vm7522_vm8, %v7519_v7 }
 0xd00   : > { %7313 = vmatprep.subr.bf16.mxu0 %v7521_v56 }
 0xd03   : > { %7315 = vmatpush3.bf16.msra.mxu0 %v7314_v48 }
 0xd04   : > { %7316 = vmatprep.subr.bf16.mxu0 %v7521_v56 }
 0xd07   : > { %7318 = vmatpush3.bf16.msra.mxu0 %v7317_v61 }
 0xd08   : > { %7319 = vmatprep.subr.bf16.mxu0 %v7521_v56 }
 0xd0b   : > { %7321 = vmatpush3.bf16.msra.mxu0 %v7320_v1 }
 0xd0c   : > { %7322 = vmatprep.subr.bf16.mxu0 %v7521_v56 }
 0xdcd   : > { %v5161_v49 = vpop.f32.mrb[56].mxu0 }
 0xdce   : > { %v5237_v5 = vmax.f32 %v4916_v36, %v5161_v49  ;;  %v6359_v6 = vpop.f32.mrb[57].mxu0 }
 0xdd1   : > { %v5232_v8 = vpop.f32.mrb[58].mxu0 }
 0xdd2   : > { %v5238_v9 = vmax.f32 %v4992_v40, %v5232_v8  ;;  %v6364_v10 = vpop.f32.mrb[59].mxu0 }
 0xdd4   : > { %v5239_v55 = vmax.f32 %v5237_v5, %v5238_v9 }
 0xdd6   : > { %v5240_v35 = vmax.f32 %v5239_v55, 0.0 }
 0xdd8   : > { %v5259_v58 = vrot.slane %v5240_v35, 1 }
 0xdda   : > { %6382 = vmatmul.mubr.msk.f32.vlgmr.msra.gmra.mrb[62].mxu0 %vm3805_vm7, %v5259_v58 }
 0xddb   : > { %7324 = vmatpush3.bf16.msra.mxu0 %v7323_v0  ;;  %6400 = vmatprep.mubr.msk.f32.mxu0 %vm7522_vm8, %v7519_v7  ;;  %v5248_v7 = vld [vmem:[%s10308_s7 + $0x38] sm:$0xff] }
 0xddc   : > { %7325 = vmatprep.subr.bf16.mxu0 %v7521_v56  ;;  %v7332_v12 = vpack.c.bf16 %v5248_v7, %v5247_v18 }
 0xddf   : > { %7327 = vmatpush3.bf16.msra.mxu0 %v7326_v14 }
 0xde0   : > { %7328 = vmatprep.subr.bf16.mxu0 %v7521_v56 }
 0xde3   : > { %7330 = vmatpush3.bf16.msra.mxu0 %v7329_v16 }
 0xde4   : > { %7331 = vmatprep.subr.bf16.mxu0 %v7521_v56 }
 0xde7   : > { %7333 = vmatpush3.bf16.msra.mxu0 %v7332_v12 }
 0xdea   : > { %6401 = vmatmul.mubr.msk.f32.vlgmr.msra.gmra.mrb[62].mxu0 %vm3805_vm7, %v5240_v35 }
 0xebd   : > { %v5400_v22 = vpop.f32.mrb[62].mxu0 }
 0xebe   : > { %v5404_v23 = vmax.f32 %v5400_v22, 0.0  ;;  %v6402_v26 = vpop.f32.mrb[63].mxu0 }
 0xec0   : > { %6420 = vmatmul.mubr.msk.f32.vlgmr.msra.gmra.mrb[58].mxu1 %vm3805_vm7, %v5404_v23 }
 0xf93   : > { %v5482_v56 = vpop.f32.mrb[58].mxu1 }
 0xf94   : > { %5486 = vst [vmem:[%s324_s27] sm:$0x1] %v5482_v56  ;;  %v6421_v27 = vpop.f32.mrb[59].mxu1 }
 0xf95   : > { %7468 = shalt.err (!%p7465_p3)
}
 0xf96   : > { %s7469_s26 = scalar_lea.hbm %s10261_s16, 16  ;;  %s7473_s28 = scalar_lea.hbm %s10310_s9, 32 }
 0xf97   : > { %p7470_p4 = scmp.ne.s32.totalorder %s10261_s16, %s7469_s26  ;;  %p7474_p9 = scmp.lt.u32.totalorder %s10261_s16, %s10310_s9 }
 0xf98   : > { %p7475_p10 = scmp.lt.u32.totalorder %s7473_s28, %s7469_s26  ;;  %p7477_p12 = scmp.lt.u32.totalorder %s7469_s26, %s10261_s16 }
 0xf99   : > { %p7471_p7 = pnand %p7470_p4, %p7612_p5 }
 0xf9a   : > { %p7476_p11 = por %p7475_p10, %p7474_p9 }
 0xf9b   : > { %p7472_p8 = pneg %p7471_p7 }
 0xf9c   : > { %p7478_p13 = por %p7477_p12, %p7476_p11 }
 0xf9e   : > { %p7479_p0 = pnand %p7478_p13, %p7472_p8 }
 0xfa0   : > { %7482 = shalt.err (!%p7479_p0)
}
 0xfa1   : > { %7412 = dma.vmem_to_hbm [thread:$0]  (%p7612_p5), %s10256_s23, 16, %s10261_s16, %s5488_s17  }
 0xfa2 PF: > { %p7418_p1 = scmp.ge.s32.totalorder %s7517_s12, 2  ;;  %s5512_s22 = sand.u32 1, %s7505_s30  }
 0xfa3   : > { %s5513_s13 = scalar_lea.sflag [#allocation3], %s5512_s22 }
 0xfa4   : > { %p7415_p2 = pnand %p7418_p1, %p7616_p6 }
 0xfa6   : > { %7500 = dma.done.wait (!%p7415_p2), %s5513_s13, 16  }
 0xfa7   : > { %7502 = vsyncadd (!%p7415_p2), %s5513_s13, 4294967280  ;;  %p19_p3 = scmp.ge.s32.totalorder %s7599_s15, 4   ;;  %s10315_s30 = smov %s7509_s10 }
 0xfa8   : > { %s10316_s10 = smov %s7513_s11  ;;  %s10317_s11 = smov %s7610_s18 }
 0xfa9   : > { %s10318_s12 = smov %s7599_s15  ;;  %21 = sbr.rel (!%p19_p3) target bundleno = 3 (0x3), region = 116 }
 0xfb0   :  { %5517 = vsyncpa [#allocation3], 1 }
 0xfb1   :  { %5519 = vsyncpa [#allocation3 + $0x1], 1 }

</bundles_post_ra>
